<compile_context>
chip_gen: v7x
topology: tpu7x:2x2x1
jax: 0.10.0
libtpu: 0.0.40
codegen_flags: <defaults>
</compile_context>

<pallas_src>
import jax
import jax.numpy as jnp
from jax.experimental import pallas as pl
from jax.experimental.pallas import tpu as pltpu


def _round_up(x, m):
    return ((x + m - 1) // m) * m


def _bilinear_kernel(x_ref, w2_ref, b_ref, out_ref):
    x = x_ref[...]                                                     # (TB, D), compute dtype
    tb, d = x.shape
    o_pad = out_ref.shape[-1]
    # One lane-dense MXU matmul: t[n, o*D + j] = sum_i x[n, i] * W[o, i, j]
    t = jnp.dot(x, w2_ref[...], preferred_element_type=jnp.float32)    # (TB, O_pad*D) f32
    t = t.reshape(tb, o_pad, d)                                        # (TB, O_pad, D)
    # y[n, o] = sum_j t[n, o, j] * x[n, j]  (VPU mul + lane reduce, f32)
    y = jnp.sum(t * x.astype(jnp.float32)[:, None, :], axis=-1)        # (TB, O_pad)
    # Bias added once, after the reduction.
    out_ref[...] = (y + b_ref[...].astype(jnp.float32)).astype(out_ref.dtype)


def bilinear(x, w, b=None, *, batch_tile=256, compute_dtype=jnp.float32):
    """Pallas TPU implementation of torch.nn.Bilinear(x, x): y[n] = x[n] @ W @ x[n] + b."""
    B, D = x.shape
    O = w.shape[0]
    assert w.shape == (O, D, D), w.shape
    if b is None:
        b = jnp.zeros((O,), jnp.float32)

    # Lane-dense output: pad the output-feature axis up to a multiple of 128.
    O_pad = _round_up(O, 128)
    # W2[i, o*D + j] = W[o, i, j]  (zero rows for the padded output features).
    w_p = jnp.pad(w, ((0, O_pad - O), (0, 0), (0, 0)))
    w2 = jnp.transpose(w_p, (1, 0, 2)).reshape(D, O_pad * D).astype(compute_dtype)
    b_p = jnp.pad(b.astype(jnp.float32), (0, O_pad - O)).reshape(1, O_pad)

    # Batch tiling: big tiles to fill MXU rows / amortize grid-step overhead,
    # but keep >= 2 grid steps when the batch allows (2 TensorCores on v7x).
    tile = min(batch_tile, _round_up(B, 8))
    if B > 8 and _round_up(B, tile) // tile < 2:
        tile = _round_up((B + 1) // 2, 8)
    B_pad = _round_up(B, tile)
    x_p = x.astype(compute_dtype)
    if B_pad != B:
        x_p = jnp.pad(x_p, ((0, B_pad - B), (0, 0)))

    # Explicit VMEM budget: resident weight/bias + double-buffered x/out tiles
    # + f32 matmul intermediate, with headroom; clamped to stay inside v7x's 64 MiB.
    itemsize = jnp.dtype(compute_dtype).itemsize
    resident = D * O_pad * D * itemsize + O_pad * 4
    per_step = 2 * (tile * D * itemsize + tile * O_pad * 4) + 2 * tile * O_pad * D * 4
    vmem_limit = int(min(max(2 * (resident + per_step), 32 << 20), 56 << 20))

    out = pl.pallas_call(
        _bilinear_kernel,
        out_shape=jax.ShapeDtypeStruct((B_pad, O_pad), x.dtype),
        grid_spec=pltpu.PrefetchScalarGridSpec(
            num_scalar_prefetch=0,
            grid=(B_pad // tile,),
            in_specs=[
                pl.BlockSpec((tile, D), lambda i: (i, 0)),        # batch tile of x
                pl.BlockSpec((D, O_pad * D), lambda i: (0, 0)),   # reshaped weight, resident
                pl.BlockSpec((1, O_pad), lambda i: (0, 0)),       # bias, resident
            ],
            out_specs=pl.BlockSpec((tile, O_pad), lambda i: (i, 0)),
        ),
        compiler_params=pltpu.CompilerParams(
            dimension_semantics=("parallel",),
            vmem_limit_bytes=vmem_limit,
        ),
    )(x_p, w2, b_p)
    # TODO(synk): for very large (O, D) the resident W2 block should get its own
    # output-feature grid axis instead of being kept fully resident in VMEM.
    return out[:B, :O]


if __name__ == "__main__":
    in_features = 32
    out_features = 16
    batch = 16

    key = jax.random.PRNGKey(0)
    kx, kw, kb = jax.random.split(key, 3)

    # Same shapes/init scheme as nn.Bilinear: uniform(-1/sqrt(in1_features), +...).
    bound = 1.0 / (in_features ** 0.5)
    x = jax.random.normal(kx, (batch, in_features), jnp.float32)
    w = jax.random.uniform(kw, (out_features, in_features, in_features),
                           jnp.float32, -bound, bound)
    b = jax.random.uniform(kb, (out_features,), jnp.float32, -bound, bound)

    # Pure-JAX reference of nn.Bilinear(x, x): y[n,o] = x[n,:] @ W[o] @ x[n,:] + b[o]
    y_ref = jnp.einsum("bi,oij,bj->bo", x, w, x) + b[None, :]

    # f32 path: tight tolerance.
    y = jax.block_until_ready(bilinear(x, w, b))
    assert y.shape == (batch, out_features)
    assert jnp.allclose(y, y_ref, atol=1e-4, rtol=1e-4), "f32 mismatch vs reference"

    # bf16 MXU fast path (f32 accumulation): looser tolerance.
    y_bf16 = jax.block_until_ready(bilinear(x, w, b, compute_dtype=jnp.bfloat16))
    assert jnp.allclose(y_bf16, y_ref, atol=1e-1, rtol=5e-2), "bf16 mismatch vs reference"

    print("KERNEL_OK")
</pallas_src>

<mosaic_0001>
module attributes {stable_mosaic.version = 11 : i64} {
  func.func @_bilinear_kernel(%arg0: i32, %arg1: memref<8x32xf32, #tpu.memory_space<vmem>>, %arg2: memref<32x4096xf32, #tpu.memory_space<vmem>>, %arg3: memref<1x128xf32, #tpu.memory_space<vmem>>, %arg4: memref<8x128xf32, #tpu.memory_space<vmem>>) attributes {dimension_semantics = [#tpu.dimension_semantics<parallel>], iteration_bounds = array<i64: 2>, scalar_prefetch = 0 : i64, scratch_operands = 0 : i64, tpu.core_type = #tpu.core_type<tc>, window_params = [{transform_indices = @transform_0, window_bounds = array<i64: 8, 32>}, {pipeline_mode = #tpu.pipeline_mode<synchronous>, transform_indices = @transform_1, window_bounds = array<i64: 32, 4096>}, {pipeline_mode = #tpu.pipeline_mode<synchronous>, transform_indices = @transform_2, window_bounds = array<i64: 1, 128>}, {transform_indices = @transform_3, window_bounds = array<i64: 8, 128>}]} {
    %c0 = arith.constant 0 : index
    %c0_0 = arith.constant 0 : index
    %0 = vector.load %arg1[%c0, %c0_0] : memref<8x32xf32, #tpu.memory_space<vmem>>, vector<8x32xf32>
    %c0_1 = arith.constant 0 : index
    %c0_2 = arith.constant 0 : index
    %1 = vector.load %arg2[%c0_1, %c0_2] : memref<32x4096xf32, #tpu.memory_space<vmem>>, vector<32x4096xf32>
    %cst = arith.constant dense<0.000000e+00> : vector<8x4096xf32>
    %2 = tpu.matmul %0, %1, %cst {dimension_numbers = #tpu.dot_dimension_numbers<[1], [0], [0], [1], [0, 0, 1, 1], [], []>} : vector<8x32xf32>, vector<32x4096xf32>, vector<8x4096xf32> -> vector<8x4096xf32>
    %3 = vector.shape_cast %2 : vector<8x4096xf32> to vector<8x128x32xf32>
    %4 = vector.shape_cast %0 : vector<8x32xf32> to vector<8x1x32xf32>
    %5 = vector.broadcast %4 : vector<8x1x32xf32> to vector<8x128x32xf32>
    %6 = arith.mulf %3, %5 : vector<8x128x32xf32>
    %cst_3 = arith.constant dense<0.000000e+00> : vector<8x128xf32>
    %7 = vector.multi_reduction <add>, %6, %cst_3 [2] : vector<8x128x32xf32> to vector<8x128xf32>
    %c0_4 = arith.constant 0 : index
    %c0_5 = arith.constant 0 : index
    %8 = vector.load %arg3[%c0_4, %c0_5] : memref<1x128xf32, #tpu.memory_space<vmem>>, vector<1x128xf32>
    %9 = vector.broadcast %8 : vector<1x128xf32> to vector<8x128xf32>
    %10 = arith.addf %7, %9 : vector<8x128xf32>
    %c0_6 = arith.constant 0 : index
    %c0_7 = arith.constant 0 : index
    %11 = vector.load %arg4[%c0_6, %c0_7] : memref<8x128xf32, #tpu.memory_space<vmem>>, vector<8x128xf32>
    tpu.vector_store %arg4[%c0_6, %c0_7], %10 {strides = array<i32>} : memref<8x128xf32, #tpu.memory_space<vmem>>, vector<8x128xf32>,
    return
  }
  func.func @transform_0(%arg0: i32) -> (i32, i32) {
    %c0_i32 = arith.constant 0 : i32
    %c0_i32_0 = arith.constant 0 : i32
    return %arg0, %c0_i32 : i32, i32
  }
  func.func @transform_1(%arg0: i32) -> (i32, i32) {
    %c0_i32 = arith.constant 0 : i32
    %c0_i32_0 = arith.constant 0 : i32
    %c0_i32_1 = arith.constant 0 : i32
    return %c0_i32, %c0_i32_0 : i32, i32
  }
  func.func @transform_2(%arg0: i32) -> (i32, i32) {
    %c0_i32 = arith.constant 0 : i32
    %c0_i32_0 = arith.constant 0 : i32
    %c0_i32_1 = arith.constant 0 : i32
    return %c0_i32, %c0_i32_0 : i32, i32
  }
  func.func @transform_3(%arg0: i32) -> (i32, i32) {
    %c0_i32 = arith.constant 0 : i32
    %c0_i32_0 = arith.constant 0 : i32
    return %arg0, %c0_i32 : i32, i32
  }
}

</mosaic_0001>

<bundles_post_ra>
// kernel: tpu_custom_call.1
= control target key start
LH: loop header
LB: loop body
LE: loop exit
PB: predicated region body
PF: predicated region fallthrough
CT: control target
= control target key end

     0   :  { %8 = vsyncpa [#allocation3], 0  ;;  %s9914_s0 = inlined_call_operand.hbm [shape: f32[16,32], index: 0, kind: input, shape index: {}]   ;;  %s9915_s1 = inlined_call_operand.hbm [shape: f32[32,4096], index: 1, kind: input, shape index: {}]   ;;  %s9916_s2 = inlined_call_operand.vmem [shape: f32[1,128], index: 2, kind: input, shape index: {}]   ;;  %s9917_s3 = inlined_call_operand.hbm [shape: f32[16,128], index: 3, kind: output, shape index: {}]  }
   0x1   :  { %10 = vsyncpa [#allocation3 + $0x1], 0 }
   0x2   :  { %11 = vsyncpa [#allocation6], 0 }
   0x3   :  { %12 = vsyncpa [#allocation4], 0 }
   0x4   :  { %14 = vsyncpa [#allocation4 + $0x1], 0  ;;  %s6459_s12 = smov 0   ;;  %s6461_s13 = smov 0  }
   0x5   :  { %s6463_s14 = smov 0   ;;  %s6465_s15 = smov 0  }
   0x6 LB: > { %s6480_s16 = sadd.s32 4294967295, %s6424_s15   ;;  %s6066_s17 = sadd.s32 4294967294, %s6424_s15   ;;  %s6424_s15 = sphi %s6465_s15, %s10673_s15   ;;  %s6420_s14 = sphi %s6463_s14, %s10672_s14   ;;  %s6416_s13 = sphi %s6461_s13, %s10671_s13   ;;  %s6412_s12 = sphi %s6459_s12, %s10670_s12  }
   0x7   : > { %p40_p0 = scmp.ne.s32.totalorder %s6416_s13, %s6412_s12  ;;  %p9918_p1 = scmp.eq.s32.totalorder %s6480_s16, 0 }
   0x8   : > { %p112_p3 = scmp.eq.s32.totalorder %s6066_s17, 1  ;;  %p6067_p5 = scmp.ge.s32.totalorder %s6424_s15, 1 }
   0x9   : > { %p6489_p4 = por %p9918_p1, %p40_p0  ;;  %p119_p7 = scmp.lt.s32.totalorder %s6424_s15, 3 }
   0xa   : > { %p6494_p6 = por %p112_p3, %p40_p0  ;;  %s6426_s21 = smov [#allocation5]  }
   0xb   : > { %s10119_s18 = scalar_select %p6489_p4, 1, 0 }
   0xc   : > { %s10120_s19 = scalar_select %p6494_p6, 1, 0 }
   0xd   : > { %p6499_p8 = pnand %p6067_p5, %p119_p7  ;;  %s131_s22 = sshll.u32 %s6426_s21, 4  ;;  %s6503_s22 = int_to_ptr.vmem [resolvable:$true] %s131_s22 }
   0xe   : > { %s6515_s24 = sadd.s32 1, %s6424_s15   ;;  %s27_s25 = sadd.s32 1, %s6420_s14 }
   0xf   : > { %s10121_s20 = scalar_select %p6499_p8, 1, 0 }
  0x10   : > { %p6233_p9 = pneg %p6499_p8  ;;  %s24_s26 = ssub.s32 %s6424_s15, %s6515_s24 }
  0x11   : > { %s6296_s29 = scalar_lea.hbm %s9915_s1, 16384 }
  0x12   : > { %p6510_p11 = pnand %p6233_p9, %p9918_p1  ;;  %p6297_p12 = scmp.ne.s32.totalorder %s9915_s1, %s6296_s29 }
  0x13   : > { %p6303_p5 = scmp.lt.u32.totalorder %s6296_s29, %s9915_s1 }
  0x14   : > { %p6298_p13 = pneg %p6510_p11 }
  0x16   : > { %p6299_p0 = pnand %p6298_p13, %p6297_p12 }
  0x18   : > { %p6300_p3 = pneg %p6299_p0 }
  0x1a   : > { %p6305_p7 = pnand %p6303_p5, %p6300_p3 }
  0x1c   : > { %6308 = shalt.err (!%p6305_p7)
}
  0x1d   : > { %s6309_s7 = scalar_lea.vmem %s6503_s22, 16384  ;;  %p6317_p2 = scmp.lt.s32.totalorder %s6503_s22, %s6503_s22 }
  0x1e   : > { %p6310_p9 = scmp.ne.s32.totalorder %s6503_s22, %s6309_s7  ;;  %p6318_p6 = scmp.lt.s32.totalorder %s6309_s7, %s6309_s7 }
  0x20   : > { %p6312_p10 = pnand %p6310_p9, %p6298_p13  ;;  %p6319_p4 = por %p6318_p6, %p6317_p2 }
  0x22   : > { %p6313_p1 = pneg %p6312_p10 }
  0x24   : > { %p6320_p8 = pnand %p6319_p4, %p6313_p1 }
  0x26   : > { %6323 = shalt.err (!%p6320_p8)
}
  0x27   : > { %s6427_s8 = smov 4096   ;;  %s6428_s9 = smov 256  }
  0x28   : > { %6236 = dma.hbm_to_vmem [thread:$0]  (!%p6510_p11), %s9915_s1, 16384, %s6503_s22, [#allocation6], %s6427_s8, %s6427_s8, %s6428_s9  }
  0x29   : > { %p25_p2 = scmp.eq.s32.totalorder %s24_s26, 0  ;;  %p34_p1 = scmp.ne.s32.totalorder %s6420_s14, %s6416_s13 }
  0x2a   : > { %p35_p4 = scmp.eq.s32.totalorder %s6424_s15, 0  ;;  %p6246_p6 = scmp.lt.s32.totalorder %s6424_s15, 2 }
  0x2b   : > { %s6546_s17 = scalar_select %p25_p2, %s6420_s14, %s27_s25  }
  0x2c   : > { %p36_p8 = por %p35_p4, %p34_p1  ;;  %p10123_p10 = scmp.eq.s32.totalorder %s6480_s16, 1 }
  0x2d   : > { %s148_s27 = sand.u32 1, %s6420_s14   ;;  %s6071_s28 = sshll.u32 %s6424_s15, 7 }
  0x2e   : > { %p6550_p12 = por %p10123_p10, %p34_p1  ;;  %s6070_s29 = sshll.u32 %s148_s27, 3 }
  0x2f   : > { %s6559_s4 = scalar_lea.hbm %s9914_s0, %s6071_s28  ;;  %s152_s22 = scalar_lea.vmem [#allocation2], %s6070_s29 }
  0x30   : > { %s159_s25 = sshll.u32 %s152_s22, 4  ;;  %p6561_p11 = pnand %p6246_p6, %p36_p8  ;;  %s6565_s25 = int_to_ptr.vmem [resolvable:$true] %s159_s25 }
  0x31   : > { %s149_s5 = scalar_lea.sflag [#allocation3], %s148_s27  ;;  %s6324_s6 = scalar_lea.hbm %s6559_s4, 128 }
  0x32   : > { %p6325_p13 = scmp.ne.s32.totalorder %s6559_s4, %s6324_s6  ;;  %p6326_p0 = pneg %p6561_p11 }
  0x33   : > { %s6329_s9 = scalar_lea.hbm %s9914_s0, 256  ;;  %p6330_p7 = scmp.lt.u32.totalorder %s6559_s4, %s9914_s0 }
  0x34   : > { %p6327_p3 = pnand %p6326_p0, %p6325_p13  ;;  %p6331_p9 = scmp.lt.u32.totalorder %s6329_s9, %s6324_s6 }
  0x35   : > { %p6333_p1 = scmp.lt.u32.totalorder %s6324_s6, %s6559_s4 }
  0x36   : > { %p6328_p5 = pneg %p6327_p3  ;;  %p6332_p2 = por %p6331_p9, %p6330_p7 }
  0x38   : > { %p6334_p4 = por %p6333_p1, %p6332_p2 }
  0x3a   : > { %p6335_p6 = pnand %p6334_p4, %p6328_p5 }
  0x3c   : > { %6338 = shalt.err (!%p6335_p6)
}
  0x3d   : > { %s6339_s27 = scalar_lea.vmem %s6565_s25, 128  ;;  %s6429_s28 = smov [#allocation2]  }
  0x3e   : > { %p6340_p8 = scmp.ne.s32.totalorder %s6565_s25, %s6339_s27  ;;  %s6344_s29 = sshll.u32 %s6429_s28, 4  ;;  %s6345_s29 = int_to_ptr.vmem [resolvable:$false] %s6344_s29 }
  0x3f   : > { %s6346_s23 = scalar_lea.vmem %s6345_s29, 256  ;;  %p6347_p3 = scmp.lt.s32.totalorder %s6565_s25, %s6345_s29 }
  0x40   : > { %p6342_p10 = pnand %p6340_p8, %p6326_p0  ;;  %p6348_p7 = scmp.lt.s32.totalorder %s6346_s23, %s6339_s27 }
  0x42   : > { %p6343_p13 = pneg %p6342_p10  ;;  %p6349_p9 = por %p6348_p7, %p6347_p3 }
  0x44   : > { %p6350_p2 = pnand %p6349_p9, %p6343_p13 }
  0x46   : > { %6353 = shalt.err (!%p6350_p2)
}
  0x47   : > { %6240 = dma.hbm_to_vmem [thread:$0]  (!%p6561_p11), %s6559_s4, 128, %s6565_s25, %s149_s5  }
  0x48   : > { %p10126_p5 = scmp.ne.s32.totalorder %s10121_s20, 0 }
  0x4a   : > { %168 = sbr.rel (%p10126_p5) target bundleno = 1339 (0x53b), region = 32 }
  0x51   : > { %s6595_s30 = sand.u32 1, %s6416_s13   ;;  %p10127_p0 = scmp.ne.s32.totalorder %s10119_s18, 0 }
  0x52   : > { %s6073_s22 = sshll.u32 %s6595_s30, 3  ;;  %s171_s6 = scalar_lea.sflag [#allocation3], %s6595_s30 }
  0x53   : > { %s6601_s7 = scalar_lea.vmem [#allocation2], %s6073_s22 }
  0x54   : > { %6399 = dma.done.wait (%p10127_p0), %s171_s6, 128  }
  0x55   : > { %6401 = vsyncadd (%p10127_p0), %s171_s6, 4294967168  ;;  %p10128_p11 = scmp.eq.s32.totalorder %s6480_s16, 0 }
  0x57   : > { %6403 = dma.done.wait (%p10128_p11), [#allocation6], 16384   ;;  %p10129_p1 = pmov %p10128_p11 }
  0x58   : > { %v6430_v0 = vmov 0.0   ;;  %v203_v1 = vld [vmem:[#allocation5 + $0x8] sm:$0xff]  ;;  %v202_v3 = vld [vmem:[#allocation5] sm:$0xff]  ;;  %v205_v6 = vld [vmem:[#allocation5 + $0x18] sm:$0xff]  ;;  %vm330_vm0 = vcmask 261120   ;;  %s6431_s18 = smov 32  }
  0x59   : > { %6405 = vsyncadd (%p10129_p1), [#allocation6], 4294950912  ;;  %398 = vmatprep.mubr.f32.mxu0 %v6430_v0  ;;  %469 = vmatprep.mubr.f32.mxu1 %v6430_v0  ;;  %v235_v2 = vld [vmem:[#allocation5 + $0x108] sm:$0xff]  ;;  %v234_v5 = vld [vmem:[#allocation5 + $0x100] sm:$0xff]  ;;  %s6432_s20 = smov 96   ;;  %s6433_s4 = smov 64  }
  0x5a   : > { %v6097_v4 = vpack.c.bf16 %v235_v2, %v203_v1  ;;  %v237_v7 = vld [vmem:[#allocation5 + $0x118] sm:$0xff]  ;;  %v6099_v8 = vpack.c.bf16 %v234_v5, %v202_v3  ;;  %v267_v10 = vld [vmem:[#allocation5 + $0x208] sm:$0xff]  ;;  %v204_v12 = vld [vmem:[#allocation5 + $0x10] sm:$0xff]  ;;  %vm5303_vm1 = vcmask 130112   ;;  %vm5310_vm2 = vcmask 195712   ;;  %s6094_s5 = sshll.u32 %s6480_s16, 7 }
  0x5b   : > { %v6105_v9 = vpack.c.bf16 %v237_v7, %v205_v6  ;;  %v299_v11 = vld [vmem:[#allocation5 + $0x308] sm:$0xff]  ;;  %v236_v14 = vld [vmem:[#allocation5 + $0x110] sm:$0xff]  ;;  %v266_v15 = vld [vmem:[#allocation5 + $0x200] sm:$0xff]  ;;  %vm5317_vm3 = vcmask 261312   ;;  %vm5324_vm4 = vcmask 326912   ;;  %vm5331_vm5 = vcmask 392512   ;;  %s9870_s27 = scalar_lea.hbm %s9917_s3, %s6094_s5 }
  0x5c   : > { %6098 = vmatprep.subr.bf16.mxu0 %v6097_v4  ;;  %v6101_v13 = vpack.c.bf16 %v299_v11, %v267_v10  ;;  %v298_v16 = vld [vmem:[#allocation5 + $0x300] sm:$0xff]  ;;  %v6107_v17 = vpack.c.bf16 %v236_v14, %v204_v12  ;;  %v269_v19 = vld [vmem:[#allocation5 + $0x218] sm:$0xff]  ;;  %v268_v22 = vld [vmem:[#allocation5 + $0x210] sm:$0xff]  ;;  %vm5338_vm6 = vcmask 458112   ;;  %vm5345_vm7 = vcmask 523712   ;;  %s200_s8 = scalar_lea.vmem [#allocation7], %s6073_s22 }
  0x5d   : > { %6100 = vmatpush1.bf16.msra.mxu0 %v6099_v8  ;;  %6106 = vmatprep.subr.bf16.mxu1 %v6105_v9  ;;  %v6103_v18 = vpack.c.bf16 %v298_v16, %v266_v15  ;;  %v301_v20 = vld [vmem:[#allocation5 + $0x318] sm:$0xff]  ;;  %v300_v23 = vld [vmem:[#allocation5 + $0x310] sm:$0xff]  ;;  %v207_v24 = vld [vmem:[#allocation5 + $0x28] sm:$0xff]  ;;  %vm5352_vm8 = vcmask 589312   ;;  %vm5359_vm9 = vcmask 654912   ;;  %vm5366_vm10 = vcmask 720512  }
  0x5e   : > { %6102 = vmatprep.subr.bf16.mxu0 %v6101_v13  ;;  %v6109_v21 = vpack.c.bf16 %v301_v20, %v269_v19  ;;  %6108 = vmatpush1.bf16.msra.mxu1 %v6107_v17  ;;  %v6614_v25 = vld [vmem:[%s6601_s7] sm:$0xff]  ;;  %v6111_v26 = vpack.c.bf16 %v300_v23, %v268_v22  ;;  %v239_v27 = vld [vmem:[#allocation5 + $0x128] sm:$0xff]  ;;  %v206_v28 = vld [vmem:[#allocation5 + $0x20] sm:$0xff]  ;;  %vm5373_vm11 = vcmask 786112   ;;  %vm10118_vm12 = vcmask 851712   ;;  %s5986_s9 = sshll.u32 %s200_s8, 4  ;;  %s9872_s9 = int_to_ptr.vmem [resolvable:$true] %s5986_s9 }
  0x5f   : > { %v238_v29 = vld [vmem:[#allocation5 + $0x120] sm:$0xff]  ;;  %v6113_v30 = vpack.c.bf16 %v239_v27, %v207_v24  ;;  %v271_v31 = vld [vmem:[#allocation5 + $0x228] sm:$0xff]  ;;  %v209_v33 = vld [vmem:[#allocation5 + $0x38] sm:$0xff]  ;;  %vm5387_vm13 = vcmask 917312   ;;  %vm5394_vm14 = vcmask 982912   ;;  %vm5401_vm15 = vcmask 1048512  }
  0x60   : > { %6110 = vmatprep.subr.bf16.mxu1 %v6109_v21  ;;  %v303_v32 = vld [vmem:[#allocation5 + $0x328] sm:$0xff]  ;;  %v6115_v34 = vpack.c.bf16 %v238_v29, %v206_v28  ;;  %v241_v35 = vld [vmem:[#allocation5 + $0x138] sm:$0xff]  ;;  %v270_v36 = vld [vmem:[#allocation5 + $0x220] sm:$0xff]  ;;  %s5973_s16 = scalar_lea.sflag [#allocation4], %s6595_s30  ;;  %s6354_s28 = scalar_lea.vmem %s9872_s9, 128 }
  0x61   : > { %6104 = vmatpush1.bf16.msra.mxu0 %v6103_v18  ;;  %v302_v37 = vld [vmem:[#allocation5 + $0x320] sm:$0xff]  ;;  %v6117_v38 = vpack.c.bf16 %v303_v32, %v271_v31  ;;  %v6121_v39 = vpack.c.bf16 %v241_v35, %v209_v33  ;;  %v208_v40 = vld [vmem:[#allocation5 + $0x30] sm:$0xff]  ;;  %v273_v42 = vld [vmem:[#allocation5 + $0x238] sm:$0xff]  ;;  %p6355_p4 = scmp.ne.s32.totalorder %s9872_s9, %s6354_s28  ;;  %s6438_s29 = smov [#allocation7]  }
  0x62   : > { %6114 = vmatprep.subr.bf16.mxu0 %v6113_v30  ;;  %v240_v41 = vld [vmem:[#allocation5 + $0x130] sm:$0xff]  ;;  %6112 = vmatpush1.bf16.msra.mxu1 %v6111_v26  ;;  %v305_v44 = vld [vmem:[#allocation5 + $0x338] sm:$0xff]  ;;  %v211_v48 = vld [vmem:[#allocation5 + $0x48] sm:$0xff]  ;;  %v6119_v50 = vpack.c.bf16 %v302_v37, %v270_v36  ;;  %s6358_s23 = sshll.u32 %s6438_s29, 4  ;;  %s6359_s23 = int_to_ptr.vmem [resolvable:$false] %s6358_s23 }
  0x63   : > { %v6123_v43 = vpack.c.bf16 %v240_v41, %v208_v40  ;;  %v272_v45 = vld [vmem:[#allocation5 + $0x230] sm:$0xff]  ;;  %6122 = vmatprep.subr.bf16.mxu1 %v6121_v39  ;;  %v6125_v46 = vpack.c.bf16 %v305_v44, %v273_v42  ;;  %v243_v49 = vld [vmem:[#allocation5 + $0x148] sm:$0xff]  ;;  %v210_v51 = vld [vmem:[#allocation5 + $0x40] sm:$0xff]  ;;  %p6356_p6 = pnand %p6355_p4, %p6550_p12  ;;  %s6360_s22 = scalar_lea.vmem %s6359_s23, 256 }
  0x64   : > { %6076 = vmatmul.mubr.msk.f32.vlgmr.msra.gmra.mrb[0].mxu0 %vm330_vm0, %v6614_v25  ;;  %v304_v47 = vld [vmem:[#allocation5 + $0x330] sm:$0xff]  ;;  %v6129_v52 = vpack.c.bf16 %v243_v49, %v211_v48  ;;  %v242_v53 = vld [vmem:[#allocation5 + $0x140] sm:$0xff]  ;;  %v213_v54 = vld [vmem:[#allocation5 + $0x58] sm:$0xff]  ;;  %p6361_p10 = scmp.lt.s32.totalorder %s9872_s9, %s6359_s23  ;;  %p6362_p13 = scmp.lt.s32.totalorder %s6360_s22, %s6354_s28 }
  0x65   : > { %6116 = vmatpush1.bf16.msra.mxu0 %v6115_v34  ;;  %540 = vmatprep.mubr.f32.mxu0 %v6430_v0  ;;  %v245_v55 = vld [vmem:[#allocation5 + $0x158] sm:$0xff]  ;;  %v6127_v56 = vpack.c.bf16 %v304_v47, %v272_v45  ;;  %v275_v57 = vld [vmem:[#allocation5 + $0x248] sm:$0xff]  ;;  %v212_v60 = vld [vmem:[#allocation5 + $0x50] sm:$0xff]  ;;  %v6131_v62 = vpack.c.bf16 %v242_v53, %v210_v51  ;;  %p6357_p8 = pneg %p6356_p6 }
  0x66   : > { %6077 = vmatmul.mubr.msk.f32.vlgmr.msra.gmra.mrb[0].mxu1 %vm330_vm0, %v6614_v25  ;;  %6118 = vmatprep.subr.bf16.mxu0 %v6117_v38  ;;  %v307_v58 = vld [vmem:[#allocation5 + $0x348] sm:$0xff]  ;;  %v6137_v59 = vpack.c.bf16 %v245_v55, %v213_v54  ;;  %v244_v61 = vld [vmem:[#allocation5 + $0x150] sm:$0xff]  ;;  %v277_v63 = vld [vmem:[#allocation5 + $0x258] sm:$0xff]  ;;  %p6363_p3 = por %p6362_p13, %p6361_p10 }
  0x67   : > { %6124 = vmatpush1.bf16.msra.mxu1 %v6123_v43  ;;  %611 = vmatprep.mubr.f32.mxu1 %v6430_v0  ;;  %v309_v1 = vld [vmem:[#allocation5 + $0x358] sm:$0xff]  ;;  %v6133_v2 = vpack.c.bf16 %v307_v58, %v275_v57  ;;  %v274_v3 = vld [vmem:[#allocation5 + $0x240] sm:$0xff]  ;;  %v6139_v5 = vpack.c.bf16 %v244_v61, %v212_v60  ;;  %v215_v6 = vld [vmem:[#allocation5 + $0x68] sm:$0xff] }
  0x68   : > { %6126 = vmatprep.subr.bf16.mxu1 %v6125_v46  ;;  %v306_v4 = vld [vmem:[#allocation5 + $0x340] sm:$0xff]  ;;  %v247_v7 = vld [vmem:[#allocation5 + $0x168] sm:$0xff]  ;;  %v6141_v8 = vpack.c.bf16 %v309_v1, %v277_v63  ;;  %v276_v9 = vld [vmem:[#allocation5 + $0x250] sm:$0xff]  ;;  %p6364_p7 = pnand %p6363_p3, %p6357_p8 }
  0x69   : > { %6120 = vmatpush1.bf16.msra.mxu0 %v6119_v50  ;;  %v308_v10 = vld [vmem:[#allocation5 + $0x350] sm:$0xff]  ;;  %v6135_v11 = vpack.c.bf16 %v306_v4, %v274_v3  ;;  %v217_v12 = vld [vmem:[#allocation5 + $0x78] sm:$0xff]  ;;  %v6145_v14 = vpack.c.bf16 %v247_v7, %v215_v6  ;;  %v214_v15 = vld [vmem:[#allocation5 + $0x60] sm:$0xff] }
  0x6a   : > { %6130 = vmatprep.subr.bf16.mxu0 %v6129_v52  ;;  %v249_v13 = vld [vmem:[#allocation5 + $0x178] sm:$0xff]  ;;  %v246_v16 = vld [vmem:[#allocation5 + $0x160] sm:$0xff]  ;;  %v6143_v17 = vpack.c.bf16 %v308_v10, %v276_v9  ;;  %v279_v18 = vld [vmem:[#allocation5 + $0x268] sm:$0xff] }
  0x6b   : > { %6128 = vmatpush1.bf16.msra.mxu1 %v6127_v56  ;;  %v311_v19 = vld [vmem:[#allocation5 + $0x368] sm:$0xff]  ;;  %v6153_v20 = vpack.c.bf16 %v249_v13, %v217_v12  ;;  %v216_v21 = vld [vmem:[#allocation5 + $0x70] sm:$0xff]  ;;  %v6147_v23 = vpack.c.bf16 %v246_v16, %v214_v15  ;;  %v281_v24 = vld [vmem:[#allocation5 + $0x278] sm:$0xff] }
  0x6c   : > { %6078 = vmatmul.mubr.msk.f32.vlgmr.msra.gmra.mrb[2].mxu0 %vm330_vm0, %v6614_v25  ;;  %6138 = vmatprep.subr.bf16.mxu1 %v6137_v59  ;;  %v248_v22 = vld [vmem:[#allocation5 + $0x170] sm:$0xff]  ;;  %v313_v26 = vld [vmem:[#allocation5 + $0x378] sm:$0xff]  ;;  %v6149_v27 = vpack.c.bf16 %v311_v19, %v279_v18  ;;  %v278_v28 = vld [vmem:[#allocation5 + $0x260] sm:$0xff] }
  0x6d   : > { %6132 = vmatpush1.bf16.msra.mxu0 %v6131_v62  ;;  %682 = vmatprep.mubr.f32.mxu0 %v6430_v0  ;;  %v310_v29 = vld [vmem:[#allocation5 + $0x360] sm:$0xff]  ;;  %v6155_v30 = vpack.c.bf16 %v248_v22, %v216_v21  ;;  %v219_v31 = vld [vmem:[#allocation5 + $0x88] sm:$0xff]  ;;  %v6157_v33 = vpack.c.bf16 %v313_v26, %v281_v24  ;;  %v280_v34 = vld [vmem:[#allocation5 + $0x270] sm:$0xff] }
  0x6e   : > { %6079 = vmatmul.mubr.msk.f32.vlgmr.msra.gmra.mrb[2].mxu1 %vm330_vm0, %v6614_v25  ;;  %6134 = vmatprep.subr.bf16.mxu0 %v6133_v2  ;;  %v251_v32 = vld [vmem:[#allocation5 + $0x188] sm:$0xff]  ;;  %v312_v35 = vld [vmem:[#allocation5 + $0x370] sm:$0xff]  ;;  %v6151_v36 = vpack.c.bf16 %v310_v29, %v278_v28  ;;  %v221_v37 = vld [vmem:[#allocation5 + $0x98] sm:$0xff] }
  0x6f   : > { %6140 = vmatpush1.bf16.msra.mxu1 %v6139_v5  ;;  %753 = vmatprep.mubr.f32.mxu1 %v6430_v0  ;;  %v253_v38 = vld [vmem:[#allocation5 + $0x198] sm:$0xff]  ;;  %v6161_v39 = vpack.c.bf16 %v251_v32, %v219_v31  ;;  %v218_v40 = vld [vmem:[#allocation5 + $0x80] sm:$0xff]  ;;  %v6159_v42 = vpack.c.bf16 %v312_v35, %v280_v34  ;;  %v283_v43 = vld [vmem:[#allocation5 + $0x288] sm:$0xff] }
  0x70   : > { %6142 = vmatprep.subr.bf16.mxu1 %v6141_v8  ;;  %v250_v41 = vld [vmem:[#allocation5 + $0x180] sm:$0xff]  ;;  %v315_v44 = vld [vmem:[#allocation5 + $0x388] sm:$0xff]  ;;  %v6169_v45 = vpack.c.bf16 %v253_v38, %v221_v37  ;;  %v220_v46 = vld [vmem:[#allocation5 + $0x90] sm:$0xff] }
  0x71   : > { %6136 = vmatpush1.bf16.msra.mxu0 %v6135_v11  ;;  %v252_v47 = vld [vmem:[#allocation5 + $0x190] sm:$0xff]  ;;  %v6163_v48 = vpack.c.bf16 %v250_v41, %v218_v40  ;;  %v285_v49 = vld [vmem:[#allocation5 + $0x298] sm:$0xff]  ;;  %v6165_v51 = vpack.c.bf16 %v315_v44, %v283_v43  ;;  %v282_v52 = vld [vmem:[#allocation5 + $0x280] sm:$0xff] }
  0x72   : > { %6146 = vmatprep.subr.bf16.mxu0 %v6145_v14  ;;  %v317_v50 = vld [vmem:[#allocation5 + $0x398] sm:$0xff]  ;;  %v314_v53 = vld [vmem:[#allocation5 + $0x380] sm:$0xff]  ;;  %v6171_v54 = vpack.c.bf16 %v252_v47, %v220_v46  ;;  %v223_v55 = vld [vmem:[#allocation5 + $0xa8] sm:$0xff] }
  0x73   : > { %6144 = vmatpush1.bf16.msra.mxu1 %v6143_v17  ;;  %v255_v56 = vld [vmem:[#allocation5 + $0x1a8] sm:$0xff]  ;;  %v6173_v57 = vpack.c.bf16 %v317_v50, %v285_v49  ;;  %v284_v58 = vld [vmem:[#allocation5 + $0x290] sm:$0xff]  ;;  %v6167_v60 = vpack.c.bf16 %v314_v53, %v282_v52  ;;  %v225_v61 = vld [vmem:[#allocation5 + $0xb8] sm:$0xff] }
  0x74   : > { %6080 = vmatmul.mubr.msk.f32.vlgmr.msra.gmra.mrb[4].mxu0 %vm330_vm0, %v6614_v25  ;;  %6154 = vmatprep.subr.bf16.mxu1 %v6153_v20  ;;  %v316_v59 = vld [vmem:[#allocation5 + $0x390] sm:$0xff]  ;;  %v257_v62 = vld [vmem:[#allocation5 + $0x1b8] sm:$0xff]  ;;  %v6177_v63 = vpack.c.bf16 %v255_v56, %v223_v55  ;;  %v222_v1 = vld [vmem:[#allocation5 + $0xa0] sm:$0xff] }
  0x75   : > { %6148 = vmatpush1.bf16.msra.mxu0 %v6147_v23  ;;  %824 = vmatprep.mubr.f32.mxu0 %v6430_v0  ;;  %v254_v2 = vld [vmem:[#allocation5 + $0x1a0] sm:$0xff]  ;;  %v6175_v3 = vpack.c.bf16 %v316_v59, %v284_v58  ;;  %v287_v4 = vld [vmem:[#allocation5 + $0x2a8] sm:$0xff]  ;;  %v6185_v6 = vpack.c.bf16 %v257_v62, %v225_v61  ;;  %v224_v7 = vld [vmem:[#allocation5 + $0xb0] sm:$0xff] }
  0x76   : > { %6081 = vmatmul.mubr.msk.f32.vlgmr.msra.gmra.mrb[4].mxu1 %vm330_vm0, %v6614_v25  ;;  %6150 = vmatprep.subr.bf16.mxu0 %v6149_v27  ;;  %v319_v5 = vld [vmem:[#allocation5 + $0x3a8] sm:$0xff]  ;;  %v256_v8 = vld [vmem:[#allocation5 + $0x1b0] sm:$0xff]  ;;  %v6179_v9 = vpack.c.bf16 %v254_v2, %v222_v1  ;;  %v289_v10 = vld [vmem:[#allocation5 + $0x2b8] sm:$0xff] }
  0x77   : > { %6156 = vmatpush1.bf16.msra.mxu1 %v6155_v30  ;;  %895 = vmatprep.mubr.f32.mxu1 %v6430_v0  ;;  %v321_v11 = vld [vmem:[#allocation5 + $0x3b8] sm:$0xff]  ;;  %v6181_v12 = vpack.c.bf16 %v319_v5, %v287_v4  ;;  %v286_v13 = vld [vmem:[#allocation5 + $0x2a0] sm:$0xff]  ;;  %v6187_v15 = vpack.c.bf16 %v256_v8, %v224_v7  ;;  %v227_v16 = vld [vmem:[#allocation5 + $0xc8] sm:$0xff] }
  0x78   : > { %6158 = vmatprep.subr.bf16.mxu1 %v6157_v33  ;;  %v318_v14 = vld [vmem:[#allocation5 + $0x3a0] sm:$0xff]  ;;  %v259_v17 = vld [vmem:[#allocation5 + $0x1c8] sm:$0xff]  ;;  %v6189_v18 = vpack.c.bf16 %v321_v11, %v289_v10  ;;  %v288_v19 = vld [vmem:[#allocation5 + $0x2b0] sm:$0xff] }
  0x79   : > { %6152 = vmatpush1.bf16.msra.mxu0 %v6151_v36  ;;  %v320_v20 = vld [vmem:[#allocation5 + $0x3b0] sm:$0xff]  ;;  %v6183_v21 = vpack.c.bf16 %v318_v14, %v286_v13  ;;  %v229_v22 = vld [vmem:[#allocation5 + $0xd8] sm:$0xff]  ;;  %v6193_v24 = vpack.c.bf16 %v259_v17, %v227_v16  ;;  %v226_v26 = vld [vmem:[#allocation5 + $0xc0] sm:$0xff] }
  0x7a   : > { %6162 = vmatprep.subr.bf16.mxu0 %v6161_v39  ;;  %v261_v23 = vld [vmem:[#allocation5 + $0x1d8] sm:$0xff]  ;;  %v258_v27 = vld [vmem:[#allocation5 + $0x1c0] sm:$0xff]  ;;  %v6191_v28 = vpack.c.bf16 %v320_v20, %v288_v19  ;;  %v291_v29 = vld [vmem:[#allocation5 + $0x2c8] sm:$0xff] }
  0x7b   : > { %6160 = vmatpush1.bf16.msra.mxu1 %v6159_v42  ;;  %v323_v30 = vld [vmem:[#allocation5 + $0x3c8] sm:$0xff]  ;;  %v6201_v31 = vpack.c.bf16 %v261_v23, %v229_v22  ;;  %v228_v32 = vld [vmem:[#allocation5 + $0xd0] sm:$0xff]  ;;  %v6195_v34 = vpack.c.bf16 %v258_v27, %v226_v26  ;;  %v293_v35 = vld [vmem:[#allocation5 + $0x2d8] sm:$0xff] }
  0x7c   : > { %6082 = vmatmul.mubr.msk.f32.vlgmr.msra.gmra.mrb[6].mxu0 %vm330_vm0, %v6614_v25  ;;  %6170 = vmatprep.subr.bf16.mxu1 %v6169_v45  ;;  %v260_v33 = vld [vmem:[#allocation5 + $0x1d0] sm:$0xff]  ;;  %v325_v36 = vld [vmem:[#allocation5 + $0x3d8] sm:$0xff]  ;;  %v6197_v37 = vpack.c.bf16 %v323_v30, %v291_v29  ;;  %v290_v38 = vld [vmem:[#allocation5 + $0x2c0] sm:$0xff] }
  0x7d   : > { %6164 = vmatpush1.bf16.msra.mxu0 %v6163_v48  ;;  %966 = vmatprep.mubr.f32.mxu0 %v6430_v0  ;;  %v322_v39 = vld [vmem:[#allocation5 + $0x3c0] sm:$0xff]  ;;  %v6203_v40 = vpack.c.bf16 %v260_v33, %v228_v32  ;;  %v231_v41 = vld [vmem:[#allocation5 + $0xe8] sm:$0xff]  ;;  %v6205_v43 = vpack.c.bf16 %v325_v36, %v293_v35  ;;  %v292_v44 = vld [vmem:[#allocation5 + $0x2d0] sm:$0xff] }
  0x7e   : > { %6083 = vmatmul.mubr.msk.f32.vlgmr.msra.gmra.mrb[6].mxu1 %vm330_vm0, %v6614_v25  ;;  %6166 = vmatprep.subr.bf16.mxu0 %v6165_v51  ;;  %v263_v42 = vld [vmem:[#allocation5 + $0x1e8] sm:$0xff]  ;;  %v324_v45 = vld [vmem:[#allocation5 + $0x3d0] sm:$0xff]  ;;  %v6199_v46 = vpack.c.bf16 %v322_v39, %v290_v38  ;;  %v233_v47 = vld [vmem:[#allocation5 + $0xf8] sm:$0xff] }
  0x7f   : > { %6172 = vmatpush1.bf16.msra.mxu1 %v6171_v54  ;;  %1037 = vmatprep.mubr.f32.mxu1 %v6430_v0  ;;  %v265_v48 = vld [vmem:[#allocation5 + $0x1f8] sm:$0xff]  ;;  %v6209_v49 = vpack.c.bf16 %v263_v42, %v231_v41  ;;  %v230_v50 = vld [vmem:[#allocation5 + $0xe0] sm:$0xff]  ;;  %v6207_v52 = vpack.c.bf16 %v324_v45, %v292_v44  ;;  %v295_v53 = vld [vmem:[#allocation5 + $0x2e8] sm:$0xff]  ;;  %v9921_v42 = vlaneseq }
  0x80   : > { %6174 = vmatprep.subr.bf16.mxu1 %v6173_v57  ;;  %v262_v51 = vld [vmem:[#allocation5 + $0x1e0] sm:$0xff]  ;;  %v327_v54 = vld [vmem:[#allocation5 + $0x3e8] sm:$0xff]  ;;  %v6217_v55 = vpack.c.bf16 %v265_v48, %v233_v47  ;;  %v232_v56 = vld [vmem:[#allocation5 + $0xf0] sm:$0xff]  ;;  %v6435_v48 = vmov 1934713408  }
  0x81   : > { %6168 = vmatpush1.bf16.msra.mxu0 %v6167_v60  ;;  %v264_v57 = vld [vmem:[#allocation5 + $0x1f0] sm:$0xff]  ;;  %v6211_v58 = vpack.c.bf16 %v262_v51, %v230_v50  ;;  %v297_v59 = vld [vmem:[#allocation5 + $0x2f8] sm:$0xff]  ;;  %v6213_v61 = vpack.c.bf16 %v327_v54, %v295_v53  ;;  %v294_v62 = vld [vmem:[#allocation5 + $0x2e0] sm:$0xff] }
  0x82   : > { %6178 = vmatprep.subr.bf16.mxu0 %v6177_v63  ;;  %v329_v60 = vld [vmem:[#allocation5 + $0x3f8] sm:$0xff]  ;;  %v326_v63 = vld [vmem:[#allocation5 + $0x3e0] sm:$0xff]  ;;  %v6219_v1 = vpack.c.bf16 %v264_v57, %v232_v56  ;;  %v328_v4 = vld [vmem:[#allocation5 + $0x3f0] sm:$0xff] }
  0x83   : > { %6176 = vmatpush1.bf16.msra.mxu1 %v6175_v3  ;;  %v6221_v2 = vpack.c.bf16 %v329_v60, %v297_v59  ;;  %v296_v3 = vld [vmem:[#allocation5 + $0x2f0] sm:$0xff]  ;;  %v6215_v5 = vpack.c.bf16 %v326_v63, %v294_v62 }
  0x84   : > { %6084 = vmatmul.mubr.msk.f32.vlgmr.msra.gmra.mrb[8].mxu0 %vm330_vm0, %v6614_v25  ;;  %6186 = vmatprep.subr.bf16.mxu1 %v6185_v6  ;;  %v6223_v6 = vpack.c.bf16 %v328_v4, %v296_v3 }
  0x85   : > { %6180 = vmatpush1.bf16.msra.mxu0 %v6179_v9  ;;  %1108 = vmatprep.mubr.f32.mxu0 %v6430_v0 }
  0x86   : > { %6085 = vmatmul.mubr.msk.f32.vlgmr.msra.gmra.mrb[8].mxu1 %vm330_vm0, %v6614_v25  ;;  %6182 = vmatprep.subr.bf16.mxu0 %v6181_v12 }
  0x87   : > { %6188 = vmatpush1.bf16.msra.mxu1 %v6187_v15  ;;  %1179 = vmatprep.mubr.f32.mxu1 %v6430_v0 }
  0x88   : > { %6190 = vmatprep.subr.bf16.mxu1 %v6189_v18 }
  0x89   : > { %6184 = vmatpush1.bf16.msra.mxu0 %v6183_v21 }
  0x8a   : > { %6194 = vmatprep.subr.bf16.mxu0 %v6193_v24 }
  0x8b   : > { %6192 = vmatpush1.bf16.msra.mxu1 %v6191_v28 }
  0x8c   : > { %6086 = vmatmul.mubr.msk.f32.vlgmr.msra.gmra.mrb[10].mxu0 %vm330_vm0, %v6614_v25  ;;  %6202 = vmatprep.subr.bf16.mxu1 %v6201_v31 }
  0x8d   : > { %6196 = vmatpush1.bf16.msra.mxu0 %v6195_v34  ;;  %1250 = vmatprep.mubr.f32.mxu0 %v6430_v0 }
  0x8e   : > { %6087 = vmatmul.mubr.msk.f32.vlgmr.msra.gmra.mrb[10].mxu1 %vm330_vm0, %v6614_v25  ;;  %6198 = vmatprep.subr.bf16.mxu0 %v6197_v37 }
  0x8f   : > { %6204 = vmatpush1.bf16.msra.mxu1 %v6203_v40  ;;  %1321 = vmatprep.mubr.f32.mxu1 %v6430_v0  ;;  %v6434_v40 = vmov 1983009808  }
  0x90   : > { %6206 = vmatprep.subr.bf16.mxu1 %v6205_v43  ;;  %v1793_v41 = vunpack.c.l.s4 %v6434_v40 }
  0x91   : > { %6200 = vmatpush1.bf16.msra.mxu0 %v6199_v46  ;;  %v6851_v46 = vshrl.u32 %v9921_v42, 7 }
  0x92   : > { %6210 = vmatprep.subr.bf16.mxu0 %v6209_v49  ;;  %v1794_v45 = vunpack.c.0.s8 %v1793_v41  ;;  %v1857_v49 = vunpack.c.l.s4 %v6435_v48 }
  0x93   : > { %6208 = vmatpush1.bf16.msra.mxu1 %v6207_v52  ;;  %10145 = vst [vmem:[#allocation26_spill] sm:$0xff] %v6851_v46 }
  0x94   : > { %6088 = vmatmul.mubr.msk.f32.vlgmr.msra.gmra.mrb[12].mxu0 %vm330_vm0, %v6614_v25  ;;  %6218 = vmatprep.subr.bf16.mxu1 %v6217_v55  ;;  %v6859_v52 = vsub.s32 %v1794_v45, %v6851_v46  ;;  %v1858_v55 = vunpack.c.0.s8 %v1857_v49 }
  0x95   : > { %6212 = vmatpush1.bf16.msra.mxu0 %v6211_v58  ;;  %1392 = vmatprep.mubr.f32.mxu0 %v6430_v0 }
  0x96   : > { %6089 = vmatmul.mubr.msk.f32.vlgmr.msra.gmra.mrb[12].mxu1 %vm330_vm0, %v6614_v25  ;;  %6214 = vmatprep.subr.bf16.mxu0 %v6213_v61 }
  0x97   : > { %6220 = vmatpush1.bf16.msra.mxu1 %v6219_v1  ;;  %1463 = vmatprep.mubr.f32.mxu1 %v6430_v0  ;;  %v6877_v1 = vsub.s32 %v1858_v55, %v6851_v46 }
  0x98   : > { %6222 = vmatprep.subr.bf16.mxu1 %v6221_v2 }
  0x99   : > { %6216 = vmatpush1.bf16.msra.mxu0 %v6215_v5 }
  0x9b   : > { %6224 = vmatpush1.bf16.msra.mxu1 %v6223_v6 }
  0x9c   : > { %6090 = vmatmul.mubr.msk.f32.vlgmr.msra.gmra.mrb[14].mxu0 %vm330_vm0, %v6614_v25 }
  0x9e   : > { %6091 = vmatmul.mubr.msk.f32.vlgmr.msra.gmra.mrb[14].mxu1 %vm330_vm0, %v6614_v25 }
 0x137   : > { %v6662_v7 = vpop.f32.mrb[0].mxu0 }
 0x138   : > { %1477 = vrot.lane.b32.xlu1 %v6662_v7, %s6431_s18  ;;  %1471 = vrot.lane.b32.xlu0 %v6662_v7, %s6432_s20  ;;  %v6668_v0 = vpop.f32.mrb[1].mxu0 }
 0x139   : > { %v6670_v8 = vpop.f32.mrb[0].mxu1 }
 0x13a   : > { %v6672_v9 = vpop.f32.mrb[1].mxu1 }
 0x13c   : > { %1494 = vrot.lane.b32.xlu1 %v6670_v8, %s6433_s4  ;;  %1474 = vrot.lane.b32.xlu0 %v6662_v7, %s6433_s4 }
 0x13f   : > { %v6678_v25 = vpop.f32.mrb[2].mxu0 }
 0x140   : > { %1491 = vrot.lane.b32.xlu0 %v6670_v8, %s6432_s20  ;;  %1481 = vrot.lane.b32.xlu1 %v6668_v0, %s6432_s20  ;;  %v6684_v10 = vpop.f32.mrb[3].mxu0 }
 0x141   : > { %v6686_v11 = vpop.f32.mrb[2].mxu1 }
 0x142   : > { %v6688_v12 = vpop.f32.mrb[3].mxu1 }
 0x144   : > { %1497 = vrot.lane.b32.xlu0 %v6670_v8, %s6431_s18  ;;  %1487 = vrot.lane.b32.xlu1 %v6668_v0, %s6431_s18 }
 0x147   : > { %v6694_v13 = vpop.f32.mrb[4].mxu0 }
 0x148   : > { %1484 = vrot.lane.b32.xlu0 %v6668_v0, %s6433_s4  ;;  %1501 = vrot.lane.b32.xlu1 %v6672_v9, %s6432_s20  ;;  %v6700_v14 = vpop.f32.mrb[5].mxu0 }
 0x149   : > { %v6702_v15 = vpop.f32.mrb[4].mxu1 }
 0x14a   : > { %v6704_v16 = vpop.f32.mrb[5].mxu1 }
 0x14c   : > { %1504 = vrot.lane.b32.xlu0 %v6672_v9, %s6433_s4  ;;  %1507 = vrot.lane.b32.xlu1 %v6672_v9, %s6431_s18 }
 0x14f   : > { %v6710_v17 = vpop.f32.mrb[6].mxu0 }
 0x150   : > { %1514 = vrot.lane.b32.xlu1 %v6678_v25, %s6433_s4  ;;  %1511 = vrot.lane.b32.xlu0 %v6678_v25, %s6432_s20  ;;  %v6716_v18 = vpop.f32.mrb[7].mxu0 }
 0x151   : > { %v6718_v19 = vpop.f32.mrb[6].mxu1 }
 0x152   : > { %v6720_v20 = vpop.f32.mrb[7].mxu1 }
 0x154   : > { %1534 = vrot.lane.b32.xlu1 %v6686_v11, %s6433_s4  ;;  %1517 = vrot.lane.b32.xlu0 %v6678_v25, %s6431_s18 }
 0x157   : > { %v6726_v21 = vpop.f32.mrb[8].mxu0 }
 0x158   : > { %1531 = vrot.lane.b32.xlu0 %v6686_v11, %s6432_s20  ;;  %1521 = vrot.lane.b32.xlu1 %v6684_v10, %s6432_s20  ;;  %v6732_v22 = vpop.f32.mrb[9].mxu0 }
 0x159   : > { %10130 = vst [vmem:[#allocation11_spill] sm:$0xff] %v6732_v22  ;;  %v6734_v23 = vpop.f32.mrb[8].mxu1 }
 0x15a   : > { %10131 = vst [vmem:[#allocation12_spill] sm:$0xff] %v6734_v23  ;;  %v6736_v24 = vpop.f32.mrb[9].mxu1 }
 0x15b   : > { %10132 = vst [vmem:[#allocation13_spill] sm:$0xff] %v6736_v24 }
 0x15c   : > { %1537 = vrot.lane.b32.xlu0 %v6686_v11, %s6431_s18  ;;  %1527 = vrot.lane.b32.xlu1 %v6684_v10, %s6431_s18 }
 0x15f   : > { %v6742_v26 = vpop.f32.mrb[10].mxu0 }
 0x160   : > { %10133 = vst [vmem:[#allocation14_spill] sm:$0xff] %v6742_v26  ;;  %1524 = vrot.lane.b32.xlu0 %v6684_v10, %s6433_s4  ;;  %1541 = vrot.lane.b32.xlu1 %v6688_v12, %s6432_s20  ;;  %v6748_v27 = vpop.f32.mrb[11].mxu0 }
 0x161   : > { %10134 = vst [vmem:[#allocation15_spill] sm:$0xff] %v6748_v27  ;;  %v6750_v28 = vpop.f32.mrb[10].mxu1 }
 0x162   : > { %10135 = vst [vmem:[#allocation16_spill] sm:$0xff] %v6750_v28  ;;  %v6752_v29 = vpop.f32.mrb[11].mxu1 }
 0x163   : > { %10136 = vst [vmem:[#allocation17_spill] sm:$0xff] %v6752_v29 }
 0x164   : > { %1544 = vrot.lane.b32.xlu0 %v6688_v12, %s6433_s4  ;;  %1547 = vrot.lane.b32.xlu1 %v6688_v12, %s6431_s18 }
 0x167   : > { %v6758_v30 = vpop.f32.mrb[12].mxu0 }
 0x168   : > { %10137 = vst [vmem:[#allocation18_spill] sm:$0xff] %v6758_v30  ;;  %1554 = vrot.lane.b32.xlu1 %v6694_v13, %s6433_s4  ;;  %1551 = vrot.lane.b32.xlu0 %v6694_v13, %s6432_s20  ;;  %v6764_v31 = vpop.f32.mrb[13].mxu0 }
 0x169   : > { %10138 = vst [vmem:[#allocation19_spill] sm:$0xff] %v6764_v31  ;;  %v6766_v32 = vpop.f32.mrb[12].mxu1 }
 0x16a   : > { %10139 = vst [vmem:[#allocation20_spill] sm:$0xff] %v6766_v32  ;;  %v6768_v33 = vpop.f32.mrb[13].mxu1 }
 0x16b   : > { %10140 = vst [vmem:[#allocation21_spill] sm:$0xff] %v6768_v33 }
 0x16c   : > { %1574 = vrot.lane.b32.xlu1 %v6702_v15, %s6433_s4  ;;  %1557 = vrot.lane.b32.xlu0 %v6694_v13, %s6431_s18 }
 0x16f   : > { %v6774_v34 = vpop.f32.mrb[14].mxu0 }
 0x170   : > { %10141 = vst [vmem:[#allocation22_spill] sm:$0xff] %v6774_v34  ;;  %1571 = vrot.lane.b32.xlu0 %v6702_v15, %s6432_s20  ;;  %1561 = vrot.lane.b32.xlu1 %v6700_v14, %s6432_s20  ;;  %v6780_v35 = vpop.f32.mrb[15].mxu0 }
 0x171   : > { %10142 = vst [vmem:[#allocation23_spill] sm:$0xff] %v6780_v35  ;;  %v6782_v36 = vpop.f32.mrb[14].mxu1 }
 0x172   : > { %10143 = vst [vmem:[#allocation24_spill] sm:$0xff] %v6782_v36  ;;  %v6784_v37 = vpop.f32.mrb[15].mxu1 }
 0x173   : > { %10144 = vst [vmem:[#allocation25_spill] sm:$0xff] %v6784_v37 }
 0x174   : > { %1577 = vrot.lane.b32.xlu0 %v6702_v15, %s6431_s18  ;;  %1567 = vrot.lane.b32.xlu1 %v6700_v14, %s6431_s18 }
 0x178   : > { %1564 = vrot.lane.b32.xlu0 %v6700_v14, %s6433_s4  ;;  %1581 = vrot.lane.b32.xlu1 %v6704_v16, %s6432_s20 }
 0x17c   : > { %1584 = vrot.lane.b32.xlu0 %v6704_v16, %s6433_s4  ;;  %1587 = vrot.lane.b32.xlu1 %v6704_v16, %s6431_s18 }
 0x180   : > { %1594 = vrot.lane.b32.xlu1 %v6710_v17, %s6433_s4  ;;  %1591 = vrot.lane.b32.xlu0 %v6710_v17, %s6432_s20 }
 0x184   : > { %1614 = vrot.lane.b32.xlu1 %v6718_v19, %s6433_s4  ;;  %1597 = vrot.lane.b32.xlu0 %v6710_v17, %s6431_s18 }
 0x188   : > { %1611 = vrot.lane.b32.xlu0 %v6718_v19, %s6432_s20  ;;  %1601 = vrot.lane.b32.xlu1 %v6716_v18, %s6432_s20 }
 0x18c   : > { %1617 = vrot.lane.b32.xlu0 %v6718_v19, %s6431_s18  ;;  %1607 = vrot.lane.b32.xlu1 %v6716_v18, %s6431_s18 }
 0x190   : > { %1604 = vrot.lane.b32.xlu0 %v6716_v18, %s6433_s4  ;;  %1621 = vrot.lane.b32.xlu1 %v6720_v20, %s6432_s20 }
 0x194   : > { %1624 = vrot.lane.b32.xlu0 %v6720_v20, %s6433_s4  ;;  %1627 = vrot.lane.b32.xlu1 %v6720_v20, %s6431_s18 }
 0x198   : > { %1634 = vrot.lane.b32.xlu1 %v6726_v21, %s6433_s4  ;;  %1631 = vrot.lane.b32.xlu0 %v6726_v21, %s6432_s20 }
 0x19c   : > { %1654 = vrot.lane.b32.xlu1 %v6734_v23, %s6433_s4  ;;  %1637 = vrot.lane.b32.xlu0 %v6726_v21, %s6431_s18 }
 0x1a0   : > { %1651 = vrot.lane.b32.xlu0 %v6734_v23, %s6432_s20  ;;  %1641 = vrot.lane.b32.xlu1 %v6732_v22, %s6432_s20 }
 0x1a4   : > { %1657 = vrot.lane.b32.xlu0 %v6734_v23, %s6431_s18  ;;  %1647 = vrot.lane.b32.xlu1 %v6732_v22, %s6431_s18 }
 0x1a8   : > { %1644 = vrot.lane.b32.xlu0 %v6732_v22, %s6433_s4  ;;  %1661 = vrot.lane.b32.xlu1 %v6736_v24, %s6432_s20 }
 0x1aa   : > { %v6842_v38 = vpop.permute.xlu1 %1477  ;;  %v6844_v39 = vpop.permute.xlu0 %1471 }
 0x1ab   : > { %v1806_v53 = vcombine.low %v6844_v39, %v6842_v38  ;;  %v1807_v5 = vcombine.high %v6844_v39, %v6842_v38 }
 0x1ac   : > { %1664 = vrot.lane.b32.xlu0 %v6736_v24, %s6433_s4  ;;  %1667 = vrot.lane.b32.xlu1 %v6736_v24, %s6431_s18 }
 0x1ad   : > { %v1814_v58 = vrot.slane %v1806_v53, %v6859_v52 }
 0x1ae   : > { %v1495_v43 = vpop.permute.xlu1 %1494  ;;  %v1475_v44 = vpop.permute.xlu0 %1474 }
 0x1af   : > { %v1790_v47 = vcombine.low %v6662_v7, %v1475_v44  ;;  %v1926_v59 = vcombine.low %v6670_v8, %v1495_v43  ;;  %v1927_v61 = vcombine.high %v6670_v8, %v1495_v43  ;;  %v1791_v62 = vcombine.high %v6662_v7, %v1475_v44 }
 0x1b0   : > { %1674 = vrot.lane.b32.xlu1 %v6742_v26, %s6433_s4  ;;  %1671 = vrot.lane.b32.xlu0 %v6742_v26, %s6432_s20 }
 0x1b1   : > { %v1798_v54 = vrot.slane %v1790_v47, %v6859_v52  ;;  %v1934_v6 = vrot.slane %v1926_v59, %v6859_v52  ;;  %v6889_v7 = vrot.slane %v1927_v61, %v6859_v52  ;;  %v6892_v8 = vrot.slane %v1791_v62, %v6859_v52 }
 0x1b2   : > { %v1492_v50 = vpop.permute.xlu0 %1491  ;;  %v1482_v51 = vpop.permute.xlu1 %1481 }
 0x1b3   : > { %v1854_v63 = vcombine.low %v1798_v54, %v1814_v58  ;;  %v1855_v43 = vcombine.high %v1798_v54, %v1814_v58 }
 0x1b4   : > { %1694 = vrot.lane.b32.xlu1 %v6750_v28, %s6433_s4  ;;  %1677 = vrot.lane.b32.xlu0 %v6742_v26, %s6431_s18 }
 0x1b5   : > { %v6895_v38 = vrot.slane %v1854_v63, %v6877_v1 }
 0x1b6   : > { %v1498_v56 = vpop.permute.xlu0 %1497  ;;  %v1488_v57 = vpop.permute.xlu1 %1487 }
 0x1b7   : > { %v1942_v60 = vcombine.low %v1492_v50, %v1498_v56  ;;  %v1838_v2 = vcombine.low %v1482_v51, %v1488_v57  ;;  %v1943_v39 = vcombine.high %v1492_v50, %v1498_v56  ;;  %v1839_v54 = vcombine.high %v1482_v51, %v1488_v57 }
 0x1b8   : > { %1691 = vrot.lane.b32.xlu0 %v6750_v28, %s6432_s20  ;;  %1681 = vrot.lane.b32.xlu1 %v6748_v27, %s6432_s20 }
 0x1b9   : > { %v1950_v40 = vrot.slane %v1942_v60, %v6859_v52  ;;  %v1846_v44 = vrot.slane %v1838_v2, %v6859_v52 }
 0x1ba   : > { %v1485_v3 = vpop.permute.xlu0 %1484  ;;  %v1502_v4 = vpop.permute.xlu1 %1501 }
 0x1bb   : > { %v1822_v41 = vcombine.low %v6668_v0, %v1485_v3  ;;  %v1823_v45 = vcombine.high %v6668_v0, %v1485_v3  ;;  %v1990_v61 = vcombine.low %v1934_v6, %v1950_v40 }
 0x1bc   : > { %1697 = vrot.lane.b32.xlu0 %v6750_v28, %s6431_s18  ;;  %1687 = vrot.lane.b32.xlu1 %v6748_v27, %s6431_s18 }
 0x1bd   : > { %v1830_v47 = vrot.slane %v1822_v41, %v6859_v52  ;;  %v6915_v51 = vrot.slane %v1823_v45, %v6859_v52  ;;  %v6926_v41 = vrot.slane %v1943_v39, %v6859_v52 }
 0x1be   : > { %v1505_v48 = vpop.permute.xlu0 %1504  ;;  %v1508_v49 = vpop.permute.xlu1 %1507 }
 0x1bf   : > { %v1958_v53 = vcombine.low %v6672_v9, %v1505_v48  ;;  %v1959_v55 = vcombine.high %v6672_v9, %v1505_v48  ;;  %v1974_v59 = vcombine.low %v1502_v4, %v1508_v49  ;;  %v1975_v60 = vcombine.high %v1502_v4, %v1508_v49 }
 0x1c0   : > { %v1886_v58 = vcombine.low %v1830_v47, %v1846_v44  ;;  %v1887_v62 = vcombine.high %v1830_v47, %v1846_v44  ;;  %1684 = vrot.lane.b32.xlu0 %v6748_v27, %s6433_s4  ;;  %1701 = vrot.lane.b32.xlu1 %v6752_v29, %s6432_s20  ;;  %v1991_v9 = vcombine.high %v1934_v6, %v1950_v40 }
 0x1c1   : > { %v1966_v50 = vrot.slane %v1958_v53, %v6859_v52  ;;  %v6906_v0 = vrot.slane %v1959_v55, %v6859_v52  ;;  %v1982_v56 = vrot.slane %v1974_v59, %v6859_v52  ;;  %v6910_v63 = vrot.slane %v1975_v60, %v6859_v52 }
 0x1c2   : > { %v6917_v57 = vpop.permute.xlu1 %1514  ;;  %v1512_v2 = vpop.permute.xlu0 %1511  ;;  %v6920_v3 = vrot.slane %v1886_v58, %v6877_v1  ;;  %v6923_v4 = vrot.slane %v1887_v62, %v6877_v1  ;;  %v6929_v48 = vrot.slane %v1855_v43, %v6877_v1  ;;  %v6932_v6 = vrot.slane %v1839_v54, %v6859_v52 }
 0x1c3   : > { %v2022_v44 = vcombine.low %v1966_v50, %v1982_v56  ;;  %v2023_v47 = vcombine.high %v1966_v50, %v1982_v56  ;;  %v2038_v40 = vcombine.low %v6906_v0, %v6910_v63  ;;  %v2063_v49 = vcombine.high %v6678_v25, %v6917_v57 }
 0x1c4   : > { %1704 = vrot.lane.b32.xlu0 %v6752_v29, %s6433_s4  ;;  %1707 = vrot.lane.b32.xlu1 %v6752_v29, %s6431_s18  ;;  %v6955_v59 = vrot.slane %v1807_v5, %v6859_v52  ;;  %v1902_v60 = vcombine.low %v6915_v51, %v6932_v6  ;;  %v6962_v62 = vrot.slane %v1990_v61, %v6877_v1 }
 0x1c5   : > { %v6947_v43 = vrot.slane %v2022_v44, %v6877_v1  ;;  %v6950_v53 = vrot.slane %v2023_v47, %v6877_v1  ;;  %v6965_v50 = vrot.slane %v1991_v9, %v6877_v1  ;;  %v2006_v56 = vcombine.low %v6889_v7, %v6926_v41 }
 0x1c6   : > { %v6959_v54 = vpop.permute.xlu1 %1534  ;;  %v1518_v58 = vpop.permute.xlu0 %1517  ;;  %v1870_v5 = vcombine.low %v6892_v8, %v6955_v59  ;;  %v6980_v42 = vrot.slane %v2063_v49, %v6859_v52  ;;  %v6988_v39 = vrot.slane %v2038_v40, %v6877_v1  ;;  %v6991_v29 = vrot.slane %v1902_v60, %v6877_v1 }
 0x1c7   : > { %v2079_v44 = vcombine.high %v1512_v2, %v1518_v58  ;;  %v6996_v49 = vrot.slane %v2006_v56, %v6877_v1  ;;  %v2078_v60 = vcombine.low %v1512_v2, %v1518_v58  ;;  %v2062_v58 = vcombine.low %v6678_v25, %v6917_v57 }
 0x1c8   : > { %1711 = vrot.lane.b32.xlu0 %v6758_v30, %s6432_s20  ;;  %10146 = vst [vmem:[#allocation27_spill] sm:$0xff] %v6980_v42  ;;  %1714 = vrot.lane.b32.xlu1 %v6758_v30, %s6433_s4  ;;  %10148 = vst [vmem:[#allocation29_spill] sm:$0xff] %v6988_v39  ;;  %v7005_v61 = vrot.slane %v1870_v5, %v6877_v1 }
 0x1c9   : > { %v6983_v55 = vrot.slane %v2079_v44, %v6859_v52  ;;  %10149 = vst [vmem:[#allocation30_spill] sm:$0xff] %v6991_v29  ;;  %10150 = vst [vmem:[#allocation31_spill] sm:$0xff] %v6996_v49  ;;  %v2199_v44 = vcombine.high %v6686_v11, %v6959_v54  ;;  %v7027_v27 = vrot.slane %v2078_v60, %v6859_v52  ;;  %v6436_v49 = vmov 1966171168  }
 0x1ca   : > { %v1532_v45 = vpop.permute.xlu0 %1531  ;;  %v1522_v47 = vpop.permute.xlu1 %1521  ;;  %10151 = vst [vmem:[#allocation32_spill] sm:$0xff] %v7005_v61  ;;  %v2070_v29 = vrot.slane %v2062_v58, %v6859_v52  ;;  %v2198_v60 = vcombine.low %v6686_v11, %v6959_v54  ;;  %v3968_v23 = vunpack.c.l.s4 %v6436_v49 }
 0x1cb   : > { %10147 = vst [vmem:[#allocation28_spill] sm:$0xff] %v6983_v55  ;;  %v7024_v9 = vrot.slane %v2199_v44, %v6859_v52 }
 0x1cc   : > { %1717 = vrot.lane.b32.xlu0 %v6758_v30, %s6431_s18  ;;  %1734 = vrot.lane.b32.xlu1 %v6766_v32, %s6433_s4  ;;  %v2206_v24 = vrot.slane %v2198_v60, %v6859_v52 }
 0x1cd   : > { %10152 = vst [vmem:[#allocation33_spill] sm:$0xff] %v7024_v9 }
 0x1ce   : > { %v1538_v30 = vpop.permute.xlu0 %1537  ;;  %v1528_v28 = vpop.permute.xlu1 %1527 }
 0x1cf   : > { %v2215_v5 = vcombine.high %v1532_v45, %v1538_v30  ;;  %v2214_v56 = vcombine.low %v1532_v45, %v1538_v30  ;;  %v2110_v2 = vcombine.low %v1522_v47, %v1528_v28  ;;  %v2111_v40 = vcombine.high %v1522_v47, %v1528_v28 }
 0x1d0   : > { %1731 = vrot.lane.b32.xlu0 %v6766_v32, %s6432_s20  ;;  %1721 = vrot.lane.b32.xlu1 %v6764_v31, %s6432_s20 }
 0x1d1   : > { %v7030_v26 = vrot.slane %v2215_v5, %v6859_v52  ;;  %v2126_v5 = vcombine.low %v2070_v29, %v7027_v27  ;;  %v2222_v28 = vrot.slane %v2214_v56, %v6859_v52  ;;  %v2118_v47 = vrot.slane %v2110_v2, %v6859_v52 }
 0x1d2   : > { %v1525_v25 = vpop.permute.xlu0 %1524  ;;  %v1542_v57 = vpop.permute.xlu1 %1541  ;;  %v7049_v58 = vrot.slane %v2111_v40, %v6859_v52 }
 0x1d3   : > { %10153 = vst [vmem:[#allocation34_spill] sm:$0xff] %v7030_v26  ;;  %v2094_v30 = vcombine.low %v6684_v10, %v1525_v25  ;;  %v2095_v45 = vcombine.high %v6684_v10, %v1525_v25  ;;  %v7075_v40 = vrot.slane %v2126_v5, %v6877_v1 }
 0x1d4   : > { %1737 = vrot.lane.b32.xlu0 %v6766_v32, %s6431_s18  ;;  %1727 = vrot.lane.b32.xlu1 %v6764_v31, %s6431_s18  ;;  %10154 = vst [vmem:[#allocation35_spill] sm:$0xff] %v7049_v58 }
 0x1d5   : > { %v2102_v11 = vrot.slane %v2094_v30, %v6859_v52  ;;  %v7053_v54 = vrot.slane %v2095_v45, %v6859_v52 }
 0x1d6   : > { %v1545_v10 = vpop.permute.xlu0 %1544  ;;  %v1548_v25 = vpop.permute.xlu1 %1547 }
 0x1d7   : > { %10155 = vst [vmem:[#allocation36_spill] sm:$0xff] %v7053_v54  ;;  %v2230_v44 = vcombine.low %v6688_v12, %v1545_v10  ;;  %v2231_v32 = vcombine.high %v6688_v12, %v1545_v10  ;;  %v2246_v56 = vcombine.low %v1542_v57, %v1548_v25  ;;  %v2247_v61 = vcombine.high %v1542_v57, %v1548_v25 }
 0x1d8   : > { %v2158_v22 = vcombine.low %v2102_v11, %v2118_v47  ;;  %1724 = vrot.lane.b32.xlu0 %v6764_v31, %s6433_s4  ;;  %1741 = vrot.lane.b32.xlu1 %v6768_v33, %s6432_s20  ;;  %v2262_v57 = vcombine.low %v2206_v24, %v2222_v28  ;;  %v2159_v60 = vcombine.high %v2102_v11, %v2118_v47 }
 0x1d9   : > { %v2238_v2 = vrot.slane %v2230_v44, %v6859_v52  ;;  %v7064_v30 = vrot.slane %v2231_v32, %v6859_v52  ;;  %v2254_v45 = vrot.slane %v2246_v56, %v6859_v52  ;;  %v7068_v12 = vrot.slane %v2247_v61, %v6859_v52 }
 0x1da   : > { %v7072_v10 = vpop.permute.xlu1 %1554  ;;  %v1552_v25 = vpop.permute.xlu0 %1551  ;;  %v7078_v44 = vrot.slane %v2158_v22, %v6877_v1  ;;  %v2127_v61 = vcombine.high %v2070_v29, %v7027_v27  ;;  %v7099_v29 = vrot.slane %v2262_v57, %v6877_v1  ;;  %v7102_v47 = vrot.slane %v2159_v60, %v6877_v1 }
 0x1db   : > { %10156 = vst [vmem:[#allocation37_spill] sm:$0xff] %v7064_v30  ;;  %10157 = vst [vmem:[#allocation38_spill] sm:$0xff] %v7068_v12  ;;  %v2294_v32 = vcombine.low %v2238_v2, %v2254_v45  ;;  %v2335_v11 = vcombine.high %v6694_v13, %v7072_v10  ;;  %v2263_v31 = vcombine.high %v2206_v24, %v2222_v28 }
 0x1dc   : > { %1744 = vrot.lane.b32.xlu0 %v6768_v33, %s6433_s4  ;;  %1747 = vrot.lane.b32.xlu1 %v6768_v33, %s6431_s18  ;;  %10158 = vst [vmem:[#allocation39_spill] sm:$0xff] %v7102_v47  ;;  %v2295_v33 = vcombine.high %v2238_v2, %v2254_v45  ;;  %v7111_v57 = vrot.slane %v2127_v61, %v6877_v1 }
 0x1dd   : > { %v7092_v22 = vrot.slane %v2294_v32, %v6877_v1  ;;  %v2174_v60 = vcombine.low %v7053_v54, %v7049_v58  ;;  %v7116_v24 = vrot.slane %v2335_v11, %v6859_v52  ;;  %v2142_v28 = vcombine.low %v6980_v42, %v6983_v55 }
 0x1de   : > { %v7096_v56 = vpop.permute.xlu1 %1574  ;;  %v1558_v27 = vpop.permute.xlu0 %1557  ;;  %v3969_v32 = vunpack.c.0.s8 %v3968_v23  ;;  %v2310_v11 = vcombine.low %v7064_v30, %v7068_v12  ;;  %v7137_v58 = vrot.slane %v2295_v33, %v6877_v1  ;;  %v2334_v23 = vcombine.low %v6694_v13, %v7072_v10 }
 0x1df   : > { %v2351_v39 = vcombine.high %v1552_v25, %v1558_v27  ;;  %10159 = vst [vmem:[#allocation40_spill] sm:$0xff] %v7116_v24  ;;  %v2471_v54 = vcombine.high %v6702_v15, %v7096_v56  ;;  %v2350_v61 = vcombine.low %v1552_v25, %v1558_v27  ;;  %v7146_v5 = vrot.slane %v2174_v60, %v6877_v1 }
 0x1e0   : > { %1751 = vrot.lane.b32.xlu0 %v6774_v34, %s6432_s20  ;;  %1754 = vrot.lane.b32.xlu1 %v6774_v34, %s6433_s4  ;;  %10162 = vst [vmem:[#allocation43_spill] sm:$0xff] %v7137_v58  ;;  %v7155_v27 = vrot.slane %v2142_v28, %v6877_v1  ;;  %v7160_v60 = vsub.s32 %v3969_v32, %v6851_v46 }
 0x1e1   : > { %v7119_v49 = vrot.slane %v2351_v39, %v6859_v52  ;;  %v7134_v39 = vrot.slane %v2263_v31, %v6877_v1  ;;  %10163 = vst [vmem:[#allocation44_spill] sm:$0xff] %v7146_v5  ;;  %v2278_v31 = vcombine.low %v7024_v9, %v7030_v26  ;;  %v7167_v26 = vrot.slane %v2310_v11, %v6877_v1 }
 0x1e2   : > { %v1572_v2 = vpop.permute.xlu0 %1571  ;;  %v1562_v45 = vpop.permute.xlu1 %1561  ;;  %10164 = vst [vmem:[#allocation45_spill] sm:$0xff] %v7155_v27  ;;  %v7170_v28 = vrot.slane %v2471_v54, %v6859_v52  ;;  %v7173_v25 = vrot.slane %v2350_v61, %v6859_v52  ;;  %v7184_v54 = vrot.slane %v2334_v23, %v6859_v52  ;;  %v7251_v27 = vsub.s32 0, %v6851_v46 }
 0x1e3   : > { %10160 = vst [vmem:[#allocation41_spill] sm:$0xff] %v7119_v49  ;;  %10161 = vst [vmem:[#allocation42_spill] sm:$0xff] %v7134_v39  ;;  %v7181_v11 = vrot.slane %v2278_v31, %v6877_v1 }
 0x1e4   : > { %1757 = vrot.lane.b32.xlu0 %v6774_v34, %s6431_s18  ;;  %1774 = vrot.lane.b32.xlu1 %v6782_v36, %s6433_s4  ;;  %10165 = vst [vmem:[#allocation46_spill] sm:$0xff] %v7167_v26  ;;  %10166 = vst [vmem:[#allocation47_spill] sm:$0xff] %v7170_v28  ;;  %v2398_v23 = vcombine.low %v7184_v54, %v7173_v25 }
 0x1e5   : > { %10168 = vst [vmem:[#allocation49_spill] sm:$0xff] %v7181_v11  ;;  %10174 = vst [vmem:[#allocation55_spill] sm:$0xff] %v7251_v27 }
 0x1e6   : > { %v1578_v12 = vpop.permute.xlu0 %1577  ;;  %v1568_v30 = vpop.permute.xlu1 %1567 }
 0x1e7   : > { %v2487_v55 = vcombine.high %v1572_v2, %v1578_v12  ;;  %v2486_v13 = vcombine.low %v1572_v2, %v1578_v12  ;;  %v2382_v32 = vcombine.low %v1562_v45, %v1568_v30  ;;  %v2383_v9 = vcombine.high %v1562_v45, %v1568_v30  ;;  %v6295_v12 = vld [vmem:[%s6601_s7] sm:$0xff] }
 0x1e8   : > { %1771 = vrot.lane.b32.xlu0 %v6782_v36, %s6432_s20  ;;  %1761 = vrot.lane.b32.xlu1 %v6780_v35, %s6432_s20  ;;  %v2470_v2 = vcombine.low %v6702_v15, %v7096_v56 }
 0x1e9   : > { %v7176_v10 = vrot.slane %v2487_v55, %v6859_v52  ;;  %v3973_v55 = vrot.slane %v6295_v12, %v7160_v60  ;;  %v7201_v31 = vrot.slane %v2486_v13, %v6859_v52  ;;  %v7211_v56 = vrot.slane %v2383_v9, %v6859_v52 }
 0x1ea   : > { %v1565_v42 = vpop.permute.xlu0 %1564  ;;  %v1582_v33 = vpop.permute.xlu1 %1581 }
 0x1eb   : > { %10167 = vst [vmem:[#allocation48_spill] sm:$0xff] %v7176_v10  ;;  %v2366_v34 = vcombine.low %v6700_v14, %v1565_v42  ;;  %v2367_v30 = vcombine.high %v6700_v14, %v1565_v42  ;;  %v2390_v42 = vrot.slane %v2382_v32, %v6859_v52  ;;  %10169 = vst [vmem:[#allocation50_spill] sm:$0xff] %v7211_v56 }
 0x1ec   : > { %1777 = vrot.lane.b32.xlu0 %v6782_v36, %s6431_s18  ;;  %1767 = vrot.lane.b32.xlu1 %v6780_v35, %s6431_s18  ;;  %v2478_v14 = vrot.slane %v2470_v2, %v6859_v52 }
 0x1ed   : > { %v2374_v61 = vrot.slane %v2366_v34, %v6859_v52  ;;  %v7215_v45 = vrot.slane %v2367_v30, %v6859_v52  ;;  %v3966_v34 = vcombine.high %v6295_v12, %v6295_v12  ;;  %v3981_v12 = vcombine.high %v3973_v55, %v3973_v55 }
 0x1ee   : > { %v1585_v13 = vpop.permute.xlu0 %1584  ;;  %v1588_v36 = vpop.permute.xlu1 %1587 }
 0x1ef   : > { %10170 = vst [vmem:[#allocation51_spill] sm:$0xff] %v7215_v45  ;;  %v2502_v58 = vcombine.low %v6704_v16, %v1585_v13  ;;  %v2503_v39 = vcombine.high %v6704_v16, %v1585_v13  ;;  %v2518_v15 = vcombine.low %v1582_v33, %v1588_v36  ;;  %v2519_v5 = vcombine.high %v1582_v33, %v1588_v36 }
 0x1f0   : > { %v2430_v26 = vcombine.low %v2374_v61, %v2390_v42  ;;  %1764 = vrot.lane.b32.xlu0 %v6780_v35, %s6433_s4  ;;  %1781 = vrot.lane.b32.xlu1 %v6784_v37, %s6432_s20  ;;  %v2534_v36 = vcombine.low %v2478_v14, %v7201_v31  ;;  %v7246_v13 = vrot.slane %v2398_v23, %v6877_v1 }
 0x1f1   : > { %v2510_v32 = vrot.slane %v2502_v58, %v6859_v52  ;;  %v7226_v30 = vrot.slane %v2503_v39, %v6859_v52  ;;  %v2526_v11 = vrot.slane %v2518_v15, %v6859_v52  ;;  %v7230_v16 = vrot.slane %v2519_v5, %v6859_v52 }
 0x1f2   : > { %v7235_v33 = vpop.permute.xlu1 %1594  ;;  %v7237_v2 = vpop.permute.xlu0 %1591  ;;  %v7240_v58 = vrot.slane %v2430_v26, %v6877_v1  ;;  %v3989_v5 = vrot.slane %v3973_v55, %v7160_v60  ;;  %v2431_v9 = vcombine.high %v2374_v61, %v2390_v42  ;;  %v3980_v26 = vrot.slane %v3966_v34, %v7160_v60 }
 0x1f3   : > { %10171 = vst [vmem:[#allocation52_spill] sm:$0xff] %v7226_v30  ;;  %10172 = vst [vmem:[#allocation53_spill] sm:$0xff] %v7230_v16  ;;  %v2566_v39 = vcombine.low %v2510_v32, %v2526_v11  ;;  %v2567_v35 = vcombine.high %v2510_v32, %v2526_v11  ;;  %v2607_v47 = vcombine.high %v6710_v17, %v7235_v33 }
 0x1f4   : > { %10173 = vst [vmem:[#allocation54_spill] sm:$0xff] %v7240_v58  ;;  %1784 = vrot.lane.b32.xlu0 %v6784_v37, %s6433_s4  ;;  %1787 = vrot.lane.b32.xlu1 %v6784_v37, %s6431_s18  ;;  %v2399_v23 = vcombine.high %v7184_v54, %v7173_v25  ;;  %v2535_v42 = vcombine.high %v2478_v14, %v7201_v31 }
 0x1f5   : > { %v7261_v61 = vrot.slane %v2566_v39, %v6877_v1  ;;  %v7271_v15 = vrot.slane %v2534_v36, %v6877_v1  ;;  %v4003_v55 = vrot.slane %v3981_v12, %v7160_v60  ;;  %v4011_v39 = vcombine.high %v3989_v5, %v3989_v5 }
 0x1f6   : > { %v7268_v34 = vpop.permute.xlu1 %1614  ;;  %v1598_v32 = vpop.permute.xlu0 %1597  ;;  %v3996_v37 = vrot.slane %v3980_v26, %v7160_v60  ;;  %v7281_v54 = vrot.slane %v2431_v9, %v6877_v1  ;;  %v7284_v31 = vrot.slane %v2567_v35, %v6877_v1  ;;  %v7287_v14 = vrot.slane %v2607_v47, %v6859_v52 }
 0x1f7   : > { %10175 = vst [vmem:[#allocation56_spill] sm:$0xff] %v7261_v61  ;;  %10176 = vst [vmem:[#allocation57_spill] sm:$0xff] %v7271_v15  ;;  %v2623_v46 = vcombine.high %v7237_v2, %v1598_v32  ;;  %v7293_v12 = vrot.slane %v3989_v5, %v7251_v27  ;;  %v3982_v58 = vcombine.high %v3980_v26, %v3980_v26 }
 0x1f8   : > { %10177 = vst [vmem:[#allocation58_spill] sm:$0xff] %v7284_v31  ;;  %10178 = vst [vmem:[#allocation59_spill] sm:$0xff] %v7287_v14  ;;  %v2446_v11 = vcombine.low %v7215_v45, %v7211_v56  ;;  %v2582_v9 = vcombine.low %v7226_v30, %v7230_v16  ;;  %v7300_v35 = vrot.slane %v2399_v23, %v6877_v1 }
 0x1f9   : > { %v7290_v36 = vrot.slane %v2623_v46, %v6859_v52  ;;  %v7303_v47 = vrot.slane %v2535_v42, %v6877_v1  ;;  %v7308_v5 = vrot.slane %v4003_v55, %v7251_v27  ;;  %v4013_v26 = vcombine.high %v4003_v55, %v4003_v55 }
 0x1fa   : > { %v1612_v25 = vpop.permute.xlu0 %1611  ;;  %v1602_v61 = vpop.permute.xlu1 %1601  ;;  %v4012_v15 = vcombine.high %v3996_v37, %v3996_v37  ;;  %v2414_v56 = vcombine.low %v7116_v24, %v7119_v49  ;;  %v2550_v16 = vcombine.low %v7170_v28, %v7176_v10  ;;  %v2743_v46 = vcombine.high %v6718_v19, %v7268_v34 }
 0x1fb   : > { %10179 = vst [vmem:[#allocation60_spill] sm:$0xff] %v7290_v36  ;;  %v2622_v30 = vcombine.low %v7237_v2, %v1598_v32  ;;  %v7326_v10 = vrot.slane %v4011_v39, %v7251_v27  ;;  %v7329_v23 = vrot.slane %v3982_v58, %v7160_v60  ;;  %v7332_v42 = vrot.slane %v2446_v11, %v6877_v1 }
 0x1fc   : > { %v7335_v28 = vrot.slane %v2582_v9, %v6877_v1  ;;  %v2606_v2 = vcombine.low %v6710_v17, %v7235_v33  ;;  %v7340_v45 = vrot.slane %v4013_v26, %v7251_v27  ;;  %v7343_v55 = vrot.slane %v3996_v37, %v7251_v27 }
 0x1fd   : > { %10180 = vst [vmem:[#allocation61_spill] sm:$0xff] %v7329_v23  ;;  %10181 = vst [vmem:[#allocation62_spill] sm:$0xff] %v7332_v42  ;;  %v7347_v60 = vrot.slane %v7329_v23, %v7251_v27  ;;  %v7350_v58 = vrot.slane %v4012_v15, %v7251_v27  ;;  %v7353_v11 = vrot.slane %v2414_v56, %v6877_v1 }
 0x1fe   : > { %v1618_v49 = vpop.permute.xlu0 %1617  ;;  %v1608_v24 = vpop.permute.xlu1 %1607  ;;  %10182 = vst [vmem:[#allocation63_spill] sm:$0xff] %v7335_v28  ;;  %v7356_v39 = vrot.slane %v2550_v16, %v6877_v1  ;;  %v7359_v17 = vrot.slane %v2743_v46, %v6859_v52  ;;  %v7362_v33 = vrot.slane %v2622_v30, %v6859_v52  ;;  %v1871_v46 = vcombine.high %v6892_v8, %v6955_v59 }
 0x1ff   : > { %v2759_v32 = vcombine.high %v1612_v25, %v1618_v49  ;;  %10183 = vst [vmem:[#allocation64_spill] sm:$0xff] %v7350_v58  ;;  %10184 = vst [vmem:[#allocation65_spill] sm:$0xff] %v7353_v11  ;;  %v2758_v37 = vcombine.low %v1612_v25, %v1618_v49  ;;  %v2654_v26 = vcombine.low %v1602_v61, %v1608_v24 }
 0x200   : > { %10185 = vst [vmem:[#allocation66_spill] sm:$0xff] %v7356_v39  ;;  %10186 = vst [vmem:[#allocation67_spill] sm:$0xff] %v7359_v17  ;;  %v2655_v23 = vcombine.high %v1602_v61, %v1608_v24  ;;  %v2007_v30 = vcombine.high %v6889_v7, %v6926_v41  ;;  %v7376_v49 = vrot.slane %v2606_v2, %v6859_v52 }
 0x201   : > { %v7365_v9 = vrot.slane %v2759_v32, %v6859_v52  ;;  %v1903_v61 = vcombine.high %v6915_v51, %v6932_v6  ;;  %v2742_v25 = vcombine.low %v6718_v19, %v7268_v34  ;;  %v7389_v7 = vrot.slane %v2758_v37, %v6859_v52 }
 0x202   : > { %v1605_v15 = vpop.permute.xlu0 %1604  ;;  %v1622_v27 = vpop.permute.xlu1 %1621  ;;  %v2670_v8 = vcombine.low %v7376_v49, %v7362_v33  ;;  %v2662_v51 = vrot.slane %v2654_v26, %v6859_v52  ;;  %v7397_v19 = vrot.slane %v2655_v23, %v6859_v52  ;;  %v7409_v26 = vrot.slane %v1871_v46, %v6877_v1 }
 0x203   : > { %10187 = vst [vmem:[#allocation68_spill] sm:$0xff] %v7365_v9  ;;  %v2638_v32 = vcombine.low %v6716_v18, %v1605_v15  ;;  %v2639_v16 = vcombine.high %v6716_v18, %v1605_v15  ;;  %v2750_v59 = vrot.slane %v2742_v25, %v6859_v52  ;;  %v7428_v46 = vrot.slane %v1903_v61, %v6877_v1 }
 0x204   : > { %10188 = vst [vmem:[#allocation69_spill] sm:$0xff] %v7397_v19  ;;  %10190 = vst [vmem:[#allocation71_spill] sm:$0xff] %v7409_v26  ;;  %v7440_v39 = vrot.slane %v2670_v8, %v6877_v1  ;;  %v10196_v61 = vcombine.high %v6962_v62, %v6947_v43  ;;  %v10197_v11 = vcombine.high %v6895_v38, %v6920_v3 }
 0x205   : > { %v2646_v6 = vrot.slane %v2638_v32, %v6859_v52  ;;  %v7401_v18 = vrot.slane %v2639_v16, %v6859_v52  ;;  %10194 = vst [vmem:[#allocation75_spill] sm:$0xff] %v7428_v46 }
 0x206   : > { %v1625_v34 = vpop.permute.xlu0 %1624  ;;  %v1628_v2 = vpop.permute.xlu1 %1627 }
 0x207   : > { %10189 = vst [vmem:[#allocation70_spill] sm:$0xff] %v7401_v18  ;;  %v2774_v37 = vcombine.low %v6720_v20, %v1625_v34  ;;  %v2775_v15 = vcombine.high %v6720_v20, %v1625_v34  ;;  %v2790_v24 = vcombine.low %v1622_v27, %v1628_v2  ;;  %v2791_v41 = vcombine.high %v1622_v27, %v1628_v2 }
 0x208   : > { %v2702_v56 = vcombine.low %v2646_v6, %v2662_v51  ;;  %v2806_v27 = vcombine.low %v2750_v59, %v7389_v7  ;;  %v7425_v2 = vrot.slane %v2007_v30, %v6877_v1  ;;  %v2703_v30 = vcombine.high %v2646_v6, %v2662_v51 }
 0x209   : > { %v2782_v16 = vrot.slane %v2774_v37, %v6859_v52  ;;  %v7413_v32 = vrot.slane %v2775_v15, %v6859_v52  ;;  %v2798_v28 = vrot.slane %v2790_v24, %v6859_v52  ;;  %v7417_v20 = vrot.slane %v2791_v41, %v6859_v52 }
 0x20a   : > { %v7420_v25 = vpop.permute.xlu1 %1634  ;;  %v7422_v34 = vpop.permute.xlu0 %1631  ;;  %10193 = vst [vmem:[#allocation74_spill] sm:$0xff] %v7425_v2  ;;  %v7431_v37 = vrot.slane %v2702_v56, %v6877_v1  ;;  %v10195_v41 = vcombine.low %v6895_v38, %v6920_v3  ;;  %v4072_v56 = vmul.f32 %v7308_v5, %v10196_v61  ;;  %v4071_v24 = vmul.f32 %v7308_v5, %v10197_v11 }
 0x20b   : > { %10191 = vst [vmem:[#allocation72_spill] sm:$0xff] %v7413_v32  ;;  %10192 = vst [vmem:[#allocation73_spill] sm:$0xff] %v7417_v20  ;;  %v2838_v15 = vcombine.low %v2782_v16, %v2798_v28  ;;  %v2839_v42 = vcombine.high %v2782_v16, %v2798_v28  ;;  %v2879_v31 = vcombine.high %v6726_v21, %v7420_v25 }
 0x20c   : > { %v4055_v23 = vmul.f32 %v7293_v12, %v10195_v41  ;;  %v2039_v51 = vcombine.high %v6906_v0, %v6910_v63  ;;  %v2671_v38 = vcombine.high %v7376_v49, %v7362_v33  ;;  %v2807_v3 = vcombine.high %v2750_v59, %v7389_v7 }
 0x20d   : > { %v7455_v8 = vrot.slane %v2838_v15, %v6877_v1  ;;  %v7467_v16 = vrot.slane %v2806_v27, %v6877_v1  ;;  %v10198_v28 = vcombine.low %v6962_v62, %v6947_v43  ;;  %v10199_v63 = vcombine.low %v6965_v50, %v6950_v53 }
 0x20e   : > { %v7464_v11 = vpop.permute.xlu1 %1654  ;;  %v1638_v6 = vpop.permute.xlu0 %1637  ;;  %v4183_v61 = vsel %vm330_vm0, %v4055_v23, 0.0  ;;  %v7484_v59 = vrot.slane %v2703_v30, %v6877_v1  ;;  %v7487_v23 = vrot.slane %v2839_v42, %v6877_v1  ;;  %v7490_v43 = vrot.slane %v2879_v31, %v6859_v52 }
 0x20f   : > { %v2895_v15 = vcombine.high %v7422_v34, %v1638_v6  ;;  %v4056_v0 = vmul.f32 %v7293_v12, %v10198_v28  ;;  %v4088_v33 = vmul.f32 %v7326_v10, %v10199_v63  ;;  %v4234_v27 = vsel %vm330_vm0, %v4072_v56, 0.0 }
 0x210   : > { %10200 = vst [vmem:[#allocation76_spill] sm:$0xff] %v7487_v23  ;;  %10201 = vst [vmem:[#allocation77_spill] sm:$0xff] %v7490_v43  ;;  %v4231_v28 = vsel %vm330_vm0, %v4071_v24, 0.0  ;;  %v2718_v63 = vcombine.low %v7401_v18, %v7397_v19  ;;  %v2854_v30 = vcombine.low %v7413_v32, %v7417_v20  ;;  %v7502_v42 = vrot.slane %v2671_v38, %v6877_v1 }
 0x211   : > { %v7493_v62 = vrot.slane %v2895_v15, %v6859_v52  ;;  %v7505_v31 = vrot.slane %v2807_v3, %v6877_v1  ;;  %v4186_v24 = vsel %vm330_vm0, %v4056_v0, 0.0  ;;  %v10203_v56 = vcombine.high %v6965_v50, %v6950_v53  ;;  %v10205_v53 = vld [vmem:[#allocation12_spill] sm:$0xff] }
 0x212   : > { %v1652_v7 = vpop.permute.xlu0 %1651  ;;  %v1642_v49 = vpop.permute.xlu1 %1641  ;;  %v10204_v20 = vcombine.low %v6929_v48, %v6923_v4  ;;  %v2686_v3 = vcombine.low %v7287_v14, %v7290_v36  ;;  %v2822_v32 = vcombine.low %v7359_v17, %v7365_v9  ;;  %v3015_v50 = vcombine.high %v10205_v53, %v7464_v11  ;;  %v10210_v36 = vld [vmem:[#allocation29_spill] sm:$0xff] }
 0x213   : > { %10202 = vst [vmem:[#allocation78_spill] sm:$0xff] %v7493_v62  ;;  %4184 = vadd.xlane.f32.xlu0 %v4183_v61  ;;  %v4104_v41 = vmul.f32 %v7340_v45, %v10203_v56  ;;  %v2894_v56 = vcombine.low %v7422_v34, %v1638_v6  ;;  %v4282_v9 = vsel %vm330_vm0, %v4088_v33, 0.0  ;;  %v7535_v61 = vrot.slane %v2039_v51, %v6877_v1 }
 0x214   : > { %v4087_v38 = vmul.f32 %v7326_v10, %v10204_v20  ;;  %v7538_v0 = vrot.slane %v2718_v63, %v6877_v1  ;;  %v7541_v17 = vrot.slane %v2854_v30, %v6877_v1  ;;  %v2878_v34 = vcombine.low %v6726_v21, %v7420_v25  ;;  %v10209_v20 = vld [vmem:[#allocation31_spill] sm:$0xff] }
 0x215   : > { %10206 = vst [vmem:[#allocation12_spill] sm:$0xff] %v7535_v61  ;;  %v4330_v15 = vsel %vm330_vm0, %v4104_v41, 0.0  ;;  %v10211_v14 = vcombine.low %v10209_v20, %v10210_v36  ;;  %v10212_v63 = vcombine.high %v6929_v48, %v6923_v4  ;;  %v7556_v23 = vrot.slane %v2686_v3, %v6877_v1 }
 0x216   : > { %v1658_v19 = vpop.permute.xlu0 %1657  ;;  %v1648_v18 = vpop.permute.xlu1 %1647  ;;  %10207 = vst [vmem:[#allocation79_spill] sm:$0xff] %v7538_v0  ;;  %10208 = vst [vmem:[#allocation80_spill] sm:$0xff] %v7541_v17  ;;  %v4279_v51 = vsel %vm330_vm0, %v4087_v38, 0.0  ;;  %v7559_v21 = vrot.slane %v2822_v32, %v6877_v1  ;;  %v7562_v25 = vrot.slane %v3015_v50, %v6859_v52  ;;  %v7565_v41 = vrot.slane %v2894_v56, %v6859_v52  ;;  %v10218_v56 = vld [vmem:[#allocation11_spill] sm:$0xff] }
 0x217   : > { %v3031_v6 = vcombine.high %v1652_v7, %v1658_v19  ;;  %4235 = vadd.xlane.f32.xlu0 %v4234_v27  ;;  %v4120_v33 = vmul.f32 %v7343_v55, %v10211_v14  ;;  %v4103_v30 = vmul.f32 %v7340_v45, %v10212_v63  ;;  %10213 = vst [vmem:[#allocation31_spill] sm:$0xff] %v7556_v23 }
 0x218   : > { %10214 = vst [vmem:[#allocation29_spill] sm:$0xff] %v7559_v21  ;;  %10215 = vst [vmem:[#allocation81_spill] sm:$0xff] %v7562_v25  ;;  %v3030_v14 = vcombine.low %v1652_v7, %v1658_v19  ;;  %4187 = vadd.xlane.f32.xlu1 %v4186_v24  ;;  %v2926_v4 = vcombine.low %v1642_v49, %v1648_v18  ;;  %v2927_v48 = vcombine.high %v1642_v49, %v1648_v18  ;;  %v10221_v19 = vld [vmem:[#allocation13_spill] sm:$0xff] }
 0x219   : > { %v7568_v27 = vrot.slane %v3031_v6, %v6859_v52  ;;  %v7575_v50 = vrot.slane %v2878_v34, %v6859_v52  ;;  %v4378_v7 = vsel %vm330_vm0, %v4120_v33, 0.0  ;;  %v10217_v18 = vcombine.high %v10209_v20, %v10210_v36 }
 0x21a   : > { %v1645_v38 = vpop.permute.xlu0 %1644  ;;  %v1662_v63 = vpop.permute.xlu1 %1661  ;;  %v3014_v24 = vcombine.low %v10205_v53, %v7464_v11  ;;  %v2060_v34 = vcombine.low %v7425_v2, %v7535_v61  ;;  %v7593_v33 = vrot.slane %v3030_v14, %v6859_v52  ;;  %v2934_v53 = vrot.slane %v2926_v4, %v6859_v52  ;;  %v10222_v61 = vld [vmem:[#allocation32_spill] sm:$0xff] }
 0x21b   : > { %10216 = vst [vmem:[#allocation82_spill] sm:$0xff] %v7568_v27  ;;  %4283 = vadd.xlane.f32.xlu0 %v4282_v9  ;;  %v4136_v49 = vmul.f32 %v7347_v60, %v10217_v18  ;;  %v2910_v6 = vcombine.low %v10218_v56, %v1645_v38  ;;  %v2911_v32 = vcombine.high %v10218_v56, %v1645_v38 }
 0x21c   : > { %v2942_v9 = vcombine.low %v7575_v50, %v7565_v41  ;;  %4232 = vadd.xlane.f32.xlu1 %v4231_v28  ;;  %v7601_v20 = vrot.slane %v2927_v48, %v6859_v52  ;;  %v3022_v11 = vrot.slane %v3014_v24, %v6859_v52 }
 0x21d   : > { %v2918_v38 = vrot.slane %v2910_v6, %v6859_v52  ;;  %v7605_v18 = vrot.slane %v2911_v32, %v6859_v52  ;;  %v10223_v6 = vld [vmem:[#allocation30_spill] sm:$0xff] }
 0x21e   : > { %10219 = vst [vmem:[#allocation11_spill] sm:$0xff] %v7601_v20  ;;  %v1665_v56 = vpop.permute.xlu0 %1664  ;;  %v1668_v14 = vpop.permute.xlu1 %1667  ;;  %v10224_v17 = vcombine.low %v10222_v61, %v10223_v6  ;;  %v7642_v48 = vrot.slane %v2942_v9, %v6877_v1 }
 0x21f   : > { %10220 = vst [vmem:[#allocation83_spill] sm:$0xff] %v7605_v18  ;;  %v3046_v28 = vcombine.low %v10221_v19, %v1665_v56  ;;  %v3047_v3 = vcombine.high %v10221_v19, %v1665_v56  ;;  %v3062_v36 = vcombine.low %v1662_v63, %v1668_v14  ;;  %v3063_v2 = vcombine.high %v1662_v63, %v1668_v14 }
 0x220   : > { %4331 = vadd.xlane.f32.xlu0 %v4330_v15  ;;  %v2974_v4 = vcombine.low %v2918_v38, %v2934_v53  ;;  %v4119_v32 = vmul.f32 %v7343_v55, %v10224_v17  ;;  %4280 = vadd.xlane.f32.xlu1 %v4279_v51  ;;  %v3078_v63 = vcombine.low %v3022_v11, %v7593_v33 }
 0x221   : > { %v3054_v21 = vrot.slane %v3046_v28, %v6859_v52  ;;  %v7618_v0 = vrot.slane %v3047_v3, %v6859_v52  ;;  %v3070_v19 = vrot.slane %v3062_v36, %v6859_v52  ;;  %v7622_v15 = vrot.slane %v3063_v2, %v6859_v52 }
 0x222   : > { %v7625_v24 = vpop.permute.xlu1 %1674  ;;  %v7627_v56 = vpop.permute.xlu0 %1671  ;;  %v10227_v17 = vcombine.high %v10222_v61, %v10223_v6  ;;  %v1924_v3 = vcombine.low %v7409_v26, %v7428_v46  ;;  %v7636_v36 = vrot.slane %v2974_v4, %v6877_v1  ;;  %v4152_v28 = vmul.f32 %v7350_v58, %v2060_v34  ;;  %v10228_v26 = vld [vmem:[#allocation14_spill] sm:$0xff] }
 0x223   : > { %10225 = vst [vmem:[#allocation13_spill] sm:$0xff] %v7618_v0  ;;  %10226 = vst [vmem:[#allocation32_spill] sm:$0xff] %v7622_v15  ;;  %v3110_v2 = vcombine.low %v3054_v21, %v3070_v19  ;;  %v2975_v23 = vcombine.high %v2918_v38, %v2934_v53  ;;  %v3111_v61 = vcombine.high %v3054_v21, %v3070_v19  ;;  %v4327_v6 = vsel %vm330_vm0, %v4103_v30, 0.0 }
 0x224   : > { %v4135_v14 = vmul.f32 %v7347_v60, %v10227_v17  ;;  %4379 = vadd.xlane.f32.xlu0 %v4378_v7  ;;  %v4426_v17 = vsel %vm330_vm0, %v4136_v49, 0.0  ;;  %v3151_v4 = vcombine.high %v10228_v26, %v7625_v24  ;;  %4328 = vadd.xlane.f32.xlu1 %v4327_v6  ;;  %v2943_v21 = vcombine.high %v7575_v50, %v7565_v41 }
 0x225   : > { %v7651_v7 = vrot.slane %v3110_v2, %v6877_v1  ;;  %v3079_v30 = vcombine.high %v3022_v11, %v7593_v33  ;;  %v4375_v53 = vsel %vm330_vm0, %v4119_v32, 0.0  ;;  %v7662_v38 = vrot.slane %v3078_v63, %v6877_v1 }
 0x226   : > { %v7658_v9 = vpop.permute.xlu1 %1694  ;;  %v1678_v49 = vpop.permute.xlu0 %1677  ;;  %v4474_v2 = vsel %vm330_vm0, %v4152_v28, 0.0  ;;  %v4423_v6 = vsel %vm330_vm0, %v4135_v14, 0.0  ;;  %v4151_v51 = vmul.f32 %v7350_v58, %v1924_v3  ;;  %v7673_v33 = vrot.slane %v2975_v23, %v6877_v1 }
 0x227   : > { %v3167_v19 = vcombine.high %v7627_v56, %v1678_v49  ;;  %v7676_v11 = vrot.slane %v3111_v61, %v6877_v1  ;;  %v7679_v32 = vrot.slane %v3151_v4, %v6859_v52  ;;  %v10232_v14 = vcombine.low %v7075_v40, %v7078_v44 }
 0x228   : > { %4427 = vadd.xlane.f32.xlu0 %v4426_v17  ;;  %4376 = vadd.xlane.f32.xlu1 %v4375_v53  ;;  %v10233_v28 = vcombine.high %v7075_v40, %v7078_v44  ;;  %v2990_v61 = vcombine.low %v7605_v18, %v7601_v20  ;;  %v3126_v17 = vcombine.low %v7618_v0, %v7622_v15  ;;  %v4471_v40 = vsel %vm330_vm0, %v4151_v51, 0.0 }
 0x229   : > { %10229 = vst [vmem:[#allocation30_spill] sm:$0xff] %v7676_v11  ;;  %10230 = vst [vmem:[#allocation14_spill] sm:$0xff] %v7679_v32  ;;  %v7682_v63 = vrot.slane %v3167_v19, %v6859_v52  ;;  %v4057_v3 = vmul.f32 %v7293_v12, %v10232_v14  ;;  %v7699_v53 = vrot.slane %v2943_v21, %v6877_v1  ;;  %v10237_v21 = vld [vmem:[#allocation39_spill] sm:$0xff] }
 0x22a   : > { %v4073_v23 = vmul.f32 %v7308_v5, %v10233_v28  ;;  %v7696_v4 = vpop.permute.xlu0 %1691  ;;  %v1682_v19 = vpop.permute.xlu1 %1681  ;;  %v7702_v50 = vrot.slane %v3079_v30, %v6877_v1  ;;  %v10235_v44 = vcombine.low %v7099_v29, %v7092_v22  ;;  %v10236_v28 = vcombine.high %v7099_v29, %v7092_v22  ;;  %v10239_v22 = vld [vmem:[#allocation16_spill] sm:$0xff] }
 0x22b   : > { %10231 = vst [vmem:[#allocation84_spill] sm:$0xff] %v7682_v63  ;;  %v10238_v41 = vcombine.low %v7111_v57, %v10237_v21  ;;  %v2958_v46 = vcombine.low %v7490_v43, %v7493_v62  ;;  %v3287_v29 = vcombine.high %v10239_v22, %v7658_v9 }
 0x22c   : > { %10234 = vst [vmem:[#allocation85_spill] sm:$0xff] %v7702_v50  ;;  %4475 = vadd.xlane.f32.xlu0 %v4474_v2  ;;  %v4058_v14 = vmul.f32 %v7293_v12, %v10235_v44  ;;  %v4074_v34 = vmul.f32 %v7308_v5, %v10236_v28  ;;  %v3094_v2 = vcombine.low %v7562_v25, %v7568_v27  ;;  %v4189_v27 = vsel %vm330_vm0, %v4057_v3, 0.0 }
 0x22d   : > { %v4089_v30 = vmul.f32 %v7326_v10, %v10238_v41  ;;  %v3166_v28 = vcombine.low %v7627_v56, %v1678_v49  ;;  %4424 = vadd.xlane.f32.xlu1 %v4423_v6  ;;  %v7736_v44 = vrot.slane %v2990_v61, %v6877_v1  ;;  %v7739_v25 = vrot.slane %v3126_v17, %v6877_v1 }
 0x22e   : > { %v1698_v15 = vpop.permute.xlu0 %1697  ;;  %v1688_v0 = vpop.permute.xlu1 %1687  ;;  %v3150_v56 = vcombine.low %v10228_v26, %v7625_v24  ;;  %v4192_v6 = vsel %vm330_vm0, %v4058_v14, 0.0  ;;  %v4237_v58 = vsel %vm330_vm0, %v4073_v23, 0.0  ;;  %v4240_v3 = vsel %vm330_vm0, %v4074_v34, 0.0  ;;  %v10246_v24 = vld [vmem:[#allocation42_spill] sm:$0xff]  ;;  %v10247_v34 = vld [vmem:[#allocation43_spill] sm:$0xff] }
 0x22f   : > { %10240 = vst [vmem:[#allocation39_spill] sm:$0xff] %v7736_v44  ;;  %10241 = vst [vmem:[#allocation16_spill] sm:$0xff] %v7739_v25  ;;  %v3303_v49 = vcombine.high %v7696_v4, %v1698_v15  ;;  %v4285_v51 = vsel %vm330_vm0, %v4089_v30, 0.0  ;;  %v7749_v61 = vrot.slane %v2958_v46, %v6877_v1  ;;  %v7752_v17 = vrot.slane %v3094_v2, %v6877_v1 }
 0x230   : > { %4190 = vadd.xlane.f32.xlu0 %v4189_v27  ;;  %v7755_v41 = vrot.slane %v3287_v29, %v6859_v52  ;;  %v7758_v26 = vrot.slane %v3166_v28, %v6859_v52  ;;  %v10248_v23 = vcombine.low %v10246_v24, %v10247_v34  ;;  %v3198_v46 = vcombine.low %v1682_v19, %v1688_v0 }
 0x231   : > { %10242 = vst [vmem:[#allocation86_spill] sm:$0xff] %v7749_v61  ;;  %10243 = vst [vmem:[#allocation87_spill] sm:$0xff] %v7752_v17  ;;  %v7761_v27 = vrot.slane %v3303_v49, %v6859_v52  ;;  %4472 = vadd.xlane.f32.xlu1 %v4471_v40  ;;  %v3199_v30 = vcombine.high %v1682_v19, %v1688_v0  ;;  %v3158_v28 = vrot.slane %v3150_v56, %v6859_v52  ;;  %v10249_v0 = vld [vmem:[#allocation15_spill] sm:$0xff] }
 0x232   : > { %10244 = vst [vmem:[#allocation88_spill] sm:$0xff] %v7755_v41  ;;  %v4090_v14 = vmul.f32 %v7326_v10, %v10248_v23  ;;  %v1685_v20 = vpop.permute.xlu0 %1684  ;;  %v3286_v49 = vcombine.low %v10239_v22, %v7658_v9  ;;  %v3302_v40 = vcombine.low %v7696_v4, %v1698_v15  ;;  %v1702_v23 = vpop.permute.xlu1 %1701  ;;  %v10250_v2 = vcombine.high %v7111_v57, %v10237_v21 }
 0x233   : > { %10245 = vst [vmem:[#allocation89_spill] sm:$0xff] %v7761_v27  ;;  %v3182_v19 = vcombine.low %v10249_v0, %v1685_v20  ;;  %v3183_v62 = vcombine.high %v10249_v0, %v1685_v20  ;;  %v10251_v56 = vcombine.high %v10246_v24, %v10247_v34  ;;  %v3214_v15 = vcombine.low %v3158_v28, %v7758_v26 }
 0x234   : > { %4193 = vadd.xlane.f32.xlu0 %v4192_v6  ;;  %v4105_v29 = vmul.f32 %v7340_v45, %v10250_v2  ;;  %v4288_v4 = vsel %vm330_vm0, %v4090_v14, 0.0  ;;  %v3206_v57 = vrot.slane %v3198_v46, %v6859_v52  ;;  %v7795_v21 = vrot.slane %v3199_v30, %v6859_v52  ;;  %v10254_v2 = vld [vmem:[#allocation17_spill] sm:$0xff] }
 0x235   : > { %v4106_v9 = vmul.f32 %v7340_v45, %v10251_v56  ;;  %4238 = vadd.xlane.f32.xlu1 %v4237_v58  ;;  %v3190_v6 = vrot.slane %v3182_v19, %v6859_v52  ;;  %v7799_v24 = vrot.slane %v3183_v62, %v6859_v52  ;;  %v3294_v58 = vrot.slane %v3286_v49, %v6859_v52 }
 0x236   : > { %10252 = vst [vmem:[#allocation42_spill] sm:$0xff] %v7795_v21  ;;  %v1705_v34 = vpop.permute.xlu0 %1704  ;;  %v3310_v14 = vrot.slane %v3302_v40, %v6859_v52  ;;  %v1708_v20 = vpop.permute.xlu1 %1707  ;;  %v3215_v46 = vcombine.high %v3158_v28, %v7758_v26  ;;  %v7817_v26 = vrot.slane %v3214_v15, %v6877_v1 }
 0x237   : > { %10253 = vst [vmem:[#allocation43_spill] sm:$0xff] %v7799_v24  ;;  %v3318_v0 = vcombine.low %v10254_v2, %v1705_v34  ;;  %v3319_v56 = vcombine.high %v10254_v2, %v1705_v34  ;;  %v3246_v30 = vcombine.low %v3190_v6, %v3206_v57  ;;  %v3247_v22 = vcombine.high %v3190_v6, %v3206_v57 }
 0x238   : > { %4241 = vadd.xlane.f32.xlu0 %v4240_v3  ;;  %v3334_v49 = vcombine.low %v1702_v23, %v1708_v20  ;;  %v3335_v40 = vcombine.high %v1702_v23, %v1708_v20  ;;  %v4333_v34 = vsel %vm330_vm0, %v4105_v29, 0.0  ;;  %v4336_v3 = vsel %vm330_vm0, %v4106_v9, 0.0  ;;  %10256 = vst [vmem:[#allocation17_spill] sm:$0xff] %v7817_v26  ;;  %v10260_v29 = vld [vmem:[#allocation45_spill] sm:$0xff]  ;;  %v10261_v9 = vld [vmem:[#allocation44_spill] sm:$0xff] }
 0x239   : > { %v3326_v62 = vrot.slane %v3318_v0, %v6859_v52  ;;  %v7810_v18 = vrot.slane %v3319_v56, %v6859_v52  ;;  %4286 = vadd.xlane.f32.xlu1 %v4285_v51  ;;  %v7820_v28 = vrot.slane %v3246_v30, %v6877_v1  ;;  %v3350_v57 = vcombine.low %v3294_v58, %v3310_v14  ;;  %v10263_v0 = vld [vmem:[#allocation49_spill] sm:$0xff]  ;;  %v10264_v56 = vld [vmem:[#allocation46_spill] sm:$0xff] }
 0x23a   : > { %v7812_v25 = vpop.permute.xlu0 %1711  ;;  %v3342_v6 = vrot.slane %v3334_v49, %v6859_v52  ;;  %v7824_v2 = vrot.slane %v3335_v40, %v6859_v52  ;;  %v7826_v23 = vpop.permute.xlu1 %1714  ;;  %v7829_v51 = vrot.slane %v3247_v22, %v6877_v1  ;;  %v10262_v20 = vcombine.low %v10260_v29, %v10261_v9  ;;  %v10269_v22 = vld [vmem:[#allocation54_spill] sm:$0xff] }
 0x23b   : > { %10255 = vst [vmem:[#allocation15_spill] sm:$0xff] %v7810_v18  ;;  %10257 = vst [vmem:[#allocation90_spill] sm:$0xff] %v7820_v28  ;;  %v10265_v30 = vcombine.low %v10263_v0, %v10264_v56  ;;  %v10266_v17 = vcombine.high %v10260_v29, %v10261_v9  ;;  %v7850_v44 = vrot.slane %v3215_v46, %v6877_v1 }
 0x23c   : > { %10258 = vst [vmem:[#allocation91_spill] sm:$0xff] %v7824_v2  ;;  %4289 = vadd.xlane.f32.xlu0 %v4288_v4  ;;  %10259 = vst [vmem:[#allocation92_spill] sm:$0xff] %v7829_v51  ;;  %v4121_v15 = vmul.f32 %v7343_v55, %v10262_v20  ;;  %v3382_v4 = vcombine.low %v3326_v62, %v3342_v6  ;;  %v3383_v61 = vcombine.high %v3326_v62, %v3342_v6  ;;  %v10291_v51 = vld [vmem:[#allocation63_spill] sm:$0xff] }
 0x23d   : > { %v4122_v19 = vmul.f32 %v7343_v55, %v10265_v30  ;;  %4334 = vadd.xlane.f32.xlu1 %v4333_v34  ;;  %v4137_v20 = vmul.f32 %v7347_v60, %v10266_v17  ;;  %10267 = vst [vmem:[#allocation45_spill] sm:$0xff] %v7850_v44  ;;  %v3351_v30 = vcombine.high %v3294_v58, %v3310_v14 }
 0x23e   : > { %v7852_v43 = vpop.permute.xlu0 %1717  ;;  %v10268_v40 = vcombine.high %v10263_v0, %v10264_v56  ;;  %v10270_v34 = vcombine.low %v7246_v13, %v10269_v22  ;;  %v7862_v29 = vpop.permute.xlu1 %1734  ;;  %v10271_v17 = vcombine.high %v7246_v13, %v10269_v22  ;;  %v7869_v14 = vrot.slane %v3350_v57, %v6877_v1 }
 0x23f   : > { %v7872_v46 = vrot.slane %v3382_v4, %v6877_v1  ;;  %v4381_v6 = vsel %vm330_vm0, %v4121_v15, 0.0  ;;  %v4384_v9 = vsel %vm330_vm0, %v4122_v19, 0.0  ;;  %v4429_v13 = vsel %vm330_vm0, %v4137_v20, 0.0 }
 0x240   : > { %v4138_v49 = vmul.f32 %v7347_v60, %v10268_v40  ;;  %v4059_v28 = vmul.f32 %v7293_v12, %v10270_v34  ;;  %4337 = vadd.xlane.f32.xlu0 %v4336_v3  ;;  %v4075_v58 = vmul.f32 %v7308_v5, %v10271_v17  ;;  %10272 = vst [vmem:[#allocation44_spill] sm:$0xff] %v7869_v14  ;;  %v10276_v34 = vld [vmem:[#allocation57_spill] sm:$0xff]  ;;  %v10277_v17 = vld [vmem:[#allocation56_spill] sm:$0xff] }
 0x241   : > { %10273 = vst [vmem:[#allocation49_spill] sm:$0xff] %v7872_v46  ;;  %v3262_v3 = vcombine.low %v7799_v24, %v7795_v21  ;;  %4382 = vadd.xlane.f32.xlu1 %v4381_v6  ;;  %v3230_v56 = vcombine.low %v7679_v32, %v7682_v63  ;;  %v7891_v19 = vrot.slane %v3351_v30, %v6877_v1  ;;  %v10299_v21 = vld [vmem:[#allocation19_spill] sm:$0xff] }
 0x242   : > { %v7887_v40 = vpop.permute.xlu0 %1731  ;;  %v4432_v15 = vsel %vm330_vm0, %v4138_v49, 0.0  ;;  %v7894_v4 = vrot.slane %v3383_v61, %v6877_v1  ;;  %v7896_v22 = vpop.permute.xlu1 %1721  ;;  %v4195_v20 = vsel %vm330_vm0, %v4059_v28, 0.0  ;;  %v10278_v6 = vcombine.low %v10276_v34, %v10277_v17 }
 0x243   : > { %10274 = vst [vmem:[#allocation46_spill] sm:$0xff] %v7891_v19  ;;  %v4243_v0 = vsel %vm330_vm0, %v4075_v58, 0.0  ;;  %v10279_v49 = vcombine.high %v10276_v34, %v10277_v17  ;;  %v10280_v61 = vcombine.low %v7300_v35, %v7281_v54  ;;  %v7931_v14 = vrot.slane %v3262_v3, %v6877_v1  ;;  %v10290_v19 = vld [vmem:[#allocation66_spill] sm:$0xff] }
 0x244   : > { %10275 = vst [vmem:[#allocation54_spill] sm:$0xff] %v7894_v4  ;;  %4385 = vadd.xlane.f32.xlu0 %v4384_v9  ;;  %v4060_v62 = vmul.f32 %v7293_v12, %v10278_v6  ;;  %v10281_v9 = vld [vmem:[#allocation58_spill] sm:$0xff]  ;;  %v10283_v6 = vcombine.high %v7300_v35, %v7281_v54  ;;  %v3366_v54 = vcombine.low %v7755_v41, %v7761_v27 }
 0x245   : > { %v4076_v30 = vmul.f32 %v7308_v5, %v10279_v49  ;;  %v4091_v57 = vmul.f32 %v7326_v10, %v10280_v61  ;;  %v10282_v28 = vcombine.low %v7303_v47, %v10281_v9  ;;  %4430 = vadd.xlane.f32.xlu1 %v4429_v13  ;;  %v10284_v17 = vcombine.high %v7303_v47, %v10281_v9  ;;  %v10288_v61 = vld [vmem:[#allocation62_spill] sm:$0xff] }
 0x246   : > { %v4107_v58 = vmul.f32 %v7340_v45, %v10283_v6  ;;  %10285 = vst [vmem:[#allocation57_spill] sm:$0xff] %v7931_v14  ;;  %v3398_v35 = vcombine.low %v7810_v18, %v7824_v2  ;;  %v3438_v47 = vcombine.low %v7812_v25, %v7852_v43  ;;  %v7939_v13 = vpop.permute.xlu0 %1737  ;;  %v7942_v9 = vrot.slane %v3230_v56, %v6877_v1  ;;  %v7944_v6 = vpop.permute.xlu1 %1727  ;;  %v10293_v56 = vld [vmem:[#allocation18_spill] sm:$0xff] }
 0x247   : > { %v4092_v46 = vmul.f32 %v7326_v10, %v10282_v28  ;;  %v4108_v49 = vmul.f32 %v7340_v45, %v10284_v17  ;;  %v4198_v3 = vsel %vm330_vm0, %v4060_v62, 0.0  ;;  %v4246_v17 = vsel %vm330_vm0, %v4076_v30, 0.0  ;;  %v10287_v28 = vld [vmem:[#allocation65_spill] sm:$0xff] }
 0x248   : > { %10286 = vst [vmem:[#allocation56_spill] sm:$0xff] %v7942_v9  ;;  %4433 = vadd.xlane.f32.xlu0 %v4432_v15  ;;  %v10289_v34 = vcombine.low %v10287_v28, %v10288_v61  ;;  %v10292_v44 = vcombine.low %v10290_v19, %v10291_v51  ;;  %v3422_v2 = vcombine.low %v10293_v56, %v7826_v23  ;;  %v4291_v18 = vsel %vm330_vm0, %v4091_v57, 0.0 }
 0x249   : > { %v4294_v15 = vsel %vm330_vm0, %v4092_v46, 0.0  ;;  %4196 = vadd.xlane.f32.xlu1 %v4195_v20  ;;  %v4339_v30 = vsel %vm330_vm0, %v4107_v58, 0.0  ;;  %v10294_v27 = vcombine.high %v10287_v28, %v10288_v61  ;;  %v10295_v41 = vcombine.high %v10290_v19, %v10291_v51 }
 0x24a   : > { %v4123_v4 = vmul.f32 %v7343_v55, %v10289_v34  ;;  %v4124_v26 = vmul.f32 %v7343_v55, %v10292_v44  ;;  %v7964_v34 = vsel %vm330_vm0, %v4108_v49, 0.0  ;;  %v3446_v46 = vrot.slane %v3438_v47, %v6859_v52  ;;  %v1725_v62 = vpop.permute.xlu0 %1724  ;;  %v7985_v61 = vpop.permute.xlu1 %1741 }
 0x24b   : > { %v4139_v44 = vmul.f32 %v7347_v60, %v10294_v27  ;;  %v4140_v57 = vmul.f32 %v7347_v60, %v10295_v41  ;;  %v3470_v20 = vcombine.low %v7896_v22, %v7944_v6  ;;  %v7978_v58 = vrot.slane %v3366_v54, %v6877_v1 }
 0x24c   : > { %v7981_v49 = vrot.slane %v3398_v35, %v6877_v1  ;;  %v3574_v27 = vcombine.low %v7887_v40, %v7939_v13  ;;  %4199 = vadd.xlane.f32.xlu0 %v4198_v3  ;;  %v7988_v41 = vsel %vm330_vm0, %v4123_v4, 0.0  ;;  %v7991_v51 = vsel %vm330_vm0, %v4124_v26, 0.0  ;;  %v10298_v35 = vld [vmem:[#allocation20_spill] sm:$0xff] }
 0x24d   : > { %v10297_v19 = vcombine.low %v7440_v39, %v7431_v37  ;;  %v3430_v54 = vrot.slane %v3422_v2, %v6859_v52  ;;  %v3558_v47 = vcombine.low %v10298_v35, %v7862_v29  ;;  %v3454_v24 = vcombine.low %v10299_v21, %v1725_v62  ;;  %4244 = vadd.xlane.f32.xlu1 %v4243_v0 }
 0x24e   : > { %10296 = vst [vmem:[#allocation58_spill] sm:$0xff] %v7981_v49  ;;  %v8004_v4 = vsel %vm330_vm0, %v4139_v44, 0.0  ;;  %v8007_v26 = vsel %vm330_vm0, %v4140_v57, 0.0  ;;  %v3478_v32 = vrot.slane %v3470_v20, %v6859_v52  ;;  %v1745_v50 = vpop.permute.xlu0 %1744  ;;  %v10300_v0 = vcombine.high %v7440_v39, %v7431_v37  ;;  %v1748_v9 = vpop.permute.xlu1 %1747 }
 0x24f   : > { %v4061_v28 = vmul.f32 %v7293_v12, %v10297_v19  ;;  %v3486_v63 = vcombine.low %v3430_v54, %v3446_v46  ;;  %v3462_v11 = vrot.slane %v3454_v24, %v6859_v52  ;;  %v3423_v57 = vcombine.high %v10293_v56, %v7826_v23  ;;  %v10301_v19 = vld [vmem:[#allocation21_spill] sm:$0xff] }
 0x250   : > { %v4077_v44 = vmul.f32 %v7308_v5, %v10300_v0  ;;  %v3582_v3 = vrot.slane %v3574_v27, %v6859_v52  ;;  %v3590_v14 = vcombine.low %v10301_v19, %v1745_v50  ;;  %4247 = vadd.xlane.f32.xlu0 %v4246_v17  ;;  %v3566_v24 = vrot.slane %v3558_v47, %v6859_v52 }
 0x251   : > { %v8024_v2 = vsel %vm330_vm0, %v4061_v28, 0.0  ;;  %v3439_v20 = vcombine.high %v7812_v25, %v7852_v43  ;;  %v3518_v39 = vcombine.low %v3462_v11, %v3478_v32  ;;  %v3519_v37 = vcombine.high %v3462_v11, %v3478_v32  ;;  %4292 = vadd.xlane.f32.xlu1 %v4291_v18 }
 0x252   : > { %v3487_v0 = vcombine.high %v3430_v54, %v3446_v46  ;;  %v3455_v49 = vcombine.high %v10299_v21, %v1725_v62  ;;  %v3598_v23 = vrot.slane %v3590_v14, %v6859_v52  ;;  %v3606_v56 = vcombine.low %v7985_v61, %v1748_v9  ;;  %v8032_v27 = vpop.permute.xlu0 %1751  ;;  %v8051_v62 = vpop.permute.xlu1 %1754 }
 0x253   : > { %v10302_v17 = vcombine.low %v7467_v16, %v7455_v8  ;;  %v10303_v43 = vcombine.high %v7467_v16, %v7455_v8  ;;  %v8043_v11 = vrot.slane %v3486_v63, %v6877_v1  ;;  %v8046_v32 = vrot.slane %v3518_v39, %v6877_v1  ;;  %v10323_v63 = vld [vmem:[#allocation80_spill] sm:$0xff] }
 0x254   : > { %v3622_v21 = vcombine.low %v3566_v24, %v3582_v3  ;;  %v3471_v18 = vcombine.high %v7896_v22, %v7944_v6  ;;  %v3614_v14 = vrot.slane %v3606_v56, %v6859_v52  ;;  %4295 = vadd.xlane.f32.xlu0 %v4294_v15  ;;  %v8054_v46 = vrot.slane %v3519_v37, %v6877_v1 }
 0x255   : > { %v4062_v28 = vmul.f32 %v7293_v12, %v10302_v17  ;;  %v4078_v25 = vmul.f32 %v7308_v5, %v10303_v43  ;;  %10304 = vst [vmem:[#allocation65_spill] sm:$0xff] %v8043_v11  ;;  %10305 = vst [vmem:[#allocation62_spill] sm:$0xff] %v8046_v32  ;;  %v8057_v8 = vrot.slane %v3423_v57, %v6859_v52  ;;  %4340 = vadd.xlane.f32.xlu1 %v4339_v30 }
 0x256   : > { %10306 = vst [vmem:[#allocation66_spill] sm:$0xff] %v8054_v46  ;;  %v8060_v16 = vrot.slane %v3439_v20, %v6859_v52  ;;  %v3575_v6 = vcombine.high %v7887_v40, %v7939_v13  ;;  %v8069_v15 = vrot.slane %v3455_v49, %v6859_v52  ;;  %v3654_v54 = vcombine.low %v3598_v23, %v3614_v14  ;;  %v8076_v56 = vpop.permute.xlu0 %1757  ;;  %v8081_v40 = vpop.permute.xlu1 %1774 }
 0x257   : > { %v8072_v47 = vrot.slane %v3487_v0, %v6877_v1  ;;  %v3623_v57 = vcombine.high %v3566_v24, %v3582_v3  ;;  %v3591_v20 = vcombine.high %v10301_v19, %v1745_v50  ;;  %v3607_v39 = vcombine.high %v7985_v61, %v1748_v9 }
 0x258   : > { %v3655_v37 = vcombine.high %v3598_v23, %v3614_v14  ;;  %v8079_v17 = vrot.slane %v3471_v18, %v6859_v52  ;;  %4343 = vadd.xlane.f32.xlu0 %v7964_v34  ;;  %v8085_v13 = vrot.slane %v3622_v21, %v6877_v1  ;;  %v8088_v30 = vrot.slane %v3654_v54, %v6877_v1 }
 0x259   : > { %10307 = vst [vmem:[#allocation63_spill] sm:$0xff] %v8072_v47  ;;  %v3559_v9 = vcombine.high %v10298_v35, %v7862_v29  ;;  %v3502_v49 = vcombine.low %v8057_v8, %v8060_v16  ;;  %v8097_v61 = vsel %vm330_vm0, %v4077_v44, 0.0  ;;  %v10310_v34 = vcombine.low %v7502_v42, %v7484_v59  ;;  %4388 = vadd.xlane.f32.xlu1 %v7988_v41 }
 0x25a   : > { %10308 = vst [vmem:[#allocation18_spill] sm:$0xff] %v8085_v13  ;;  %10309 = vst [vmem:[#allocation20_spill] sm:$0xff] %v8088_v30  ;;  %v8104_v19 = vrot.slane %v3575_v6, %v6859_v52  ;;  %v3534_v24 = vcombine.low %v8069_v15, %v8079_v17  ;;  %v8114_v44 = vrot.slane %v3591_v20, %v6859_v52  ;;  %v8119_v23 = vpop.permute.xlu0 %1771  ;;  %v1762_v41 = vpop.permute.xlu1 %1761  ;;  %v4204_v18 = vsel %vm330_vm0, %v4062_v28, 0.0  ;;  %v10313_v6 = vld [vmem:[#allocation76_spill] sm:$0xff] }
 0x25b   : > { %v4093_v3 = vmul.f32 %v7326_v10, %v10310_v34  ;;  %v8117_v0 = vrot.slane %v3607_v39, %v6859_v52  ;;  %v8122_v43 = vrot.slane %v3623_v57, %v6877_v1  ;;  %v8125_v21 = vrot.slane %v3655_v37, %v6877_v1 }
 0x25c   : > { %4391 = vadd.xlane.f32.xlu0 %v7991_v51  ;;  %v4252_v14 = vsel %vm330_vm0, %v4078_v25, 0.0  ;;  %v10314_v54 = vcombine.low %v7505_v31, %v10313_v6  ;;  %v10315_v39 = vcombine.high %v7502_v42, %v7484_v59  ;;  %v8139_v37 = vrot.slane %v3559_v9, %v6859_v52  ;;  %v10318_v42 = vld [vmem:[#allocation24_spill] sm:$0xff] }
 0x25d   : > { %10311 = vst [vmem:[#allocation19_spill] sm:$0xff] %v8122_v43  ;;  %10312 = vst [vmem:[#allocation21_spill] sm:$0xff] %v8125_v21  ;;  %v3710_v51 = vcombine.low %v8032_v27, %v8076_v56  ;;  %v10316_v28 = vcombine.high %v7505_v31, %v10313_v6  ;;  %4436 = vadd.xlane.f32.xlu1 %v8004_v4  ;;  %v8157_v9 = vrot.slane %v3534_v24, %v6877_v1 }
 0x25e   : > { %v4094_v20 = vmul.f32 %v7326_v10, %v10314_v54  ;;  %v4109_v57 = vmul.f32 %v7340_v45, %v10315_v39  ;;  %v10317_v54 = vld [vmem:[#allocation22_spill] sm:$0xff]  ;;  %v3638_v31 = vcombine.low %v8139_v37, %v8104_v19  ;;  %v3670_v6 = vcombine.low %v8114_v44, %v8117_v0  ;;  %v1778_v39 = vpop.permute.xlu0 %1777  ;;  %v1768_v35 = vpop.permute.xlu1 %1767 }
 0x25f   : > { %v4110_v25 = vmul.f32 %v7340_v45, %v10316_v28  ;;  %v3694_v50 = vcombine.low %v10317_v54, %v8051_v62  ;;  %v4297_v28 = vsel %vm330_vm0, %v4093_v3, 0.0  ;;  %v8165_v4 = vrot.slane %v3502_v49, %v6877_v1 }
 0x260   : > { %v3695_v59 = vcombine.high %v10317_v54, %v8051_v62  ;;  %v3830_v34 = vcombine.low %v10318_v42, %v8081_v40  ;;  %v3711_v24 = vcombine.high %v8032_v27, %v8076_v56  ;;  %4439 = vadd.xlane.f32.xlu0 %v8007_v26  ;;  %v4300_v22 = vsel %vm330_vm0, %v4094_v20, 0.0  ;;  %v10319_v26 = vld [vmem:[#allocation31_spill] sm:$0xff] }
 0x261   : > { %v3718_v29 = vrot.slane %v3710_v51, %v6859_v52  ;;  %v8177_v3 = vsel %vm330_vm0, %v4109_v57, 0.0  ;;  %v8180_v49 = vsel %vm330_vm0, %v4110_v25, 0.0  ;;  %v3702_v54 = vrot.slane %v3694_v50, %v6859_v52  ;;  %4202 = vadd.xlane.f32.xlu1 %v8024_v2  ;;  %v10320_v56 = vld [vmem:[#allocation79_spill] sm:$0xff]  ;;  %v10322_v57 = vld [vmem:[#allocation29_spill] sm:$0xff] }
 0x262   : > { %v3846_v27 = vcombine.low %v8119_v23, %v1778_v39  ;;  %v10321_v20 = vcombine.low %v10319_v26, %v10320_v56  ;;  %v10324_v21 = vcombine.low %v10322_v57, %v10323_v63  ;;  %v3742_v43 = vcombine.low %v1762_v41, %v1768_v35  ;;  %v1765_v46 = vpop.permute.xlu0 %1764  ;;  %v1782_v13 = vpop.permute.xlu1 %1781 }
 0x263   : > { %v3743_v62 = vcombine.high %v1762_v41, %v1768_v35  ;;  %v8200_v50 = vrot.slane %v3638_v31, %v6877_v1  ;;  %v8203_v2 = vrot.slane %v3670_v6, %v6877_v1  ;;  %v8206_v47 = vrot.slane %v3695_v59, %v6859_v52  ;;  %v10326_v41 = vld [vmem:[#allocation23_spill] sm:$0xff] }
 0x264   : > { %v8191_v51 = vmul.f32 %v7343_v55, %v10321_v20  ;;  %v8197_v25 = vmul.f32 %v7343_v55, %v10324_v21  ;;  %v3831_v20 = vcombine.high %v10318_v42, %v8081_v40  ;;  %v3838_v30 = vrot.slane %v3830_v34, %v6859_v52  ;;  %4205 = vadd.xlane.f32.xlu0 %v4204_v18 }
 0x265   : > { %10325 = vst [vmem:[#allocation76_spill] sm:$0xff] %v8203_v2  ;;  %v8212_v21 = vrot.slane %v3711_v24, %v6859_v52  ;;  %v3758_v35 = vcombine.low %v3702_v54, %v3718_v29  ;;  %v3726_v31 = vcombine.low %v10326_v41, %v1765_v46  ;;  %v3727_v32 = vcombine.high %v10326_v41, %v1765_v46 }
 0x266   : > { %v3847_v59 = vcombine.high %v8119_v23, %v1778_v39  ;;  %v3854_v11 = vrot.slane %v3846_v27, %v6859_v52  ;;  %4250 = vadd.xlane.f32.xlu1 %v8097_v61  ;;  %v3750_v34 = vrot.slane %v3742_v43, %v6859_v52  ;;  %v8227_v42 = vrot.slane %v3743_v62, %v6859_v52  ;;  %v1785_v23 = vpop.permute.xlu0 %1784  ;;  %v10327_v27 = vld [vmem:[#allocation25_spill] sm:$0xff]  ;;  %v1788_v18 = vpop.permute.xlu1 %1787 }
 0x267   : > { %v3734_v46 = vrot.slane %v3726_v31, %v6859_v52  ;;  %v8231_v24 = vrot.slane %v3727_v32, %v6859_v52  ;;  %v8234_v39 = vrot.slane %v3831_v20, %v6859_v52  ;;  %v3759_v61 = vcombine.high %v3702_v54, %v3718_v29 }
 0x268   : > { %v3862_v41 = vcombine.low %v10327_v27, %v1785_v23  ;;  %v3863_v40 = vcombine.high %v10327_v27, %v1785_v23  ;;  %4253 = vadd.xlane.f32.xlu0 %v4252_v14  ;;  %v3774_v43 = vcombine.low %v8206_v47, %v8212_v21  ;;  %v8243_v31 = vrot.slane %v3847_v59, %v6859_v52 }
 0x269   : > { %v3790_v62 = vcombine.low %v3734_v46, %v3750_v34  ;;  %v3791_v6 = vcombine.high %v3734_v46, %v3750_v34  ;;  %v3806_v32 = vcombine.low %v8231_v24, %v8227_v42  ;;  %v3878_v29 = vcombine.low %v1782_v13, %v1788_v18 }
 0x26a   : > { %v3870_v20 = vrot.slane %v3862_v41, %v6859_v52  ;;  %v3879_v54 = vcombine.high %v1782_v13, %v1788_v18  ;;  %4298 = vadd.xlane.f32.xlu1 %v4297_v28  ;;  %v3894_v2 = vcombine.low %v3838_v30, %v3854_v11  ;;  %v8247_v23 = vrot.slane %v3863_v40, %v6859_v52  ;;  %v10371_v28 = vld [vmem:[#allocation60_spill] sm:$0xff] }
 0x26b   : > { %v8250_v14 = vrot.slane %v3758_v35, %v6877_v1  ;;  %v8253_v34 = vrot.slane %v3790_v62, %v6877_v1  ;;  %v3895_v46 = vcombine.high %v3838_v30, %v3854_v11  ;;  %v3886_v27 = vrot.slane %v3878_v29, %v6859_v52  ;;  %v10345_v62 = vld [vmem:[#allocation36_spill] sm:$0xff] }
 0x26c   : > { %v8257_v59 = vrot.slane %v3879_v54, %v6859_v52  ;;  %4301 = vadd.xlane.f32.xlu0 %v4300_v22  ;;  %v8260_v13 = vrot.slane %v3791_v6, %v6877_v1  ;;  %v8267_v40 = vrot.slane %v3759_v61, %v6877_v1  ;;  %v8270_v11 = vrot.slane %v3806_v32, %v6877_v1 }
 0x26d   : > { %v3910_v52 = vcombine.low %v8234_v39, %v8243_v31  ;;  %v3926_v30 = vcombine.low %v3870_v20, %v3886_v27  ;;  %v3927_v22 = vcombine.high %v3870_v20, %v3886_v27  ;;  %v8276_v6 = vrot.slane %v3774_v43, %v6877_v1 }
 0x26e   : > { %10328 = vst [vmem:[#allocation22_spill] sm:$0xff] %v8260_v13  ;;  %10329 = vst [vmem:[#allocation24_spill] sm:$0xff] %v8267_v40  ;;  %4346 = vadd.xlane.f32.xlu1 %v8177_v3  ;;  %v3942_v18 = vcombine.low %v8247_v23, %v8257_v59  ;;  %v8281_v41 = vrot.slane %v3894_v2, %v6877_v1  ;;  %v8292_v3 = vrot.slane %v3895_v46, %v6877_v1 }
 0x26f   : > { %10330 = vst [vmem:[#allocation31_spill] sm:$0xff] %v8270_v11  ;;  %10331 = vst [vmem:[#allocation79_spill] sm:$0xff] %v8276_v6  ;;  %v8289_v32 = vrot.slane %v3926_v30, %v6877_v1  ;;  %v8295_v43 = vrot.slane %v3927_v22, %v6877_v1  ;;  %v4393_v20 = vsel %vm330_vm0, %v8191_v51, 0.0  ;;  %v10334_v29 = vcombine.high %v10319_v26, %v10320_v56 }
 0x270   : > { %4349 = vadd.xlane.f32.xlu0 %v8180_v49  ;;  %10332 = vst [vmem:[#allocation29_spill] sm:$0xff] %v8292_v3  ;;  %v10335_v54 = vcombine.high %v10322_v57, %v10323_v63  ;;  %v4396_v56 = vsel %vm330_vm0, %v8197_v25, 0.0  ;;  %v10336_v63 = vcombine.low %v7642_v48, %v7636_v36  ;;  %v8324_v22 = vrot.slane %v3910_v52, %v6877_v1 }
 0x271   : > { %10333 = vst [vmem:[#allocation80_spill] sm:$0xff] %v8295_v43  ;;  %v4141_v49 = vmul.f32 %v7347_v60, %v10334_v29  ;;  %v10341_v25 = vcombine.high %v7662_v38, %v7651_v7 }
 0x272   : > { %v4142_v46 = vmul.f32 %v7347_v60, %v10335_v54  ;;  %4394 = vadd.xlane.f32.xlu1 %v4393_v20  ;;  %v4063_v57 = vmul.f32 %v7293_v12, %v10336_v63  ;;  %10337 = vst [vmem:[#allocation23_spill] sm:$0xff] %v8324_v22  ;;  %v8327_v20 = vrot.slane %v3942_v18, %v6877_v1 }
 0x273   : > { %v4441_v29 = vsel %vm330_vm0, %v4141_v49, 0.0  ;;  %v10339_v18 = vcombine.low %v7662_v38, %v7651_v7  ;;  %v10340_v49 = vcombine.high %v7642_v48, %v7636_v36  ;;  %v4080_v2 = vmul.f32 %v7308_v5, %v10341_v25  ;;  %v10348_v48 = vld [vmem:[#allocation33_spill] sm:$0xff]  ;;  %v10349_v36 = vld [vmem:[#allocation34_spill] sm:$0xff] }
 0x274   : > { %10338 = vst [vmem:[#allocation25_spill] sm:$0xff] %v8327_v20  ;;  %4397 = vadd.xlane.f32.xlu0 %v4396_v56  ;;  %v4444_v63 = vsel %vm330_vm0, %v4142_v46, 0.0  ;;  %v4207_v52 = vsel %vm330_vm0, %v4063_v57, 0.0  ;;  %v10342_v46 = vld [vmem:[#allocation27_spill] sm:$0xff]  ;;  %v10351_v38 = vld [vmem:[#allocation37_spill] sm:$0xff]  ;;  %v10352_v25 = vld [vmem:[#allocation38_spill] sm:$0xff] }
 0x275   : > { %v4064_v56 = vmul.f32 %v7293_v12, %v10339_v18  ;;  %v4079_v54 = vmul.f32 %v7308_v5, %v10340_v49  ;;  %v10346_v18 = vld [vmem:[#allocation35_spill] sm:$0xff]  ;;  %v10350_v49 = vcombine.high %v10348_v48, %v10349_v36  ;;  %v10358_v48 = vld [vmem:[#allocation40_spill] sm:$0xff]  ;;  %v10359_v36 = vld [vmem:[#allocation41_spill] sm:$0xff] }
 0x276   : > { %4442 = vadd.xlane.f32.xlu1 %v4441_v29  ;;  %v10343_v29 = vld [vmem:[#allocation28_spill] sm:$0xff]  ;;  %v10347_v51 = vcombine.high %v10345_v62, %v10346_v18  ;;  %v10355_v62 = vld [vmem:[#allocation85_spill] sm:$0xff] }
 0x277   : > { %v10344_v57 = vcombine.high %v10342_v46, %v10343_v29  ;;  %v8366_v7 = vrot.slane %v10350_v49, %v6877_v1  ;;  %v10354_v46 = vcombine.low %v7699_v53, %v7673_v33  ;;  %v10360_v49 = vcombine.high %v10358_v48, %v10359_v36  ;;  %v10365_v20 = vld [vmem:[#allocation48_spill] sm:$0xff] }
 0x278   : > { %4445 = vadd.xlane.f32.xlu0 %v4444_v63  ;;  %v8360_v61 = vrot.slane %v10347_v51, %v6877_v1  ;;  %v10353_v63 = vcombine.high %v10351_v38, %v10352_v25  ;;  %v10356_v51 = vld [vmem:[#allocation30_spill] sm:$0xff]  ;;  %v10361_v38 = vld [vmem:[#allocation51_spill] sm:$0xff]  ;;  %v10367_v36 = vld [vmem:[#allocation52_spill] sm:$0xff] }
 0x279   : > { %v8354_v26 = vrot.slane %v10344_v57, %v6877_v1  ;;  %v4095_v29 = vmul.f32 %v7326_v10, %v10354_v46  ;;  %v10357_v57 = vcombine.low %v10355_v62, %v10356_v51  ;;  %v8386_v35 = vrot.slane %v10360_v49, %v6877_v1  ;;  %v10362_v25 = vld [vmem:[#allocation50_spill] sm:$0xff]  ;;  %v10368_v49 = vld [vmem:[#allocation53_spill] sm:$0xff] }
 0x27a   : > { %v8372_v30 = vrot.slane %v10353_v63, %v6877_v1  ;;  %v10363_v63 = vcombine.high %v10361_v38, %v10362_v25  ;;  %4208 = vadd.xlane.f32.xlu1 %v4207_v52  ;;  %v10369_v11 = vcombine.high %v10367_v36, %v10368_v49  ;;  %v4210_v52 = vsel %vm330_vm0, %v4064_v56, 0.0  ;;  %v10376_v36 = vld [vmem:[#allocation67_spill] sm:$0xff]  ;;  %v10377_v49 = vld [vmem:[#allocation68_spill] sm:$0xff] }
 0x27b   : > { %v4096_v18 = vmul.f32 %v7326_v10, %v10357_v57  ;;  %v10364_v57 = vld [vmem:[#allocation47_spill] sm:$0xff]  ;;  %v10378_v25 = vcombine.high %v10376_v36, %v10377_v49 }
 0x27c   : > { %v8392_v27 = vrot.slane %v10363_v63, %v6877_v1  ;;  %v10366_v22 = vcombine.high %v10364_v57, %v10365_v20  ;;  %v8408_v38 = vrot.slane %v10369_v11, %v6877_v1  ;;  %v10370_v63 = vld [vmem:[#allocation59_spill] sm:$0xff]  ;;  %v10374_v20 = vld [vmem:[#allocation69_spill] sm:$0xff]  ;;  %4211 = vadd.xlane.f32.xlu0 %v4210_v52  ;;  %v4255_v11 = vsel %vm330_vm0, %v4079_v54, 0.0 }
 0x27d   : > { %v10372_v46 = vcombine.high %v10370_v63, %v10371_v28  ;;  %v8432_v3 = vrot.slane %v10378_v25, %v6877_v1  ;;  %v10379_v28 = vld [vmem:[#allocation72_spill] sm:$0xff]  ;;  %v10382_v52 = vld [vmem:[#allocation77_spill] sm:$0xff]  ;;  %v10385_v25 = vld [vmem:[#allocation83_spill] sm:$0xff] }
 0x27e   : > { %v8402_v48 = vrot.slane %v10366_v22, %v6877_v1  ;;  %v10373_v22 = vld [vmem:[#allocation70_spill] sm:$0xff]  ;;  %v10386_v36 = vld [vmem:[#allocation11_spill] sm:$0xff]  ;;  %4256 = vadd.xlane.f32.xlu1 %v4255_v11  ;;  %v3535_v11 = vcombine.high %v8069_v15, %v8079_v17 }
 0x27f   : > { %v8417_v6 = vrot.slane %v10372_v46, %v6877_v1  ;;  %v10375_v57 = vcombine.high %v10373_v22, %v10374_v20  ;;  %v10380_v46 = vld [vmem:[#allocation73_spill] sm:$0xff]  ;;  %v4258_v22 = vsel %vm330_vm0, %v4080_v2, 0.0  ;;  %v10383_v20 = vld [vmem:[#allocation78_spill] sm:$0xff]  ;;  %v10387_v49 = vcombine.high %v10385_v25, %v10386_v36 }
 0x280   : > { %v10381_v63 = vcombine.high %v10379_v28, %v10380_v46  ;;  %v4303_v28 = vsel %vm330_vm0, %v4095_v29, 0.0  ;;  %v4306_v2 = vsel %vm330_vm0, %v4096_v18, 0.0  ;;  %v10388_v46 = vcombine.high %v7699_v53, %v7673_v33  ;;  %4259 = vadd.xlane.f32.xlu0 %v4258_v22  ;;  %v10389_v18 = vld [vmem:[#allocation81_spill] sm:$0xff]  ;;  %v10390_v25 = vld [vmem:[#allocation82_spill] sm:$0xff] }
 0x281   : > { %v8423_v43 = vrot.slane %v10375_v57, %v6877_v1  ;;  %v10384_v57 = vcombine.high %v10382_v52, %v10383_v20  ;;  %v8453_v40 = vrot.slane %v10387_v49, %v6877_v1  ;;  %v3503_v20 = vcombine.high %v8057_v8, %v8060_v16  ;;  %v10398_v49 = vld [vmem:[#allocation43_spill] sm:$0xff]  ;;  %v10452_v29 = vld [vmem:[#allocation21_spill] sm:$0xff] }
 0x282   : > { %v8438_v13 = vrot.slane %v10381_v63, %v6877_v1  ;;  %v4111_v63 = vmul.f32 %v7340_v45, %v10388_v46  ;;  %v3671_v33 = vcombine.high %v8114_v44, %v8117_v0  ;;  %v3775_v53 = vcombine.high %v8206_v47, %v8212_v21  ;;  %v10395_v47 = vld [vmem:[#allocation14_spill] sm:$0xff]  ;;  %v10396_v0 = vld [vmem:[#allocation84_spill] sm:$0xff]  ;;  %4304 = vadd.xlane.f32.xlu1 %v4303_v28 }
 0x283   : > { %v8447_v56 = vrot.slane %v10384_v57, %v6877_v1  ;;  %v3639_v57 = vcombine.high %v8139_v37, %v8104_v19  ;;  %v10391_v8 = vcombine.high %v10389_v18, %v10390_v25  ;;  %v10392_v19 = vld [vmem:[#allocation13_spill] sm:$0xff]  ;;  %v10393_v37 = vld [vmem:[#allocation32_spill] sm:$0xff]  ;;  %v3911_v36 = vcombine.high %v8234_v39, %v8243_v31  ;;  %v10399_v46 = vld [vmem:[#allocation42_spill] sm:$0xff] }
 0x284   : > { %v10394_v15 = vcombine.high %v10392_v19, %v10393_v37  ;;  %v3807_v44 = vcombine.high %v8231_v24, %v8227_v42  ;;  %v10397_v21 = vcombine.high %v10395_v47, %v10396_v0  ;;  %v10400_v18 = vcombine.high %v10398_v49, %v10399_v46  ;;  %v10401_v42 = vld [vmem:[#allocation88_spill] sm:$0xff]  ;;  %v10402_v24 = vld [vmem:[#allocation89_spill] sm:$0xff]  ;;  %v10404_v37 = vld [vmem:[#allocation15_spill] sm:$0xff]  ;;  %4307 = vadd.xlane.f32.xlu0 %v4306_v2 }
 0x285   : > { %v8479_v16 = vrot.slane %v10391_v8, %v6877_v1  ;;  %v3943_v8 = vcombine.high %v8247_v23, %v8257_v59  ;;  %v10403_v31 = vcombine.high %v10401_v42, %v10402_v24  ;;  %v8526_v28 = vrot.slane %v3503_v20, %v6877_v1  ;;  %v10409_v24 = vld [vmem:[#allocation39_spill] sm:$0xff]  ;;  %v10449_v39 = vld [vmem:[#allocation66_spill] sm:$0xff] }
 0x286   : > { %v8485_v17 = vrot.slane %v10394_v15, %v6877_v1  ;;  %v8495_v22 = vrot.slane %v10397_v21, %v6877_v1  ;;  %v8501_v25 = vrot.slane %v10400_v18, %v6877_v1  ;;  %v10405_v15 = vld [vmem:[#allocation91_spill] sm:$0xff]  ;;  %v10407_v21 = vcombine.high %v10355_v62, %v10356_v51  ;;  %v10408_v51 = vld [vmem:[#allocation86_spill] sm:$0xff] }
 0x287   : > { %v8511_v19 = vrot.slane %v10403_v31, %v6877_v1  ;;  %v10406_v47 = vcombine.high %v10404_v37, %v10405_v15  ;;  %v8529_v49 = vrot.slane %v3535_v11, %v6877_v1  ;;  %v4351_v46 = vsel %vm330_vm0, %v4111_v63, 0.0  ;;  %v10412_v37 = vld [vmem:[#allocation16_spill] sm:$0xff]  ;;  %v10448_v59 = vld [vmem:[#allocation63_spill] sm:$0xff] }
 0x288   : > { %v4112_v23 = vmul.f32 %v7340_v45, %v10407_v21  ;;  %v8535_v42 = vrot.slane %v3639_v57, %v6877_v1  ;;  %v8538_v62 = vrot.slane %v3671_v33, %v6877_v1  ;;  %v10410_v31 = vcombine.low %v10408_v51, %v10409_v24  ;;  %4352 = vadd.xlane.f32.xlu1 %v4351_v46  ;;  %v10411_v57 = vld [vmem:[#allocation87_spill] sm:$0xff] }
 0x289   : > { %v8517_v0 = vrot.slane %v10406_v47, %v6877_v1  ;;  %v8547_v2 = vrot.slane %v3775_v53, %v6877_v1  ;;  %v8550_v63 = vrot.slane %v3807_v44, %v6877_v1  ;;  %v10413_v15 = vcombine.low %v10411_v57, %v10412_v37 }
 0x28a   : > { %v4127_v20 = vmul.f32 %v7343_v55, %v10410_v31  ;;  %v8559_v21 = vrot.slane %v3911_v36, %v6877_v1  ;;  %v8562_v31 = vrot.slane %v3943_v8, %v6877_v1  ;;  %v4354_v53 = vsel %vm330_vm0, %v4112_v23, 0.0 }
 0x28b   : > { %v4128_v33 = vmul.f32 %v7343_v55, %v10413_v15  ;;  %4355 = vadd.xlane.f32.xlu0 %v4354_v53  ;;  %v10414_v47 = vcombine.high %v10408_v51, %v10409_v24  ;;  %v10415_v53 = vcombine.high %v10411_v57, %v10412_v37 }
 0x28c   : > { %v4399_v15 = vsel %vm330_vm0, %v4127_v20, 0.0  ;;  %v10420_v20 = vld [vmem:[#allocation49_spill] sm:$0xff] }
 0x28d   : > { %v4143_v36 = vmul.f32 %v7347_v60, %v10414_v47  ;;  %4400 = vadd.xlane.f32.xlu1 %v4399_v15  ;;  %v4402_v8 = vsel %vm330_vm0, %v4128_v33, 0.0  ;;  %v4144_v46 = vmul.f32 %v7347_v60, %v10415_v53  ;;  %v10416_v47 = vld [vmem:[#allocation17_spill] sm:$0xff]  ;;  %v10417_v33 = vld [vmem:[#allocation90_spill] sm:$0xff]  ;;  %v10419_v53 = vld [vmem:[#allocation44_spill] sm:$0xff] }
 0x28e   : > { %v10418_v15 = vcombine.low %v10416_v47, %v10417_v33  ;;  %v10421_v51 = vcombine.low %v10419_v53, %v10420_v20 }
 0x28f   : > { %4403 = vadd.xlane.f32.xlu0 %v4402_v8  ;;  %v4447_v1 = vsel %vm330_vm0, %v4143_v36, 0.0  ;;  %v4450_v37 = vsel %vm330_vm0, %v4144_v46, 0.0  ;;  %v10422_v8 = vcombine.high %v10416_v47, %v10417_v33  ;;  %v10425_v36 = vld [vmem:[#allocation92_spill] sm:$0xff] }
 0x290   : > { %v4065_v23 = vmul.f32 %v7293_v12, %v10418_v15  ;;  %v4066_v44 = vmul.f32 %v7293_v12, %v10421_v51 }
 0x291   : > { %4448 = vadd.xlane.f32.xlu1 %v4447_v1  ;;  %v4081_v24 = vmul.f32 %v7308_v5, %v10422_v8  ;;  %v10423_v8 = vcombine.high %v10419_v53, %v10420_v20  ;;  %v10424_v1 = vld [vmem:[#allocation45_spill] sm:$0xff] }
 0x292   : > { %v4213_v15 = vsel %vm330_vm0, %v4065_v23, 0.0  ;;  %v10426_v33 = vcombine.low %v10424_v1, %v10425_v36  ;;  %v10428_v23 = vld [vmem:[#allocation54_spill] sm:$0xff] }
 0x293   : > { %4451 = vadd.xlane.f32.xlu0 %v4450_v37  ;;  %v4216_v37 = vsel %vm330_vm0, %v4066_v44, 0.0  ;;  %v4082_v46 = vmul.f32 %v7308_v5, %v10423_v8  ;;  %v4261_v47 = vsel %vm330_vm0, %v4081_v24, 0.0  ;;  %v10427_v44 = vld [vmem:[#allocation46_spill] sm:$0xff] }
 0x294   : > { %v4097_v57 = vmul.f32 %v7326_v10, %v10426_v33  ;;  %v10429_v11 = vcombine.low %v10427_v44, %v10428_v23 }
 0x295   : > { %4214 = vadd.xlane.f32.xlu1 %v4213_v15  ;;  %v4264_v15 = vsel %vm330_vm0, %v4082_v46, 0.0 }
 0x296   : > { %v4098_v20 = vmul.f32 %v7326_v10, %v10429_v11  ;;  %v4309_v53 = vsel %vm330_vm0, %v4097_v57, 0.0  ;;  %v10432_v11 = vld [vmem:[#allocation56_spill] sm:$0xff] }
 0x297   : > { %4217 = vadd.xlane.f32.xlu0 %v4216_v37  ;;  %v10430_v37 = vcombine.high %v10424_v1, %v10425_v36  ;;  %v10435_v1 = vld [vmem:[#allocation58_spill] sm:$0xff] }
 0x298   : > { %v4312_v8 = vsel %vm330_vm0, %v4098_v20, 0.0 }
 0x299   : > { %4262 = vadd.xlane.f32.xlu1 %v4261_v47  ;;  %v4113_v24 = vmul.f32 %v7340_v45, %v10430_v37  ;;  %v10431_v47 = vcombine.high %v10427_v44, %v10428_v23 }
 0x29b   : > { %4265 = vadd.xlane.f32.xlu0 %v4264_v15  ;;  %v4114_v46 = vmul.f32 %v7340_v45, %v10431_v47  ;;  %v4357_v33 = vsel %vm330_vm0, %v4113_v24, 0.0  ;;  %v10433_v15 = vld [vmem:[#allocation57_spill] sm:$0xff] }
 0x29c   : > { %v10434_v51 = vcombine.low %v10432_v11, %v10433_v15  ;;  %v10437_v37 = vcombine.high %v10432_v11, %v10433_v15 }
 0x29d   : > { %4310 = vadd.xlane.f32.xlu1 %v4309_v53  ;;  %v4360_v36 = vsel %vm330_vm0, %v4114_v46, 0.0  ;;  %v10436_v53 = vcombine.low %v7978_v58, %v10435_v1 }
 0x29e   : > { %v4129_v57 = vmul.f32 %v7343_v55, %v10434_v51  ;;  %v4145_v24 = vmul.f32 %v7347_v60, %v10437_v37  ;;  %v10443_v37 = vld [vmem:[#allocation20_spill] sm:$0xff] }
 0x29f   : > { %4313 = vadd.xlane.f32.xlu0 %v4312_v8  ;;  %v4130_v20 = vmul.f32 %v7343_v55, %v10436_v53  ;;  %v10438_v8 = vcombine.high %v7978_v58, %v10435_v1 }
 0x2a0   : > { %v8657_v23 = vpop.xlane.xlu0 %4184  ;;  %v4405_v44 = vsel %vm330_vm0, %v4129_v57, 0.0  ;;  %v10440_v57 = vld [vmem:[#allocation62_spill] sm:$0xff] }
 0x2a1   : > { %4358 = vadd.xlane.f32.xlu1 %v4357_v33  ;;  %v4408_v51 = vsel %vm330_vm0, %v4130_v20, 0.0  ;;  %v4146_v47 = vmul.f32 %v7347_v60, %v10438_v8  ;;  %v4453_v33 = vsel %vm330_vm0, %v4145_v24, 0.0 }
 0x2a3   : > { %4361 = vadd.xlane.f32.xlu0 %v4360_v36  ;;  %v10439_v36 = vld [vmem:[#allocation65_spill] sm:$0xff]  ;;  %v4456_v20 = vsel %vm330_vm0, %v4146_v47, 0.0 }
 0x2a4   : > { %v8669_v46 = vpop.xlane.xlu0 %4235  ;;  %v10441_v53 = vcombine.low %v10439_v36, %v10440_v57  ;;  %v10445_v8 = vcombine.high %v10439_v36, %v10440_v57  ;;  %v10450_v36 = vcombine.low %v10448_v59, %v10449_v39 }
 0x2a5   : > { %4406 = vadd.xlane.f32.xlu1 %v4405_v44  ;;  %v8676_v15 = vpop.xlane.xlu1 %4187  ;;  %v10442_v44 = vld [vmem:[#allocation18_spill] sm:$0xff] }
 0x2a6   : > { %v4067_v11 = vmul.f32 %v7293_v12, %v10441_v53  ;;  %v10444_v58 = vcombine.low %v10442_v44, %v10443_v37  ;;  %v4083_v53 = vmul.f32 %v7308_v5, %v10445_v8  ;;  %v10446_v18 = vcombine.high %v10442_v44, %v10443_v37  ;;  %v10451_v8 = vld [vmem:[#allocation19_spill] sm:$0xff] }
 0x2a7   : > { %4409 = vadd.xlane.f32.xlu0 %v4408_v51  ;;  %v4099_v57 = vmul.f32 %v7326_v10, %v10450_v36  ;;  %v10453_v44 = vcombine.low %v10451_v8, %v10452_v29  ;;  %v10457_v52 = vcombine.high %v10451_v8, %v10452_v29 }
 0x2a8   : > { %v4068_v1 = vmul.f32 %v7293_v12, %v10444_v58  ;;  %v8683_v51 = vpop.xlane.xlu0 %4283  ;;  %v4219_v24 = vsel %vm330_vm0, %v4067_v11, 0.0  ;;  %v4084_v58 = vmul.f32 %v7308_v5, %v10446_v18  ;;  %v4267_v11 = vsel %vm330_vm0, %v4083_v53, 0.0 }
 0x2a9   : > { %4454 = vadd.xlane.f32.xlu1 %v4453_v33  ;;  %v8690_v33 = vpop.xlane.xlu1 %4232  ;;  %v4100_v18 = vmul.f32 %v7326_v10, %v10453_v44  ;;  %v4315_v53 = vsel %vm330_vm0, %v4099_v57, 0.0  ;;  %v4116_v44 = vmul.f32 %v7340_v45, %v10457_v52 }
 0x2aa   : > { %v4222_v47 = vsel %vm330_vm0, %v4068_v1, 0.0  ;;  %v4270_v1 = vsel %vm330_vm0, %v4084_v58, 0.0 }
 0x2ab   : > { %4457 = vadd.xlane.f32.xlu0 %v4456_v20  ;;  %v4318_v58 = vsel %vm330_vm0, %v4100_v18, 0.0  ;;  %v4366_v18 = vsel %vm330_vm0, %v4116_v44, 0.0 }
 0x2ad   : > { %4220 = vadd.xlane.f32.xlu1 %v4219_v24  ;;  %v8697_v20 = vpop.xlane.xlu0 %4331  ;;  %v8704_v24 = vpop.xlane.xlu1 %4280 }
 0x2ae   : > { %10447 = vst [vmem:[#allocation27_spill] sm:$0xff] %v8697_v20  ;;  %v10520_v20 = vld [vmem:[#allocation74_spill] sm:$0xff] }
 0x2af   : > { %4223 = vadd.xlane.f32.xlu0 %v4222_v47  ;;  %v10455_v47 = vcombine.high %v10448_v59, %v10449_v39  ;;  %v10459_v39 = vcombine.low %v8165_v4, %v8157_v9 }
 0x2b1   : > { %4268 = vadd.xlane.f32.xlu1 %v4267_v11  ;;  %v8711_v37 = vpop.xlane.xlu0 %4379  ;;  %v4115_v36 = vmul.f32 %v7340_v45, %v10455_v47  ;;  %v8718_v11 = vpop.xlane.xlu1 %4328  ;;  %v4131_v59 = vmul.f32 %v7343_v55, %v10459_v39  ;;  %v10461_v47 = vld [vmem:[#allocation76_spill] sm:$0xff] }
 0x2b2   : > { %10454 = vst [vmem:[#allocation28_spill] sm:$0xff] %v8711_v37  ;;  %10456 = vst [vmem:[#allocation36_spill] sm:$0xff] %v8718_v11  ;;  %v10462_v29 = vcombine.low %v8200_v50, %v10461_v47  ;;  %v10466_v54 = vcombine.high %v8200_v50, %v10461_v47  ;;  %v10469_v50 = vcombine.low %v8281_v41, %v8289_v32 }
 0x2b3   : > { %4271 = vadd.xlane.f32.xlu0 %v4270_v1  ;;  %v4363_v57 = vsel %vm330_vm0, %v4115_v36, 0.0  ;;  %v4411_v36 = vsel %vm330_vm0, %v4131_v59, 0.0  ;;  %v10507_v37 = vcombine.low %v8511_v19, %v8517_v0 }
 0x2b4   : > { %v4132_v52 = vmul.f32 %v7343_v55, %v10462_v29  ;;  %v4148_v29 = vmul.f32 %v7347_v60, %v10466_v54  ;;  %v4070_v54 = vmul.f32 %v7293_v12, %v10469_v50  ;;  %v10472_v50 = vld [vmem:[#allocation24_spill] sm:$0xff] }
 0x2b5   : > { %4316 = vadd.xlane.f32.xlu1 %v4315_v53  ;;  %v8725_v1 = vpop.xlane.xlu0 %4427  ;;  %v8732_v53 = vpop.xlane.xlu1 %4376 }
 0x2b6   : > { %10458 = vst [vmem:[#allocation35_spill] sm:$0xff] %v8725_v1  ;;  %10460 = vst [vmem:[#allocation33_spill] sm:$0xff] %v8732_v53  ;;  %v4414_v44 = vsel %vm330_vm0, %v4132_v52, 0.0  ;;  %v4462_v52 = vsel %vm330_vm0, %v4148_v29, 0.0  ;;  %v4228_v29 = vsel %vm330_vm0, %v4070_v54, 0.0  ;;  %v10483_v1 = vld [vmem:[#allocation31_spill] sm:$0xff]  ;;  %v10509_v53 = vcombine.low %v8526_v28, %v8529_v49 }
 0x2b7   : > { %4319 = vadd.xlane.f32.xlu0 %v4318_v58  ;;  %v10464_v58 = vcombine.high %v8165_v4, %v8157_v9  ;;  %v10467_v9 = vcombine.low %v8250_v14, %v8253_v34 }
 0x2b9   : > { %4364 = vadd.xlane.f32.xlu1 %v4363_v57  ;;  %v8739_v8 = vpop.xlane.xlu0 %4475  ;;  %v4147_v39 = vmul.f32 %v7347_v60, %v10464_v58  ;;  %v4069_v4 = vmul.f32 %v7293_v12, %v10467_v9  ;;  %v10471_v9 = vcombine.high %v8281_v41, %v8289_v32 }
 0x2ba   : > { %10463 = vst [vmem:[#allocation34_spill] sm:$0xff] %v8739_v8  ;;  %v8746_v57 = vpop.xlane.xlu1 %4424  ;;  %v10473_v8 = vld [vmem:[#allocation22_spill] sm:$0xff] }
 0x2bb   : > { %4367 = vadd.xlane.f32.xlu0 %v4366_v18  ;;  %10465 = vst [vmem:[#allocation37_spill] sm:$0xff] %v8746_v57  ;;  %v4459_v59 = vsel %vm330_vm0, %v4147_v39, 0.0  ;;  %v4225_v58 = vsel %vm330_vm0, %v4069_v4, 0.0  ;;  %v10470_v39 = vcombine.high %v8250_v14, %v8253_v34  ;;  %v4086_v12 = vmul.f32 %v7308_v5, %v10471_v9  ;;  %v10487_v57 = vld [vmem:[#allocation25_spill] sm:$0xff] }
 0x2bc   : > { %v10474_v14 = vcombine.low %v10472_v50, %v10473_v8 }
 0x2bd   : > { %4412 = vadd.xlane.f32.xlu1 %v4411_v36  ;;  %v8753_v18 = vpop.xlane.xlu0 %4190  ;;  %v4276_v54 = vsel %vm330_vm0, %v4086_v12, 0.0 }
 0x2be   : > { %v8760_v36 = vpop.xlane.xlu1 %4472  ;;  %v4101_v34 = vmul.f32 %v7326_v10, %v10474_v14 }
 0x2bf   : > { %4415 = vadd.xlane.f32.xlu0 %v4414_v44  ;;  %10468 = vst [vmem:[#allocation38_spill] sm:$0xff] %v8760_v36  ;;  %v4085_v44 = vmul.f32 %v7308_v5, %v10470_v39  ;;  %v10475_v39 = vld [vmem:[#allocation29_spill] sm:$0xff]  ;;  %v10476_v36 = vld [vmem:[#allocation80_spill] sm:$0xff] }
 0x2c0   : > { %v10477_v41 = vcombine.low %v10475_v39, %v10476_v36  ;;  %v10480_v14 = vcombine.high %v10475_v39, %v10476_v36 }
 0x2c1   : > { %4460 = vadd.xlane.f32.xlu1 %v4459_v59  ;;  %v8767_v47 = vpop.xlane.xlu0 %4193  ;;  %v4273_v4 = vsel %vm330_vm0, %v4085_v44, 0.0  ;;  %v4321_v44 = vsel %vm330_vm0, %v4101_v34, 0.0 }
 0x2c2   : > { %v8774_v59 = vpop.xlane.xlu1 %4238  ;;  %v4102_v5 = vmul.f32 %v7326_v10, %v10477_v41  ;;  %v4118_v10 = vmul.f32 %v7340_v45, %v10480_v14  ;;  %v10482_v41 = vld [vmem:[#allocation79_spill] sm:$0xff] }
 0x2c3   : > { %4463 = vadd.xlane.f32.xlu0 %v4462_v52 }
 0x2c4   : > { %v4324_v12 = vsel %vm330_vm0, %v4102_v5, 0.0  ;;  %v4372_v5 = vsel %vm330_vm0, %v4118_v10, 0.0 }
 0x2c5   : > { %4226 = vadd.xlane.f32.xlu1 %v4225_v58  ;;  %v8781_v52 = vpop.xlane.xlu0 %4241 }
 0x2c6   : > { %v8788_v58 = vpop.xlane.xlu1 %4286 }
 0x2c7   : > { %4229 = vadd.xlane.f32.xlu0 %v4228_v29  ;;  %v10478_v29 = vcombine.high %v10472_v50, %v10473_v8  ;;  %v10484_v8 = vcombine.low %v10482_v41, %v10483_v1 }
 0x2c9   : > { %4274 = vadd.xlane.f32.xlu1 %v4273_v4  ;;  %v8795_v32 = vpop.xlane.xlu0 %4289  ;;  %v4117_v9 = vmul.f32 %v7340_v45, %v10478_v29  ;;  %v4133_v50 = vmul.f32 %v7343_v55, %v10484_v8  ;;  %v10486_v29 = vld [vmem:[#allocation23_spill] sm:$0xff] }
 0x2ca   : > { %v8802_v4 = vpop.xlane.xlu1 %4334  ;;  %v10488_v36 = vcombine.low %v10486_v29, %v10487_v57  ;;  %v10492_v8 = vcombine.high %v10486_v29, %v10487_v57  ;;  %v10496_v57 = vcombine.low %v8366_v7, %v8372_v30 }
 0x2cb   : > { %4277 = vadd.xlane.f32.xlu0 %v4276_v54  ;;  %10479 = vst [vmem:[#allocation85_spill] sm:$0xff] %v8802_v4  ;;  %v4369_v34 = vsel %vm330_vm0, %v4117_v9, 0.0  ;;  %v4417_v9 = vsel %vm330_vm0, %v4133_v50, 0.0 }
 0x2cc   : > { %v4134_v45 = vmul.f32 %v7343_v55, %v10488_v36  ;;  %v4150_v55 = vmul.f32 %v7347_v60, %v10492_v8 }
 0x2cd   : > { %4322 = vadd.xlane.f32.xlu1 %v4321_v44  ;;  %v8809_v54 = vpop.xlane.xlu0 %4337 }
 0x2ce   : > { %10481 = vst [vmem:[#allocation30_spill] sm:$0xff] %v8809_v54  ;;  %v8816_v44 = vpop.xlane.xlu1 %4382  ;;  %v4420_v10 = vsel %vm330_vm0, %v4134_v45, 0.0  ;;  %v4468_v45 = vsel %vm330_vm0, %v4150_v55, 0.0  ;;  %v10517_v54 = vld [vmem:[#allocation55_spill] sm:$0xff] }
 0x2cf   : > { %4325 = vadd.xlane.f32.xlu0 %v4324_v12  ;;  %10485 = vst [vmem:[#allocation40_spill] sm:$0xff] %v8816_v44  ;;  %v10490_v12 = vcombine.high %v10482_v41, %v10483_v1  ;;  %v10494_v1 = vcombine.low %v8354_v26, %v8360_v61  ;;  %v10495_v41 = vld [vmem:[#allocation64_spill] sm:$0xff]  ;;  %v10505_v44 = vcombine.low %v8495_v22, %v8501_v25 }
 0x2d1   : > { %4370 = vadd.xlane.f32.xlu1 %v4369_v34  ;;  %v8823_v39 = vpop.xlane.xlu0 %4385  ;;  %v4149_v14 = vmul.f32 %v7347_v60, %v10490_v12  ;;  %v4153_v36 = vmul.f32 %v10495_v41, %v10494_v1  ;;  %v4154_v60 = vmul.f32 %v10495_v41, %v10496_v57  ;;  %v10499_v57 = vcombine.low %v8417_v6, %v8423_v43 }
 0x2d2   : > { %10489 = vst [vmem:[#allocation41_spill] sm:$0xff] %v8823_v39  ;;  %v8830_v34 = vpop.xlane.xlu1 %4430  ;;  %v10503_v39 = vcombine.low %v8479_v16, %v8485_v17 }
 0x2d3   : > { %4373 = vadd.xlane.f32.xlu0 %v4372_v5  ;;  %10491 = vst [vmem:[#allocation51_spill] sm:$0xff] %v8830_v34  ;;  %v4465_v50 = vsel %vm330_vm0, %v4149_v14, 0.0  ;;  %v4477_v12 = vsel %vm330_vm0, %v4153_v36, 0.0  ;;  %v10497_v14 = vcombine.low %v8386_v35, %v8392_v27  ;;  %v4480_v55 = vsel %vm330_vm0, %v4154_v60, 0.0 }
 0x2d4   : > { %v10501_v34 = vcombine.low %v8447_v56, %v8453_v40 }
 0x2d5   : > { %4418 = vadd.xlane.f32.xlu1 %v4417_v9  ;;  %v8837_v5 = vpop.xlane.xlu0 %4433 }
 0x2d6   : > { %10493 = vst [vmem:[#allocation50_spill] sm:$0xff] %v8837_v5  ;;  %v8844_v9 = vpop.xlane.xlu1 %4196  ;;  %v10500_v5 = vcombine.low %v8432_v3, %v8438_v13 }
 0x2d7   : > { %4421 = vadd.xlane.f32.xlu0 %v4420_v10  ;;  %v4155_v10 = vmul.f32 %v10495_v41, %v10497_v14  ;;  %v4157_v14 = vmul.f32 %v10495_v41, %v10499_v57  ;;  %v4159_v57 = vmul.f32 %v10495_v41, %v10501_v34  ;;  %v4161_v34 = vmul.f32 %v10495_v41, %v10505_v44 }
 0x2d8   : > { %v4163_v44 = vmul.f32 %v10495_v41, %v10509_v53  ;;  %v10514_v53 = vcombine.low %v8547_v2, %v8550_v63 }
 0x2d9   : > { %4466 = vadd.xlane.f32.xlu1 %v4465_v50  ;;  %v8851_v29 = vpop.xlane.xlu0 %4199  ;;  %v10498_v50 = vcombine.low %v8402_v48, %v8408_v38  ;;  %v4483_v36 = vsel %vm330_vm0, %v4155_v10, 0.0  ;;  %v4489_v10 = vsel %vm330_vm0, %v4157_v14, 0.0  ;;  %v4495_v14 = vsel %vm330_vm0, %v4159_v57, 0.0 }
 0x2da   : > { %v8858_v8 = vpop.xlane.xlu1 %4244  ;;  %v4501_v57 = vsel %vm330_vm0, %v4161_v34, 0.0 }
 0x2db   : > { %4469 = vadd.xlane.f32.xlu0 %v4468_v45  ;;  %v4156_v1 = vmul.f32 %v10495_v41, %v10498_v50  ;;  %v4158_v50 = vmul.f32 %v10495_v41, %v10500_v5  ;;  %v4160_v5 = vmul.f32 %v10495_v41, %v10503_v39  ;;  %v4162_v39 = vmul.f32 %v10495_v41, %v10507_v37 }
 0x2dc   : > { %v10512_v37 = vcombine.low %v8535_v42, %v8538_v62 }
 0x2dd   : > { %4478 = vadd.xlane.f32.xlu1 %v4477_v12  ;;  %v8865_v45 = vpop.xlane.xlu0 %4247  ;;  %v4486_v60 = vsel %vm330_vm0, %v4156_v1, 0.0  ;;  %v4492_v1 = vsel %vm330_vm0, %v4158_v50, 0.0  ;;  %v4498_v50 = vsel %vm330_vm0, %v4160_v5, 0.0 }
 0x2de   : > { %v8872_v12 = vpop.xlane.xlu1 %4292 }
 0x2df   : > { %4481 = vadd.xlane.f32.xlu0 %v4480_v55 }
 0x2e1   : > { %4484 = vadd.xlane.f32.xlu1 %v4483_v36  ;;  %v8879_v55 = vpop.xlane.xlu0 %4295 }
 0x2e2   : > { %v8886_v36 = vpop.xlane.xlu1 %4340 }
 0x2e3   : > { %4487 = vadd.xlane.f32.xlu0 %v4486_v60  ;;  %10502 = vst [vmem:[#allocation47_spill] sm:$0xff] %v8886_v36  ;;  %v10516_v36 = vld [vmem:[#allocation71_spill] sm:$0xff] }
 0x2e5   : > { %4490 = vadd.xlane.f32.xlu1 %v4489_v10  ;;  %v8893_v60 = vpop.xlane.xlu0 %4343 }
 0x2e6   : > { %10504 = vst [vmem:[#allocation48_spill] sm:$0xff] %v8893_v60  ;;  %v8900_v10 = vpop.xlane.xlu1 %4388  ;;  %v4504_v60 = vsel %vm330_vm0, %v4162_v39, 0.0 }
 0x2e7   : > { %4493 = vadd.xlane.f32.xlu0 %v4492_v1  ;;  %10506 = vst [vmem:[#allocation52_spill] sm:$0xff] %v8900_v10 }
 0x2e9   : > { %4496 = vadd.xlane.f32.xlu1 %v4495_v14  ;;  %v8907_v1 = vpop.xlane.xlu0 %4391  ;;  %v10510_v14 = vld [vmem:[#allocation61_spill] sm:$0xff] }
 0x2ea   : > { %10508 = vst [vmem:[#allocation53_spill] sm:$0xff] %v8907_v1  ;;  %v4014_v10 = vcombine.high %v10510_v14, %v10510_v14  ;;  %v8916_v5 = vpop.xlane.xlu1 %4436  ;;  %v4507_v1 = vsel %vm330_vm0, %v4163_v44, 0.0  ;;  %v4165_v14 = vmul.f32 %v10495_v41, %v10514_v53 }
 0x2eb   : > { %4499 = vadd.xlane.f32.xlu0 %v4498_v50  ;;  %10511 = vst [vmem:[#allocation59_spill] sm:$0xff] %v8916_v5  ;;  %v4164_v50 = vmul.f32 %v10495_v41, %v10512_v37  ;;  %v10518_v37 = vcombine.low %v8559_v21, %v8562_v31 }
 0x2ec   : > { %v8933_v39 = vrot.slane %v4014_v10, %v10517_v54 }
 0x2ed   : > { %4502 = vadd.xlane.f32.xlu1 %v4501_v57  ;;  %v8923_v34 = vpop.xlane.xlu0 %4439  ;;  %v10515_v57 = vld [vmem:[#allocation75_spill] sm:$0xff]  ;;  %v4166_v44 = vmul.f32 %v10495_v41, %v10518_v37 }
 0x2ee   : > { %10513 = vst [vmem:[#allocation60_spill] sm:$0xff] %v8923_v34  ;;  %v1925_v5 = vcombine.high %v10516_v36, %v10515_v57  ;;  %v8935_v4 = vpop.xlane.xlu1 %4202  ;;  %v10519_v34 = vld [vmem:[#allocation12_spill] sm:$0xff]  ;;  %v4513_v36 = vsel %vm330_vm0, %v4165_v14, 0.0 }
 0x2ef   : > { %4505 = vadd.xlane.f32.xlu0 %v4504_v60  ;;  %v4510_v60 = vsel %vm330_vm0, %v4164_v50, 0.0  ;;  %v2061_v11 = vcombine.high %v10520_v20, %v10519_v34  ;;  %v10521_v20 = vcombine.high %v8354_v26, %v8360_v61  ;;  %v10523_v61 = vcombine.high %v8386_v35, %v8392_v27 }
 0x2f0   : > { %v4167_v54 = vmul.f32 %v8933_v39, %v1925_v5  ;;  %v10525_v35 = vcombine.high %v8417_v6, %v8423_v43  ;;  %v10529_v6 = vcombine.high %v8447_v56, %v8453_v40  ;;  %v10533_v40 = vcombine.high %v8495_v22, %v8501_v25 }
 0x2f1   : > { %4508 = vadd.xlane.f32.xlu1 %v4507_v1  ;;  %v8944_v53 = vpop.xlane.xlu0 %4205  ;;  %v4516_v1 = vsel %vm330_vm0, %v4166_v44, 0.0  ;;  %v4168_v50 = vmul.f32 %v8933_v39, %v2061_v11  ;;  %v4169_v34 = vmul.f32 %v8933_v39, %v10521_v20  ;;  %v4171_v26 = vmul.f32 %v8933_v39, %v10523_v61 }
 0x2f2   : > { %v4519_v41 = vsel %vm330_vm0, %v4167_v54, 0.0  ;;  %v4173_v27 = vmul.f32 %v8933_v39, %v10525_v35  ;;  %v4175_v43 = vmul.f32 %v8933_v39, %v10529_v6  ;;  %v4177_v56 = vmul.f32 %v8933_v39, %v10533_v40 }
 0x2f3   : > { %4511 = vadd.xlane.f32.xlu0 %v4510_v60  ;;  %v8948_v10 = vpop.xlane.xlu1 %4250  ;;  %v4522_v5 = vsel %vm330_vm0, %v4168_v50, 0.0  ;;  %v10522_v60 = vcombine.high %v8366_v7, %v8372_v30  ;;  %v4525_v44 = vsel %vm330_vm0, %v4169_v34, 0.0  ;;  %v10524_v30 = vcombine.high %v8402_v48, %v8408_v38 }
 0x2f4   : > { %v4531_v50 = vsel %vm330_vm0, %v4171_v26, 0.0  ;;  %v10527_v48 = vcombine.high %v8432_v3, %v8438_v13  ;;  %v10531_v13 = vcombine.high %v8479_v16, %v8485_v17  ;;  %v4543_v61 = vsel %vm330_vm0, %v4175_v43, 0.0 }
 0x2f5   : > { %4514 = vadd.xlane.f32.xlu1 %v4513_v36  ;;  %v8952_v57 = vpop.xlane.xlu0 %4253  ;;  %v4170_v11 = vmul.f32 %v8933_v39, %v10522_v60  ;;  %v4172_v7 = vmul.f32 %v8933_v39, %v10524_v30  ;;  %v10534_v16 = vcombine.high %v8511_v19, %v8517_v0  ;;  %v10535_v22 = vcombine.high %v8526_v28, %v8529_v49 }
 0x2f6   : > { %v4174_v38 = vmul.f32 %v8933_v39, %v10527_v48  ;;  %v4176_v3 = vmul.f32 %v8933_v39, %v10531_v13  ;;  %v10536_v19 = vcombine.high %v8535_v42, %v8538_v62  ;;  %v10537_v28 = vcombine.high %v8547_v2, %v8550_v63 }
 0x2f7   : > { %4517 = vadd.xlane.f32.xlu0 %v4516_v1  ;;  %v8959_v14 = vpop.xlane.xlu1 %4298  ;;  %v4528_v54 = vsel %vm330_vm0, %v4170_v11, 0.0  ;;  %v4534_v20 = vsel %vm330_vm0, %v4172_v7, 0.0  ;;  %v4178_v17 = vmul.f32 %v8933_v39, %v10534_v16  ;;  %v4549_v7 = vsel %vm330_vm0, %v4177_v56, 0.0 }
 0x2f8   : > { %v4540_v11 = vsel %vm330_vm0, %v4174_v38, 0.0  ;;  %v4179_v25 = vmul.f32 %v8933_v39, %v10535_v22  ;;  %v4180_v0 = vmul.f32 %v8933_v39, %v10536_v19  ;;  %v4181_v49 = vmul.f32 %v8933_v39, %v10537_v28 }
 0x2f9   : > { %4520 = vadd.xlane.f32.xlu1 %v4519_v41  ;;  %v8966_v37 = vpop.xlane.xlu0 %4301  ;;  %v4552_v35 = vsel %vm330_vm0, %v4178_v17, 0.0  ;;  %v10538_v42 = vcombine.high %v8559_v21, %v8562_v31  ;;  %v6437_v56 = vmov 0  }
 0x2fa   : > { %v4558_v38 = vsel %vm330_vm0, %v4180_v0, 0.0  ;;  %v4561_v6 = vsel %vm330_vm0, %v4181_v49, 0.0  ;;  %6292 = vset.pattern.permute.xlu0 %v6437_v56  ;;  %6293 = vset.pattern.permute.xlu1 %v6437_v56 }
 0x2fb   : > { %4523 = vadd.xlane.f32.xlu0 %v4522_v5  ;;  %v8973_v36 = vpop.xlane.xlu1 %4346  ;;  %v4537_v5 = vsel %vm330_vm0, %v4173_v27, 0.0  ;;  %v4182_v62 = vmul.f32 %v8933_v39, %v10538_v42 }
 0x2fd   : > { %4526 = vadd.xlane.f32.xlu1 %v4525_v44  ;;  %v8980_v1 = vpop.xlane.xlu0 %4349  ;;  %v4564_v2 = vsel %vm330_vm0, %v4182_v62, 0.0 }
 0x2ff   : > { %4529 = vadd.xlane.f32.xlu0 %v4528_v54  ;;  %v8987_v41 = vpop.xlane.xlu1 %4394  ;;  %v4546_v54 = vsel %vm330_vm0, %v4176_v3, 0.0  ;;  %v6092_v3 = vld [vmem:[%s9916_s2] ss:$0 sm:$0xff] }
 0x300   : > { %10526 = vst [vmem:[#allocation70_spill] sm:$0xff] %v8987_v41 }
 0x301   : > { %4532 = vadd.xlane.f32.xlu1 %v4531_v50  ;;  %v8994_v34 = vpop.xlane.xlu0 %4397 }
 0x302   : > { %10528 = vst [vmem:[#allocation69_spill] sm:$0xff] %v8994_v34 }
 0x303   : > { %4535 = vadd.xlane.f32.xlu0 %v4534_v20  ;;  %v9001_v60 = vpop.xlane.xlu1 %4442  ;;  %v4555_v20 = vsel %vm330_vm0, %v4179_v25, 0.0  ;;  %vm5956_vm0 = vcmask 1041409  }
 0x304   : > { %10530 = vst [vmem:[#allocation67_spill] sm:$0xff] %v9001_v60 }
 0x305   : > { %4538 = vadd.xlane.f32.xlu1 %v4537_v5  ;;  %v9008_v44 = vpop.xlane.xlu0 %4445 }
 0x306   : > { %10532 = vst [vmem:[#allocation68_spill] sm:$0xff] %v9008_v44 }
 0x307   : > { %4541 = vadd.xlane.f32.xlu0 %v4540_v11  ;;  %v9015_v26 = vpop.xlane.xlu1 %4208 }
 0x309   : > { %4544 = vadd.xlane.f32.xlu1 %v4543_v61  ;;  %v9022_v30 = vpop.xlane.xlu0 %4211 }
 0x30b   : > { %4547 = vadd.xlane.f32.xlu0 %v4546_v54  ;;  %v9029_v50 = vpop.xlane.xlu1 %4256 }
 0x30d   : > { %4550 = vadd.xlane.f32.xlu1 %v4549_v7  ;;  %v9036_v27 = vpop.xlane.xlu0 %4259 }
 0x30f   : > { %4553 = vadd.xlane.f32.xlu0 %v4552_v35  ;;  %v9043_v48 = vpop.xlane.xlu1 %4304 }
 0x311   : > { %4556 = vadd.xlane.f32.xlu1 %v4555_v20  ;;  %v9050_v5 = vpop.xlane.xlu0 %4307 }
 0x313   : > { %4559 = vadd.xlane.f32.xlu0 %v4558_v38 }
 0x315   : > { %4562 = vadd.xlane.f32.xlu1 %v4561_v6  ;;  %v9053_v43 = vpop.xlane.xlu1 %4352 }
 0x317   : > { %4565 = vadd.xlane.f32.xlu0 %v4564_v2 }
 0x318   : > { %v9056_v63 = vpop.xlane.xlu0 %4355 }
 0x31a   : > { %v9058_v11 = vpop.xlane.xlu1 %4400 }
 0x31b   : > { %10539 = vst [vmem:[#allocation72_spill] sm:$0xff] %v9058_v11 }
 0x31c   : > { %v9060_v13 = vpop.xlane.xlu0 %4403 }
 0x31d   : > { %10540 = vst [vmem:[#allocation73_spill] sm:$0xff] %v9060_v13 }
 0x31e   : > { %v9062_v21 = vpop.xlane.xlu1 %4448 }
 0x31f   : > { %10541 = vst [vmem:[#allocation77_spill] sm:$0xff] %v9062_v21 }
 0x320   : > { %v9064_v31 = vpop.xlane.xlu0 %4451 }
 0x321   : > { %10542 = vst [vmem:[#allocation78_spill] sm:$0xff] %v9064_v31 }
 0x322   : > { %v9066_v39 = vpop.xlane.xlu1 %4214 }
 0x324   : > { %v9071_v61 = vpop.xlane.xlu0 %4217 }
 0x326   : > { %v9073_v40 = vpop.xlane.xlu1 %4262  ;;  %4574 = vbcast.lane.b32.xlu1 %v6092_v3, 256 }
 0x328   : > { %v9075_v54 = vpop.xlane.xlu0 %4265 }
 0x32a   : > { %v9077_v16 = vpop.xlane.xlu1 %4310  ;;  %4582 = vbcast.lane.b32.xlu1 %v6092_v3, 272 }
 0x32c   : > { %v9079_v17 = vpop.xlane.xlu0 %4313 }
 0x32d   : > { %4578 = vbcast.lane.b32.xlu0 %v6092_v3, 264 }
 0x32e   : > { %v9081_v7 = vpop.xlane.xlu1 %4358  ;;  %4586 = vbcast.lane.b32.xlu1 %v6092_v3, 280 }
 0x330   : > { %v9083_v22 = vpop.xlane.xlu0 %4361 }
 0x331   : > { %10543 = vst [vmem:[#allocation83_spill] sm:$0xff] %v9083_v22  ;;  %4590 = vbcast.lane.b32.xlu0 %v6092_v3, 288 }
 0x332   : > { %v9085_v25 = vpop.xlane.xlu1 %4406  ;;  %4594 = vbcast.lane.b32.xlu1 %v6092_v3, 296 }
 0x333   : > { %10544 = vst [vmem:[#allocation11_spill] sm:$0xff] %v9085_v25 }
 0x334   : > { %v9087_v35 = vpop.xlane.xlu0 %4409 }
 0x335   : > { %10545 = vst [vmem:[#allocation81_spill] sm:$0xff] %v9087_v35  ;;  %4598 = vbcast.lane.b32.xlu0 %v6092_v3, 304 }
 0x336   : > { %v9089_v19 = vpop.xlane.xlu1 %4454  ;;  %4602 = vbcast.lane.b32.xlu1 %v6092_v3, 312 }
 0x337   : > { %10546 = vst [vmem:[#allocation82_spill] sm:$0xff] %v9089_v19 }
 0x338   : > { %v9091_v0 = vpop.xlane.xlu0 %4457 }
 0x339   : > { %10547 = vst [vmem:[#allocation13_spill] sm:$0xff] %v9091_v0  ;;  %4606 = vbcast.lane.b32.xlu0 %v6092_v3, 320 }
 0x33a   : > { %v9093_v20 = vpop.xlane.xlu1 %4220  ;;  %4610 = vbcast.lane.b32.xlu1 %v6092_v3, 328 }
 0x33c   : > { %v9095_v28 = vpop.xlane.xlu0 %4223 }
 0x33d   : > { %4614 = vbcast.lane.b32.xlu0 %v6092_v3, 336 }
 0x33e   : > { %v9097_v49 = vpop.xlane.xlu1 %4268  ;;  %4618 = vbcast.lane.b32.xlu1 %v6092_v3, 344 }
 0x340   : > { %v9099_v38 = vpop.xlane.xlu0 %4271 }
 0x341   : > { %4622 = vbcast.lane.b32.xlu0 %v6092_v3, 352 }
 0x342   : > { %v9101_v42 = vpop.xlane.xlu1 %4316  ;;  %4626 = vbcast.lane.b32.xlu1 %v6092_v3, 360 }
 0x344   : > { %v9103_v62 = vpop.xlane.xlu0 %4319 }
 0x345   : > { %4630 = vbcast.lane.b32.xlu0 %v6092_v3, 368 }
 0x346   : > { %v9105_v6 = vpop.xlane.xlu1 %4364  ;;  %4634 = vbcast.lane.b32.xlu1 %v6092_v3, 376 }
 0x347   : > { %10548 = vst [vmem:[#allocation32_spill] sm:$0xff] %v9105_v6 }
 0x348   : > { %v9107_v2 = vpop.xlane.xlu0 %4367 }
 0x349   : > { %10549 = vst [vmem:[#allocation14_spill] sm:$0xff] %v9107_v2 }
 0x34a   : > { %v9109_v56 = vpop.xlane.xlu1 %4412 }
 0x34b   : > { %10550 = vst [vmem:[#allocation84_spill] sm:$0xff] %v9109_v56 }
 0x34c   : > { %v9111_v0 = vpop.xlane.xlu0 %4415 }
 0x34d   : > { %10551 = vst [vmem:[#allocation43_spill] sm:$0xff] %v9111_v0 }
 0x34e   : > { %v9113_v19 = vpop.xlane.xlu1 %4460 }
 0x34f   : > { %10552 = vst [vmem:[#allocation42_spill] sm:$0xff] %v9113_v19 }
 0x350   : > { %v9115_v31 = vpop.xlane.xlu0 %4463 }
 0x351   : > { %10553 = vst [vmem:[#allocation88_spill] sm:$0xff] %v9115_v31 }
 0x352   : > { %v9117_v21 = vpop.xlane.xlu1 %4226 }
 0x354   : > { %v9119_v44 = vpop.xlane.xlu0 %4229 }
 0x356   : > { %v9121_v60 = vpop.xlane.xlu1 %4274 }
 0x358   : > { %v9123_v35 = vpop.xlane.xlu0 %4277 }
 0x35a   : > { %v9125_v25 = vpop.xlane.xlu1 %4322 }
 0x35c   : > { %v9127_v3 = vpop.xlane.xlu0 %4325 }
 0x35e   : > { %v9129_v13 = vpop.xlane.xlu1 %4370 }
 0x35f   : > { %10554 = vst [vmem:[#allocation89_spill] sm:$0xff] %v9129_v13 }
 0x360   : > { %v9131_v56 = vpop.xlane.xlu0 %4373 }
 0x361   : > { %10555 = vst [vmem:[#allocation15_spill] sm:$0xff] %v9131_v56 }
 0x362   : > { %v9133_v0 = vpop.xlane.xlu1 %4418 }
 0x363   : > { %10556 = vst [vmem:[#allocation91_spill] sm:$0xff] %v9133_v0 }
 0x364   : > { %v9135_v19 = vpop.xlane.xlu0 %4421 }
 0x365   : > { %10557 = vst [vmem:[#allocation86_spill] sm:$0xff] %v9135_v19 }
 0x366   : > { %v9137_v31 = vpop.xlane.xlu1 %4466 }
 0x367   : > { %10558 = vst [vmem:[#allocation39_spill] sm:$0xff] %v9137_v31 }
 0x368   : > { %v9139_v11 = vpop.xlane.xlu0 %4469 }
 0x369   : > { %10559 = vst [vmem:[#allocation87_spill] sm:$0xff] %v9139_v11 }
 0x36a   : > { %v9141_v34 = vpop.xlane.xlu1 %4478 }
 0x36b   : > { %10560 = vst [vmem:[#allocation16_spill] sm:$0xff] %v9141_v34 }
 0x36c   : > { %v9143_v41 = vpop.xlane.xlu0 %4481 }
 0x36d   : > { %10561 = vst [vmem:[#allocation17_spill] sm:$0xff] %v9143_v41 }
 0x36e   : > { %v9145_v2 = vpop.xlane.xlu1 %4484 }
 0x36f   : > { %10562 = vst [vmem:[#allocation90_spill] sm:$0xff] %v9145_v2 }
 0x370   : > { %v9147_v6 = vpop.xlane.xlu0 %4487 }
 0x371   : > { %10563 = vst [vmem:[#allocation44_spill] sm:$0xff] %v9147_v6 }
 0x372   : > { %v9149_v22 = vpop.xlane.xlu1 %4490 }
 0x373   : > { %10564 = vst [vmem:[#allocation49_spill] sm:$0xff] %v9149_v22 }
 0x374   : > { %v9151_v13 = vpop.xlane.xlu0 %4493 }
 0x375   : > { %10565 = vst [vmem:[#allocation45_spill] sm:$0xff] %v9151_v13 }
 0x376   : > { %v9153_v56 = vpop.xlane.xlu1 %4496 }
 0x377   : > { %10566 = vst [vmem:[#allocation92_spill] sm:$0xff] %v9153_v56 }
 0x378   : > { %v9155_v0 = vpop.xlane.xlu0 %4499 }
 0x379   : > { %10567 = vst [vmem:[#allocation46_spill] sm:$0xff] %v9155_v0 }
 0x37a   : > { %v9157_v19 = vpop.xlane.xlu1 %4502 }
 0x37b   : > { %10568 = vst [vmem:[#allocation54_spill] sm:$0xff] %v9157_v19 }
 0x37c   : > { %v9159_v31 = vpop.xlane.xlu0 %4505 }
 0x37d   : > { %10569 = vst [vmem:[#allocation56_spill] sm:$0xff] %v9159_v31 }
 0x37e   : > { %v9161_v11 = vpop.xlane.xlu1 %4508 }
 0x37f   : > { %10570 = vst [vmem:[#allocation57_spill] sm:$0xff] %v9161_v11 }
 0x380   : > { %v9163_v34 = vpop.xlane.xlu0 %4511 }
 0x381   : > { %10571 = vst [vmem:[#allocation58_spill] sm:$0xff] %v9163_v34 }
 0x382   : > { %v9165_v41 = vpop.xlane.xlu1 %4514 }
 0x383   : > { %10572 = vst [vmem:[#allocation65_spill] sm:$0xff] %v9165_v41 }
 0x384   : > { %v9167_v2 = vpop.xlane.xlu0 %4517 }
 0x385   : > { %10573 = vst [vmem:[#allocation62_spill] sm:$0xff] %v9167_v2 }
 0x386   : > { %v9169_v6 = vpop.xlane.xlu1 %4520 }
 0x387   : > { %10574 = vst [vmem:[#allocation18_spill] sm:$0xff] %v9169_v6 }
 0x388   : > { %v9171_v22 = vpop.xlane.xlu0 %4523 }
 0x389   : > { %10575 = vst [vmem:[#allocation20_spill] sm:$0xff] %v9171_v22 }
 0x38a   : > { %v9173_v13 = vpop.xlane.xlu1 %4526 }
 0x38b   : > { %10576 = vst [vmem:[#allocation63_spill] sm:$0xff] %v9173_v13 }
 0x38c   : > { %v9175_v56 = vpop.xlane.xlu0 %4529 }
 0x38d   : > { %10577 = vst [vmem:[#allocation66_spill] sm:$0xff] %v9175_v56 }
 0x38e   : > { %v9177_v0 = vpop.xlane.xlu1 %4532 }
 0x38f   : > { %10578 = vst [vmem:[#allocation19_spill] sm:$0xff] %v9177_v0 }
 0x390   : > { %v9179_v19 = vpop.xlane.xlu0 %4535 }
 0x391   : > { %10579 = vst [vmem:[#allocation21_spill] sm:$0xff] %v9179_v19 }
 0x392   : > { %v9181_v31 = vpop.xlane.xlu1 %4538 }
 0x394   : > { %v9183_v11 = vpop.xlane.xlu0 %4541 }
 0x395   : > { %10580 = vst [vmem:[#allocation76_spill] sm:$0xff] %v9183_v11 }
 0x396   : > { %v9185_v34 = vpop.xlane.xlu1 %4544 }
 0x397   : > { %10581 = vst [vmem:[#allocation24_spill] sm:$0xff] %v9185_v34 }
 0x398   : > { %v9187_v41 = vpop.xlane.xlu0 %4547 }
 0x399   : > { %10582 = vst [vmem:[#allocation22_spill] sm:$0xff] %v9187_v41 }
 0x39a   : > { %v9189_v2 = vpop.xlane.xlu1 %4550 }
 0x39b   : > { %10583 = vst [vmem:[#allocation29_spill] sm:$0xff] %v9189_v2 }
 0x39c   : > { %v9191_v6 = vpop.xlane.xlu0 %4553 }
 0x39d   : > { %10584 = vst [vmem:[#allocation80_spill] sm:$0xff] %v9191_v6 }
 0x39e   : > { %v9193_v22 = vpop.xlane.xlu1 %4556 }
 0x39f   : > { %10585 = vst [vmem:[#allocation79_spill] sm:$0xff] %v9193_v22 }
 0x3a0   : > { %v9195_v13 = vpop.xlane.xlu0 %4559 }
 0x3a1   : > { %10586 = vst [vmem:[#allocation31_spill] sm:$0xff] %v9195_v13 }
 0x3a2   : > { %v9197_v56 = vpop.xlane.xlu1 %4562 }
 0x3a3   : > { %10587 = vst [vmem:[#allocation23_spill] sm:$0xff] %v9197_v56 }
 0x3a4   : > { %v9199_v0 = vpop.xlane.xlu0 %4565 }
 0x3a5   : > { %10588 = vst [vmem:[#allocation25_spill] sm:$0xff] %v9199_v0 }
 0x3a6   : > { %v9201_v19 = vpop.permute.xlu1 %4574 }
 0x3a7   : > { %v4652_v11 = vadd.f32 %v9201_v19, %v8657_v23 }
 0x3a8   : > { %v9205_v34 = vpop.permute.xlu0 %4578 }
 0x3a9   : > { %4909 = vperm.xlu0 %6292, %v4652_v11   ;;  %v4653_v2 = vadd.f32 %v9205_v34, %v8676_v15 }
 0x3aa   : > { %v9209_v6 = vpop.permute.xlu1 %4582 }
 0x3ab   : > { %4912 = vperm.xlu1 %6293, %v4653_v2   ;;  %v4654_v56 = vadd.f32 %v9209_v6, %v8753_v18 }
 0x3ac   : > { %v9211_v22 = vpop.permute.xlu0 %4590 }
 0x3ad   : > { %v4656_v15 = vadd.f32 %v9211_v22, %v8844_v9 }
 0x3ae   : > { %v9215_v0 = vpop.permute.xlu1 %4586 }
 0x3af   : > { %4915 = vperm.xlu1 %6293, %v4654_v56   ;;  %v4655_v23 = vadd.f32 %v9215_v0, %v8767_v47 }
 0x3b0   : > { %v9219_v13 = vpop.permute.xlu0 %4598 }
 0x3b1   : > { %4918 = vperm.xlu0 %6292, %v4655_v23   ;;  %v4658_v18 = vadd.f32 %v9219_v13, %v8935_v4 }
 0x3b2   : > { %v9223_v11 = vpop.permute.xlu1 %4594 }
 0x3b3   : > { %4921 = vperm.xlu1 %6293, %v4656_v15   ;;  %v4657_v2 = vadd.f32 %v9223_v11, %v8851_v29 }
 0x3b4   : > { %v9227_v41 = vpop.permute.xlu0 %4606 }
 0x3b5   : > { %4924 = vperm.xlu0 %6292, %v4657_v2   ;;  %v4660_v9 = vadd.f32 %v9227_v41, %v9015_v26 }
 0x3b6   : > { %v9231_v56 = vpop.permute.xlu1 %4602 }
 0x3b7   : > { %4927 = vperm.xlu1 %6293, %v4658_v18   ;;  %v4659_v47 = vadd.f32 %v9231_v56, %v8944_v53 }
 0x3b8   : > { %v9235_v23 = vpop.permute.xlu0 %4614 }
 0x3b9   : > { %4930 = vperm.xlu0 %6292, %v4659_v47   ;;  %v4662_v4 = vadd.f32 %v9235_v23, %v9066_v39  ;;  %v4668_v39 = vadd.f32 %v9201_v19, %v8690_v33  ;;  %v4670_v33 = vadd.f32 %v9209_v6, %v8774_v59  ;;  %v4675_v59 = vadd.f32 %v9231_v56, %v8952_v57 }
 0x3ba   : > { %v9239_v15 = vpop.permute.xlu1 %4610 }
 0x3bb   : > { %4933 = vperm.xlu1 %6293, %v4660_v9   ;;  %v4661_v29 = vadd.f32 %v9239_v15, %v9022_v30 }
 0x3bc   : > { %v9245_v2 = vpop.permute.xlu0 %4622 }
 0x3bd   : > { %4936 = vperm.xlu0 %6292, %v4661_v29   ;;  %v4664_v26 = vadd.f32 %v9245_v2, %v9093_v20  ;;  %v4680_v57 = vadd.f32 %v9245_v2, %v9097_v49  ;;  %v4685_v49 = vadd.f32 %v9205_v34, %v8683_v51  ;;  %v4690_v51 = vadd.f32 %v9219_v13, %v8959_v14 }
 0x3be   : > { %v9247_v18 = vpop.permute.xlu1 %4618 }
 0x3bf   : > { %4939 = vperm.xlu1 %6293, %v4662_v4   ;;  %v4663_v53 = vadd.f32 %v9247_v18, %v9071_v61  ;;  %v4671_v4 = vadd.f32 %v9215_v0, %v8781_v52  ;;  %v4676_v52 = vadd.f32 %v9227_v41, %v9029_v50  ;;  %v4695_v14 = vadd.f32 %v9247_v18, %v9079_v17 }
 0x3c0   : > { %v9259_v9 = vpop.permute.xlu0 %4630 }
 0x3c1   : > { %4942 = vperm.xlu0 %6292, %v4663_v53   ;;  %v4666_v20 = vadd.f32 %v9259_v9, %v9117_v21  ;;  %v4673_v21 = vadd.f32 %v9223_v11, %v8865_v45  ;;  %v4678_v45 = vadd.f32 %v9235_v23, %v9073_v40  ;;  %v10589_v53 = vld [vmem:[#allocation36_spill] sm:$0xff] }
 0x3c2   : > { %v9253_v47 = vpop.permute.xlu1 %4626  ;;  %v4700_v17 = vadd.f32 %v9201_v19, %v10589_v53 }
 0x3c3   : > { %4945 = vperm.xlu1 %6293, %v4664_v26   ;;  %v4665_v30 = vadd.f32 %v9253_v47, %v9095_v28  ;;  %v4669_v28 = vadd.f32 %v9205_v34, %v8669_v46  ;;  %v4674_v46 = vadd.f32 %v9219_v13, %v8948_v10  ;;  %v4679_v10 = vadd.f32 %v9247_v18, %v9075_v54  ;;  %v10590_v26 = vld [vmem:[#allocation27_spill] sm:$0xff] }
 0x3c4   : > { %v4681_v50 = vadd.f32 %v9253_v47, %v9099_v38  ;;  %v4684_v54 = vadd.f32 %v9201_v19, %v8704_v24  ;;  %v4686_v38 = vadd.f32 %v9209_v6, %v8788_v58  ;;  %v4689_v24 = vadd.f32 %v9223_v11, %v8879_v55 }
 0x3c5   : > { %4948 = vperm.xlu0 %6292, %v4665_v30   ;;  %v4691_v58 = vadd.f32 %v9231_v56, %v8966_v37  ;;  %v4694_v55 = vadd.f32 %v9235_v23, %v9077_v16  ;;  %v4696_v37 = vadd.f32 %v9245_v2, %v9101_v42  ;;  %v4701_v42 = vadd.f32 %v9205_v34, %v10590_v26  ;;  %v10591_v30 = vld [vmem:[#allocation85_spill] sm:$0xff] }
 0x3c6   : > { %v9261_v29 = vpop.permute.xlu1 %4634 }
 0x3c7   : > { %4957 = vperm.xlu1 %6293, %v4668_v39   ;;  %v4667_v61 = vadd.f32 %v9261_v29, %v9119_v44  ;;  %v4672_v44 = vadd.f32 %v9211_v22, %v8858_v8  ;;  %v4677_v8 = vadd.f32 %v9239_v15, %v9036_v27  ;;  %v4682_v27 = vadd.f32 %v9259_v9, %v9121_v60  ;;  %v10592_v39 = vld [vmem:[#allocation30_spill] sm:$0xff] }
 0x3c8   : > { %v4683_v40 = vadd.f32 %v9261_v29, %v9123_v35  ;;  %v4687_v60 = vadd.f32 %v9215_v0, %v8795_v32  ;;  %v4688_v35 = vadd.f32 %v9211_v22, %v8872_v12  ;;  %v4692_v32 = vadd.f32 %v9227_v41, %v9043_v48 }
 0x3c9   : > { %4954 = vperm.xlu0 %6292, %v4667_v61   ;;  %v4693_v12 = vadd.f32 %v9239_v15, %v9050_v5  ;;  %v4697_v48 = vadd.f32 %v9253_v47, %v9103_v62  ;;  %v4698_v5 = vadd.f32 %v9259_v9, %v9125_v25  ;;  %v4699_v16 = vadd.f32 %v9261_v29, %v9127_v3  ;;  %v10593_v61 = vld [vmem:[#allocation47_spill] sm:$0xff] }
 0x3ca   : > { %v4702_v62 = vadd.f32 %v9209_v6, %v10591_v30  ;;  %v4703_v25 = vadd.f32 %v9215_v0, %v10592_v39  ;;  %v4704_v3 = vadd.f32 %v9211_v22, %v10593_v61  ;;  %v10608_v30 = vld [vmem:[#allocation72_spill] sm:$0xff] }
 0x3cb   : > { %4951 = vperm.xlu1 %6293, %v4666_v20   ;;  %v10594_v20 = vld [vmem:[#allocation48_spill] sm:$0xff] }
 0x3cd   : > { %4960 = vperm.xlu0 %6292, %v4669_v28   ;;  %v4705_v28 = vadd.f32 %v9223_v11, %v10594_v20  ;;  %v10610_v20 = vld [vmem:[#allocation11_spill] sm:$0xff] }
 0x3cf   : > { %4963 = vperm.xlu1 %6293, %v4670_v33   ;;  %v4706_v33 = vadd.f32 %v9219_v13, %v8973_v36 }
 0x3d1   : > { %4966 = vperm.xlu0 %6292, %v4671_v4   ;;  %v4707_v4 = vadd.f32 %v9231_v56, %v8980_v1 }
 0x3d3   : > { %4969 = vperm.xlu1 %6293, %v4672_v44   ;;  %v4708_v44 = vadd.f32 %v9227_v41, %v9053_v43 }
 0x3d5   : > { %4972 = vperm.xlu0 %6292, %v4673_v21   ;;  %v4709_v21 = vadd.f32 %v9239_v15, %v9056_v63 }
 0x3d7   : > { %4975 = vperm.xlu1 %6293, %v4674_v46   ;;  %v4710_v46 = vadd.f32 %v9235_v23, %v9081_v7 }
 0x3d9   : > { %4978 = vperm.xlu0 %6292, %v4675_v59   ;;  %v10595_v59 = vld [vmem:[#allocation83_spill] sm:$0xff] }
 0x3da   : > { %v4711_v36 = vadd.f32 %v9247_v18, %v10595_v59 }
 0x3db   : > { %4981 = vperm.xlu1 %6293, %v4676_v52   ;;  %v10596_v52 = vld [vmem:[#allocation32_spill] sm:$0xff] }
 0x3dc   : > { %v4712_v1 = vadd.f32 %v9245_v2, %v10596_v52  ;;  %v10613_v52 = vlaneseq }
 0x3dd   : > { %4984 = vperm.xlu0 %6292, %v4677_v8   ;;  %v10597_v8 = vld [vmem:[#allocation14_spill] sm:$0xff] }
 0x3de   : > { %v4713_v43 = vadd.f32 %v9253_v47, %v10597_v8  ;;  %v10614_v8 = vld [vmem:[#allocation43_spill] sm:$0xff] }
 0x3df   : > { %4987 = vperm.xlu1 %6293, %v4678_v45   ;;  %v10598_v45 = vld [vmem:[#allocation89_spill] sm:$0xff] }
 0x3e0   : > { %v4714_v63 = vadd.f32 %v9259_v9, %v10598_v45 }
 0x3e1   : > { %4990 = vperm.xlu0 %6292, %v4679_v10   ;;  %v10599_v10 = vld [vmem:[#allocation15_spill] sm:$0xff] }
 0x3e2   : > { %v4715_v7 = vadd.f32 %v9261_v29, %v10599_v10 }
 0x3e3   : > { %4993 = vperm.xlu1 %6293, %v4680_v57   ;;  %v10600_v57 = vld [vmem:[#allocation33_spill] sm:$0xff] }
 0x3e5   : > { %4996 = vperm.xlu0 %6292, %v4681_v50   ;;  %v4716_v50 = vadd.f32 %v9201_v19, %v10600_v57 }
 0x3e7   : > { %4999 = vperm.xlu1 %6293, %v4682_v27  }
 0x3e9   : > { %5002 = vperm.xlu0 %6292, %v4683_v40   ;;  %v10601_v40 = vld [vmem:[#allocation28_spill] sm:$0xff] }
 0x3eb   : > { %5005 = vperm.xlu1 %6293, %v4684_v54   ;;  %v4717_v54 = vadd.f32 %v9205_v34, %v10601_v40 }
 0x3ed   : > { %5008 = vperm.xlu0 %6292, %v4685_v49  }
 0x3ef   : > { %5011 = vperm.xlu1 %6293, %v4686_v38   ;;  %v10602_v38 = vld [vmem:[#allocation40_spill] sm:$0xff] }
 0x3f1   : > { %5014 = vperm.xlu0 %6292, %v4687_v60   ;;  %v4718_v60 = vadd.f32 %v9209_v6, %v10602_v38 }
 0x3f3   : > { %5017 = vperm.xlu1 %6293, %v4688_v35  }
 0x3f5   : > { %5020 = vperm.xlu0 %6292, %v4689_v24   ;;  %v10603_v24 = vld [vmem:[#allocation41_spill] sm:$0xff] }
 0x3f7   : > { %5023 = vperm.xlu1 %6293, %v4690_v51   ;;  %v4719_v51 = vadd.f32 %v9215_v0, %v10603_v24 }
 0x3f9   : > { %5026 = vperm.xlu0 %6292, %v4691_v58  }
 0x3fb   : > { %5029 = vperm.xlu1 %6293, %v4692_v32   ;;  %v10604_v32 = vld [vmem:[#allocation52_spill] sm:$0xff] }
 0x3fd   : > { %5032 = vperm.xlu0 %6292, %v4693_v12   ;;  %v4720_v12 = vadd.f32 %v9211_v22, %v10604_v32  ;;  %v10618_v32 = vld [vmem:[#allocation26_spill] sm:$0xff] }
 0x3ff   : > { %5035 = vperm.xlu1 %6293, %v4694_v55  }
 0x401   : > { %5038 = vperm.xlu0 %6292, %v4695_v14   ;;  %v10605_v14 = vld [vmem:[#allocation53_spill] sm:$0xff] }
 0x403   : > { %5041 = vperm.xlu1 %6293, %v4696_v37   ;;  %v4721_v37 = vadd.f32 %v9223_v11, %v10605_v14 }
 0x405   : > { %5044 = vperm.xlu0 %6292, %v4697_v48  }
 0x407   : > { %5047 = vperm.xlu1 %6293, %v4698_v5   ;;  %v10606_v5 = vld [vmem:[#allocation70_spill] sm:$0xff] }
 0x409   : > { %5050 = vperm.xlu0 %6292, %v4699_v16   ;;  %v4722_v16 = vadd.f32 %v9219_v13, %v10606_v5 }
 0x40b   : > { %5053 = vperm.xlu1 %6293, %v4700_v17   ;;  %v10607_v17 = vld [vmem:[#allocation69_spill] sm:$0xff] }
 0x40c   : > { %v4723_v26 = vadd.f32 %v9231_v56, %v10607_v17 }
 0x40d   : > { %5056 = vperm.xlu0 %6292, %v4701_v42  }
 0x40f   : > { %5059 = vperm.xlu1 %6293, %v4702_v62   ;;  %v4724_v62 = vadd.f32 %v9227_v41, %v10608_v30 }
 0x411   : > { %5062 = vperm.xlu0 %6292, %v4703_v25   ;;  %v10609_v25 = vld [vmem:[#allocation73_spill] sm:$0xff] }
 0x412   : > { %v4725_v61 = vadd.f32 %v9239_v15, %v10609_v25  ;;  %v10620_v25 = vld [vmem:[#allocation51_spill] sm:$0xff] }
 0x413   : > { %5065 = vperm.xlu1 %6293, %v4704_v3  }
 0x415   : > { %5068 = vperm.xlu0 %6292, %v4705_v28   ;;  %v4726_v28 = vadd.f32 %v9235_v23, %v10610_v20 }
 0x417   : > { %5071 = vperm.xlu1 %6293, %v4706_v33  }
 0x419   : > { %5074 = vperm.xlu0 %6292, %v4707_v4   ;;  %v10611_v4 = vld [vmem:[#allocation81_spill] sm:$0xff] }
 0x41b   : > { %5077 = vperm.xlu1 %6293, %v4708_v44   ;;  %v4727_v44 = vadd.f32 %v9247_v18, %v10611_v4 }
 0x41d   : > { %5080 = vperm.xlu0 %6292, %v4709_v21  }
 0x41f   : > { %5083 = vperm.xlu1 %6293, %v4710_v46   ;;  %v10612_v46 = vld [vmem:[#allocation84_spill] sm:$0xff] }
 0x420   : > { %v4728_v59 = vadd.f32 %v9245_v2, %v10612_v46 }
 0x421   : > { %5086 = vperm.xlu0 %6292, %v4711_v36  }
 0x423   : > { %5089 = vperm.xlu1 %6293, %v4712_v1   ;;  %v9414_v1 = vand.u32 127, %v10613_v52 }
 0x425   : > { %5092 = vperm.xlu0 %6292, %v4713_v43   ;;  %v4729_v43 = vadd.f32 %v9253_v47, %v10614_v8  ;;  %v5298_v57 = vadd.s32 4294967288, %v9414_v1  ;;  %v5305_v38 = vadd.s32 4294967280, %v9414_v1  ;;  %v5312_v14 = vadd.s32 4294967272, %v9414_v1 }
 0x426   : > { %v5319_v17 = vadd.s32 4294967264, %v9414_v1 }
 0x427   : > { %5095 = vperm.xlu1 %6293, %v4714_v63   ;;  %v10615_v63 = vld [vmem:[#allocation91_spill] sm:$0xff]  ;;  %v9444_v30 = vsub.s32 %v5305_v38, %v10618_v32  ;;  %v9451_v4 = vsub.s32 %v5312_v14, %v10618_v32 }
 0x428   : > { %v9367_v49 = vpop.permute.xlu0 %4909  ;;  %v4730_v10 = vadd.f32 %v9259_v9, %v10615_v63  ;;  %v9458_v8 = vsub.s32 %v5319_v17, %v10618_v32  ;;  %v5347_v17 = vadd.s32 4294967232, %v9414_v1 }
 0x429   : > { %5098 = vperm.xlu0 %6292, %v4715_v7  }
 0x42a   : > { %v9363_v27 = vpop.permute.xlu1 %4912 }
 0x42b   : > { %5101 = vperm.xlu1 %6293, %v4716_v50   ;;  %v10616_v50 = vld [vmem:[#allocation86_spill] sm:$0xff] }
 0x42c   : > { %v4731_v40 = vadd.f32 %v9261_v29, %v10616_v50  ;;  %v10622_v50 = vld [vmem:[#allocation59_spill] sm:$0xff] }
 0x42d   : > { %5104 = vperm.xlu0 %6292, %v4717_v54  }
 0x42e   : > { %v9371_v35 = vpop.permute.xlu1 %4915 }
 0x42f   : > { %5107 = vperm.xlu1 %6293, %v4718_v60   ;;  %v10617_v60 = vld [vmem:[#allocation37_spill] sm:$0xff] }
 0x430   : > { %v9375_v58 = vpop.permute.xlu0 %4918  ;;  %v4732_v24 = vadd.f32 %v9201_v19, %v10617_v60 }
 0x431   : > { %5110 = vperm.xlu0 %6292, %v4719_v51  }
 0x432   : > { %v9379_v55 = vpop.permute.xlu1 %4921 }
 0x433   : > { %5113 = vperm.xlu1 %6293, %v4720_v12   ;;  %v9433_v12 = vsub.s32 %v5298_v57, %v10618_v32 }
 0x434   : > { %v9383_v48 = vpop.permute.xlu0 %4924 }
 0x435   : > { %5116 = vperm.xlu0 %6292, %v4721_v37   ;;  %v10619_v37 = vld [vmem:[#allocation35_spill] sm:$0xff] }
 0x436   : > { %v9387_v53 = vpop.permute.xlu1 %4927  ;;  %v4733_v5 = vadd.f32 %v9205_v34, %v10619_v37  ;;  %v10623_v37 = vld [vmem:[#allocation60_spill] sm:$0xff] }
 0x437   : > { %5119 = vperm.xlu1 %6293, %v4722_v16   ;;  %v9440_v16 = vsub.s32 %v9414_v1, %v10618_v32 }
 0x438   : > { %v9391_v42 = vpop.permute.xlu0 %4930 }
 0x439   : > { %5122 = vperm.xlu0 %6292, %v4723_v26  }
 0x43a   : > { %v9395_v39 = vpop.permute.xlu1 %4933 }
 0x43b   : > { %5125 = vperm.xlu1 %6293, %v4724_v62  }
 0x43c   : > { %v9399_v3 = vpop.permute.xlu0 %4936 }
 0x43d   : > { %5128 = vperm.xlu0 %6292, %v4725_v61   ;;  %v4734_v61 = vadd.f32 %v9209_v6, %v10620_v25 }
 0x43e   : > { %v9403_v33 = vpop.permute.xlu1 %4939 }
 0x43f   : > { %5131 = vperm.xlu1 %6293, %v4726_v28  }
 0x440   : > { %v9407_v21 = vpop.permute.xlu0 %4942 }
 0x441   : > { %5134 = vperm.xlu0 %6292, %v4727_v44   ;;  %v5326_v44 = vadd.s32 4294967256, %v9414_v1 }
 0x442   : > { %v9411_v36 = vpop.permute.xlu1 %4945 }
 0x443   : > { %5137 = vperm.xlu1 %6293, %v4728_v59   ;;  %v10621_v59 = vld [vmem:[#allocation50_spill] sm:$0xff]  ;;  %v9467_v60 = vsub.s32 %v5326_v44, %v10618_v32 }
 0x444   : > { %v9418_v45 = vpop.permute.xlu0 %4948  ;;  %v4735_v52 = vadd.f32 %v9215_v0, %v10621_v59 }
 0x445   : > { %5140 = vperm.xlu0 %6292, %v4729_v43  }
 0x446   : > { %v4958_v7 = vpop.permute.xlu1 %4957 }
 0x447   : > { %5143 = vperm.xlu1 %6293, %v4730_v10   ;;  %v5406_v20 = vrot.slane %v4958_v7, %v9440_v16  ;;  %v5333_v10 = vadd.s32 4294967248, %v9414_v1 }
 0x448   : > { %v9425_v54 = vpop.permute.xlu0 %4954 }
 0x449   : > { %5146 = vperm.xlu0 %6292, %v4731_v40   ;;  %v4736_v40 = vadd.f32 %v9211_v22, %v10622_v50  ;;  %v9476_v25 = vsub.s32 %v5333_v10, %v10618_v32 }
 0x44a   : > { %v9430_v51 = vpop.permute.xlu1 %4951 }
 0x44b   : > { %5149 = vperm.xlu1 %6293, %v4732_v24   ;;  %v5340_v24 = vadd.s32 4294967240, %v9414_v1 }
 0x44c   : > { %v4961_v26 = vpop.permute.xlu0 %4960 }
 0x44d   : > { %v5410_v62 = vrot.slane %v4961_v26, %v9433_v12  ;;  %5152 = vperm.xlu0 %6292, %v4733_v5   ;;  %v4737_v5 = vadd.f32 %v9223_v11, %v10623_v37  ;;  %v9483_v59 = vsub.s32 %v5340_v24, %v10618_v32 }
 0x44e   : > { %v4964_v28 = vpop.permute.xlu1 %4963 }
 0x44f   : > { %v5415_v46 = vrot.slane %v4964_v28, %v9444_v30  ;;  %5155 = vperm.xlu1 %6293, %v4734_v61   ;;  %v5411_v43 = vsel %vm5303_vm1, %v5410_v62, %v5406_v20  ;;  %v10624_v28 = vld [vmem:[#allocation67_spill] sm:$0xff] }
 0x450   : > { %v4967_v63 = vpop.permute.xlu0 %4966  ;;  %v4738_v44 = vadd.f32 %v9219_v13, %v10624_v28  ;;  %v5375_v28 = vadd.s32 4294967200, %v9414_v1 }
 0x451   : > { %v5416_v7 = vsel %vm5310_vm2, %v5415_v46, %v5411_v43  ;;  %v5420_v57 = vrot.slane %v4967_v63, %v9451_v4  ;;  %5158 = vperm.xlu0 %6292, %v4735_v52   ;;  %v5354_v52 = vadd.s32 4294967224, %v9414_v1  ;;  %v10625_v63 = vld [vmem:[#allocation68_spill] sm:$0xff] }
 0x452   : > { %v4970_v38 = vpop.permute.xlu1 %4969  ;;  %v4739_v10 = vadd.f32 %v9231_v56, %v10625_v63 }
 0x453   : > { %v5425_v14 = vrot.slane %v4970_v38, %v9458_v8  ;;  %5161 = vperm.xlu1 %6293, %v4736_v40   ;;  %v5421_v26 = vsel %vm5317_vm3, %v5420_v57, %v5416_v7  ;;  %v9490_v7 = vsub.s32 %v5347_v17, %v10618_v32  ;;  %v5361_v40 = vadd.s32 4294967216, %v9414_v1 }
 0x454   : > { %v4973_v62 = vpop.permute.xlu0 %4972  ;;  %v5368_v17 = vadd.s32 4294967208, %v9414_v1 }
 0x455   : > { %v5426_v61 = vsel %vm5324_vm4, %v5425_v14, %v5421_v26  ;;  %v5430_v20 = vrot.slane %v4973_v62, %v9467_v60  ;;  %5164 = vperm.xlu0 %6292, %v4737_v5   ;;  %v10626_v14 = vld [vmem:[#allocation77_spill] sm:$0xff]  ;;  %v9499_v26 = vsub.s32 %v5354_v52, %v10618_v32 }
 0x456   : > { %v4976_v46 = vpop.permute.xlu1 %4975  ;;  %v4740_v37 = vadd.f32 %v9227_v41, %v10626_v14  ;;  %v9515_v14 = vsub.s32 %v5368_v17, %v10618_v32 }
 0x457   : > { %v5435_v43 = vrot.slane %v4976_v46, %v9476_v25  ;;  %5167 = vperm.xlu1 %6293, %v4738_v44   ;;  %v5431_v57 = vsel %vm5331_vm5, %v5430_v20, %v5426_v61  ;;  %v10627_v61 = vld [vmem:[#allocation78_spill] sm:$0xff] }
 0x458   : > { %v4979_v50 = vpop.permute.xlu0 %4978  ;;  %v4741_v20 = vadd.f32 %v9239_v15, %v10627_v61 }
 0x459   : > { %v5436_v38 = vsel %vm5338_vm6, %v5435_v43, %v5431_v57  ;;  %v5440_v24 = vrot.slane %v4979_v50, %v9483_v59  ;;  %5170 = vperm.xlu0 %6292, %v4739_v10   ;;  %v9508_v43 = vsub.s32 %v5361_v40, %v10618_v32  ;;  %v10628_v10 = vld [vmem:[#allocation82_spill] sm:$0xff]  ;;  %v10629_v40 = vld [vmem:[#allocation13_spill] sm:$0xff] }
 0x45a   : > { %v4982_v5 = vpop.permute.xlu1 %4981  ;;  %v4742_v57 = vadd.f32 %v9235_v23, %v10628_v10 }
 0x45b   : > { %v5445_v62 = vrot.slane %v4982_v5, %v9490_v7  ;;  %5173 = vperm.xlu1 %6293, %v4740_v37   ;;  %v5441_v44 = vsel %vm5345_vm7, %v5440_v24, %v5436_v38  ;;  %v5382_v37 = vadd.s32 4294967192, %v9414_v1  ;;  %v4743_v24 = vadd.f32 %v9247_v18, %v10629_v40 }
 0x45c   : > { %v4985_v46 = vpop.permute.xlu0 %4984  ;;  %v9522_v5 = vsub.s32 %v5375_v28, %v10618_v32  ;;  %v5396_v28 = vadd.s32 4294967176, %v9414_v1 }
 0x45d   : > { %v5446_v52 = vsel %vm5352_vm8, %v5445_v62, %v5441_v44  ;;  %v5450_v63 = vrot.slane %v4985_v46, %v9499_v26  ;;  %5176 = vperm.xlu0 %6292, %v4741_v20   ;;  %v5389_v20 = vadd.s32 4294967184, %v9414_v1  ;;  %v10630_v46 = vld [vmem:[#allocation42_spill] sm:$0xff] }
 0x45e   : > { %v4988_v50 = vpop.permute.xlu1 %4987  ;;  %v4744_v10 = vadd.f32 %v9245_v2, %v10630_v46  ;;  %v10632_v46 = vld [vmem:[#allocation39_spill] sm:$0xff] }
 0x45f   : > { %v5455_v38 = vrot.slane %v4988_v50, %v9508_v43  ;;  %5179 = vperm.xlu1 %6293, %v4742_v57   ;;  %v5451_v62 = vsel %vm5359_vm9, %v5450_v63, %v5446_v52  ;;  %v9531_v50 = vsub.s32 %v5382_v37, %v10618_v32  ;;  %v10631_v63 = vld [vmem:[#allocation88_spill] sm:$0xff]  ;;  %v4746_v1 = vadd.f32 %v9259_v9, %v10632_v46 }
 0x460   : > { %v4991_v61 = vpop.permute.xlu0 %4990  ;;  %v4745_v40 = vadd.f32 %v9253_v47, %v10631_v63 }
 0x461   : > { %v5456_v17 = vsel %vm5366_vm10, %v5455_v38, %v5451_v62  ;;  %v5460_v44 = vrot.slane %v4991_v61, %v9515_v14  ;;  %5182 = vperm.xlu0 %6292, %v4743_v24   ;;  %v9539_v62 = vsub.s32 %v5389_v20, %v10618_v32 }
 0x462   : > { %v4994_v57 = vpop.permute.xlu1 %4993 }
 0x463   : > { %v5465_v52 = vrot.slane %v4994_v57, %v9522_v5  ;;  %5185 = vperm.xlu1 %6293, %v4744_v10   ;;  %v5461_v38 = vsel %vm5373_vm11, %v5460_v44, %v5456_v17  ;;  %v9546_v10 = vsub.s32 %v5396_v28, %v10618_v32  ;;  %v10633_v17 = vld [vmem:[#allocation87_spill] sm:$0xff]  ;;  %v5302_v32 = vrot.slane %v9363_v27, %v9433_v12 }
 0x464   : > { %v4997_v24 = vpop.permute.xlu0 %4996  ;;  %v4747_v20 = vadd.f32 %v9261_v29, %v10633_v17  ;;  %v5297_v17 = vrot.slane %v9367_v49, %v9440_v16  ;;  %v5323_v49 = vrot.slane %v9379_v55, %v9458_v8 }
 0x465   : > { %v5466_v61 = vsel %vm10118_vm12, %v5465_v52, %v5461_v38  ;;  %v5470_v37 = vrot.slane %v4997_v24, %v9531_v50  ;;  %5188 = vperm.xlu0 %6292, %v4745_v40   ;;  %v10634_v24 = vld [vmem:[#allocation38_spill] sm:$0xff] }
 0x466   : > { %v5000_v57 = vpop.permute.xlu1 %4999  ;;  %v4748_v46 = vadd.f32 %v9201_v19, %v10634_v24  ;;  %v10637_v24 = vld [vmem:[#allocation17_spill] sm:$0xff] }
 0x467   : > { %v5475_v63 = vrot.slane %v5000_v57, %v9539_v62  ;;  %5191 = vperm.xlu1 %6293, %v4746_v1   ;;  %v5471_v44 = vsel %vm5387_vm13, %v5470_v37, %v5466_v61  ;;  %v5309_v1 = vrot.slane %v9371_v35, %v9444_v30  ;;  %v10635_v37 = vld [vmem:[#allocation34_spill] sm:$0xff]  ;;  %v5304_v35 = vsel %vm5303_vm1, %v5302_v32, %v5297_v17 }
 0x468   : > { %v5003_v52 = vpop.permute.xlu0 %5002 }
 0x469   : > { %v5476_v40 = vsel %vm5394_vm14, %v5475_v63, %v5471_v44  ;;  %v5480_v38 = vrot.slane %v5003_v52, %v9546_v10  ;;  %5194 = vperm.xlu0 %6292, %v4747_v20   ;;  %v4749_v63 = vadd.f32 %v9205_v34, %v10635_v37  ;;  %v10636_v44 = vld [vmem:[#allocation16_spill] sm:$0xff] }
 0x46a   : > { %v5006_v28 = vpop.permute.xlu1 %5005  ;;  %v4750_v52 = vadd.f32 %v9209_v6, %v10636_v44 }
 0x46b   : > { %v9561_v57 = vsel %vm5401_vm15, %v5480_v38, %v5476_v40  ;;  %v5485_v61 = vrot.slane %v5006_v28, %v9440_v16  ;;  %5197 = vperm.xlu1 %6293, %v4748_v46   ;;  %v5316_v40 = vrot.slane %v9375_v58, %v9451_v4  ;;  %v4751_v46 = vadd.f32 %v9215_v0, %v10637_v24  ;;  %v10638_v58 = vld [vmem:[#allocation90_spill] sm:$0xff] }
 0x46c   : > { %v5009_v20 = vpop.permute.xlu0 %5008  ;;  %v5311_v28 = vsel %vm5310_vm2, %v5309_v1, %v5304_v35  ;;  %v4752_v44 = vadd.f32 %v9211_v22, %v10638_v58  ;;  %v5330_v1 = vrot.slane %v9383_v48, %v9467_v60  ;;  %v10639_v35 = vld [vmem:[#allocation44_spill] sm:$0xff]  ;;  %v10640_v48 = vld [vmem:[#allocation49_spill] sm:$0xff] }
 0x46d   : > { %v5489_v27 = vrot.slane %v5009_v20, %v9433_v12  ;;  %5200 = vperm.xlu0 %6292, %v4749_v63   ;;  %v5318_v24 = vsel %vm5317_vm3, %v5316_v40, %v5311_v28  ;;  %v10641_v58 = vld [vmem:[#allocation45_spill] sm:$0xff] }
 0x46e   : > { %v5012_v38 = vpop.permute.xlu1 %5011 }
 0x46f   : > { %v5490_v37 = vsel %vm5303_vm1, %v5489_v27, %v5485_v61  ;;  %v5494_v63 = vrot.slane %v5012_v38, %v9444_v30  ;;  %5203 = vperm.xlu1 %6293, %v4750_v52   ;;  %v4753_v61 = vadd.f32 %v9223_v11, %v10639_v35  ;;  %v5325_v27 = vsel %vm5324_vm4, %v5323_v49, %v5318_v24 }
 0x470   : > { %v5015_v20 = vpop.permute.xlu0 %5014  ;;  %v5337_v52 = vrot.slane %v9387_v53, %v9476_v25  ;;  %v5344_v49 = vrot.slane %v9391_v42, %v9483_v59  ;;  %v10642_v42 = vld [vmem:[#allocation92_spill] sm:$0xff] }
 0x471   : > { %v5495_v32 = vsel %vm5310_vm2, %v5494_v63, %v5490_v37  ;;  %v5499_v17 = vrot.slane %v5015_v20, %v9451_v4  ;;  %5206 = vperm.xlu0 %6292, %v4751_v46   ;;  %v4754_v63 = vadd.f32 %v9219_v13, %v10640_v48  ;;  %v5332_v20 = vsel %vm5331_vm5, %v5330_v1, %v5325_v27 }
 0x472   : > { %v5018_v55 = vpop.permute.xlu1 %5017  ;;  %v4756_v27 = vadd.f32 %v9227_v41, %v10642_v42 }
 0x473   : > { %v5500_v38 = vsel %vm5317_vm3, %v5499_v17, %v5495_v32  ;;  %v5504_v46 = vrot.slane %v5018_v55, %v9458_v8  ;;  %5209 = vperm.xlu1 %6293, %v4752_v44   ;;  %v4755_v32 = vadd.f32 %v9231_v56, %v10641_v58  ;;  %v5339_v17 = vsel %vm5338_vm6, %v5337_v52, %v5332_v20 }
 0x474   : > { %v5021_v37 = vpop.permute.xlu0 %5020  ;;  %v5351_v44 = vrot.slane %v9395_v39, %v9490_v7  ;;  %v5358_v52 = vrot.slane %v9399_v3, %v9499_v26  ;;  %v10644_v3 = vld [vmem:[#allocation54_spill] sm:$0xff] }
 0x475   : > { %v5505_v40 = vsel %vm5324_vm4, %v5504_v46, %v5500_v38  ;;  %v5509_v28 = vrot.slane %v5021_v37, %v9467_v60  ;;  %5212 = vperm.xlu0 %6292, %v4753_v61   ;;  %v5346_v38 = vsel %vm5345_vm7, %v5344_v49, %v5339_v17  ;;  %v10643_v46 = vld [vmem:[#allocation46_spill] sm:$0xff]  ;;  %v4758_v58 = vadd.f32 %v9235_v23, %v10644_v3 }
 0x476   : > { %v5024_v53 = vpop.permute.xlu1 %5023  ;;  %v4757_v37 = vadd.f32 %v9239_v15, %v10643_v46  ;;  %v5372_v17 = vrot.slane %v9407_v21, %v9515_v14  ;;  %v10646_v21 = vld [vmem:[#allocation20_spill] sm:$0xff]  ;;  %v10647_v46 = vld [vmem:[#allocation63_spill] sm:$0xff] }
 0x477   : > { %v5510_v24 = vsel %vm5331_vm5, %v5509_v28, %v5505_v40  ;;  %v5514_v55 = vrot.slane %v5024_v53, %v9476_v25  ;;  %5215 = vperm.xlu1 %6293, %v4754_v63   ;;  %v5353_v40 = vsel %vm5352_vm8, %v5351_v44, %v5346_v38  ;;  %v5365_v28 = vrot.slane %v9403_v33, %v9508_v43  ;;  %v10645_v44 = vld [vmem:[#allocation18_spill] sm:$0xff] }
 0x478   : > { %v5027_v35 = vpop.permute.xlu0 %5026 }
 0x479   : > { %v5515_v1 = vsel %vm5338_vm6, %v5514_v55, %v5510_v24  ;;  %v5519_v61 = vrot.slane %v5027_v35, %v9483_v59  ;;  %5218 = vperm.xlu0 %6292, %v4755_v32   ;;  %v5360_v32 = vsel %vm5359_vm9, %v5358_v52, %v5353_v40  ;;  %v4764_v24 = vadd.f32 %v9201_v19, %v10645_v44 }
 0x47a   : > { %v5030_v39 = vpop.permute.xlu1 %5029  ;;  %v5367_v55 = vsel %vm5366_vm10, %v5365_v28, %v5360_v32  ;;  %v5379_v35 = vrot.slane %v9411_v36, %v9522_v5  ;;  %v4765_v52 = vadd.f32 %v9205_v34, %v10646_v21  ;;  %v5393_v28 = vrot.slane %v9430_v51, %v9539_v62 }
 0x47b   : > { %v5520_v48 = vsel %vm5345_vm7, %v5519_v61, %v5515_v1  ;;  %v5524_v63 = vrot.slane %v5030_v39, %v9490_v7  ;;  %5221 = vperm.xlu1 %6293, %v4756_v27   ;;  %v5374_v19 = vsel %vm5373_vm11, %v5372_v17, %v5367_v55  ;;  %v5386_v39 = vrot.slane %v9418_v45, %v9531_v50  ;;  %v10648_v45 = vld [vmem:[#allocation66_spill] sm:$0xff]  ;;  %v10649_v17 = vld [vmem:[#allocation19_spill] sm:$0xff] }
 0x47c   : > { %v5033_v20 = vpop.permute.xlu0 %5032  ;;  %v5381_v40 = vsel %vm10118_vm12, %v5379_v35, %v5374_v19  ;;  %v5400_v44 = vrot.slane %v9425_v54, %v9546_v10  ;;  %v10650_v35 = vld [vmem:[#allocation21_spill] sm:$0xff] }
 0x47d   : > { %v5525_v49 = vsel %vm5352_vm8, %v5524_v63, %v5520_v48  ;;  %v5529_v53 = vrot.slane %v5033_v20, %v9499_v26  ;;  %5224 = vperm.xlu0 %6292, %v4757_v37   ;;  %v4766_v37 = vadd.f32 %v9209_v6, %v10647_v46  ;;  %v5388_v6 = vsel %vm5387_vm13, %v5386_v39, %v5381_v40 }
 0x47e   : > { %v5036_v33 = vpop.permute.xlu1 %5035 }
 0x47f   : > { %v5530_v1 = vsel %vm5359_vm9, %v5529_v53, %v5525_v49  ;;  %v5534_v61 = vrot.slane %v5036_v33, %v9508_v43  ;;  %5227 = vperm.xlu1 %6293, %v4758_v58   ;;  %v4767_v53 = vadd.f32 %v9215_v0, %v10648_v45  ;;  %v5395_v58 = vsel %vm5394_vm14, %v5393_v28, %v5388_v6 }
 0x480   : > { %v5039_v42 = vpop.permute.xlu0 %5038  ;;  %v4768_v33 = vadd.f32 %v9211_v22, %v10649_v17  ;;  %v10656_v17 = vld [vmem:[#allocation57_spill] sm:$0xff] }
 0x481   : > { %v5535_v27 = vsel %vm5366_vm10, %v5534_v61, %v5530_v1  ;;  %v5539_v38 = vrot.slane %v5039_v42, %v9515_v14  ;;  %5245 = vperm.xlu0 %6292, %v4764_v24   ;;  %v4769_v1 = vadd.f32 %v9223_v11, %v10650_v35  ;;  %v5402_v61 = vsel %vm5401_vm15, %v5400_v44, %v5395_v58  ;;  %v10651_v11 = vld [vmem:[#allocation76_spill] sm:$0xff] }
 0x482   : > { %v5042_v36 = vpop.permute.xlu1 %5041  ;;  %v4771_v39 = vadd.f32 %v9231_v56, %v10651_v11 }
 0x483   : > { %v5540_v48 = vsel %vm5373_vm11, %v5539_v38, %v5535_v27  ;;  %v5544_v63 = vrot.slane %v5042_v36, %v9522_v5  ;;  %5248 = vperm.xlu1 %6293, %v4765_v52   ;;  %v5957_v27 = vsel %vm5956_vm0, %v9561_v57, %v5402_v61  ;;  %v4770_v38 = vadd.f32 %v9219_v13, %v9181_v31 }
 0x484   : > { %v5045_v34 = vpop.permute.xlu0 %5044  ;;  %vm5960_vm0 = vcmask 1043459  }
 0x485   : > { %v5545_v20 = vsel %vm10118_vm12, %v5544_v63, %v5540_v48  ;;  %v5549_v49 = vrot.slane %v5045_v34, %v9531_v50  ;;  %5251 = vperm.xlu0 %6292, %v4766_v37   ;;  %vm5958_vm12 = vcmask 1042434   ;;  %v10652_v37 = vld [vmem:[#allocation24_spill] sm:$0xff]  ;;  %v10653_v48 = vld [vmem:[#allocation22_spill] sm:$0xff] }
 0x486   : > { %v5048_v3 = vpop.permute.xlu1 %5047  ;;  %v4772_v40 = vadd.f32 %v9227_v41, %v10652_v37  ;;  %v4773_v63 = vadd.f32 %v9239_v15, %v10653_v48 }
 0x487   : > { %v5550_v51 = vsel %vm5387_vm13, %v5549_v49, %v5545_v20  ;;  %v5554_v32 = vrot.slane %v5048_v3, %v9539_v62  ;;  %5254 = vperm.xlu1 %6293, %v4767_v53   ;;  %v10654_v49 = vld [vmem:[#allocation56_spill] sm:$0xff]  ;;  %v10655_v3 = vld [vmem:[#allocation29_spill] sm:$0xff] }
 0x488   : > { %v5051_v24 = vpop.permute.xlu0 %5050  ;;  %v4759_v45 = vadd.f32 %v9247_v18, %v10654_v49  ;;  %v4774_v58 = vadd.f32 %v9235_v23, %v10655_v3  ;;  %v10665_v3 = vld [vmem:[#allocation25_spill] sm:$0xff] }
 0x489   : > { %v5555_v0 = vsel %vm5394_vm14, %v5554_v32, %v5550_v51  ;;  %v5559_v55 = vrot.slane %v5051_v24, %v9546_v10  ;;  %5257 = vperm.xlu0 %6292, %v4768_v33   ;;  %v4760_v33 = vadd.f32 %v9245_v2, %v10656_v17 }
 0x48a   : > { %v5054_v42 = vpop.permute.xlu1 %5053 }
 0x48b   : > { %v5560_v22 = vsel %vm5401_vm15, %v5559_v55, %v5555_v0  ;;  %v5564_v54 = vrot.slane %v5054_v42, %v9440_v16  ;;  %5260 = vperm.xlu1 %6293, %v4769_v1   ;;  %v10657_v55 = vld [vmem:[#allocation80_spill] sm:$0xff]  ;;  %v10658_v42 = vld [vmem:[#allocation58_spill] sm:$0xff] }
 0x48c   : > { %v9673_v21 = vsel %vm5958_vm12, %v5560_v22, %v5957_v27  ;;  %v5057_v52 = vpop.permute.xlu0 %5056  ;;  %v4775_v35 = vadd.f32 %v9247_v18, %v10657_v55  ;;  %v4761_v27 = vadd.f32 %v9253_v47, %v10658_v42  ;;  %vm10663_vm12 = vcmask 851712  }
 0x48d   : > { %v5568_v19 = vrot.slane %v5057_v52, %v9433_v12  ;;  %5263 = vperm.xlu0 %6292, %v4770_v38   ;;  %v10659_v52 = vld [vmem:[#allocation79_spill] sm:$0xff] }
 0x48e   : > { %v5060_v36 = vpop.permute.xlu1 %5059 }
 0x48f   : > { %v5569_v57 = vsel %vm5303_vm1, %v5568_v19, %v5564_v54  ;;  %v5573_v46 = vrot.slane %v5060_v36, %v9444_v30  ;;  %5266 = vperm.xlu1 %6293, %v4771_v39   ;;  %v4776_v19 = vadd.f32 %v9245_v2, %v10659_v52  ;;  %v10660_v36 = vld [vmem:[#allocation65_spill] sm:$0xff] }
 0x490   : > { %v5063_v28 = vpop.permute.xlu0 %5062 }
 0x491   : > { %v5574_v13 = vsel %vm5310_vm2, %v5573_v46, %v5569_v57  ;;  %v5578_v31 = vrot.slane %v5063_v28, %v9451_v4  ;;  %5269 = vperm.xlu0 %6292, %v4772_v40   ;;  %v4762_v57 = vadd.f32 %v9259_v9, %v10660_v36  ;;  %v10661_v28 = vld [vmem:[#allocation31_spill] sm:$0xff] }
 0x492   : > { %v5066_v34 = vpop.permute.xlu1 %5065 }
 0x493   : > { %v5579_v56 = vsel %vm5317_vm3, %v5578_v31, %v5574_v13  ;;  %v5583_v20 = vrot.slane %v5066_v34, %v9458_v8  ;;  %5272 = vperm.xlu1 %6293, %v4773_v63   ;;  %v4777_v13 = vadd.f32 %v9253_v47, %v10661_v28  ;;  %v10662_v63 = vld [vmem:[#allocation62_spill] sm:$0xff] }
 0x494   : > { %v5069_v53 = vpop.permute.xlu0 %5068  ;;  %v4763_v34 = vadd.f32 %v9261_v29, %v10662_v63 }
 0x495   : > { %v5584_v41 = vsel %vm5324_vm4, %v5583_v20, %v5579_v56  ;;  %v5588_v6 = vrot.slane %v5069_v53, %v9467_v60  ;;  %5230 = vperm.xlu0 %6292, %v4759_v45   ;;  %v10664_v45 = vld [vmem:[#allocation23_spill] sm:$0xff] }
 0x496   : > { %v5072_v51 = vpop.permute.xlu1 %5071  ;;  %v4778_v53 = vadd.f32 %v9259_v9, %v10664_v45 }
 0x497   : > { %v5589_v15 = vsel %vm5331_vm5, %v5588_v6, %v5584_v41  ;;  %v5593_v32 = vrot.slane %v5072_v51, %v9476_v25  ;;  %5275 = vperm.xlu1 %6293, %v4774_v58   ;;  %v4779_v58 = vadd.f32 %v9261_v29, %v10665_v3 }
 0x498   : > { %v5075_v44 = vpop.permute.xlu0 %5074 }
 0x499   : > { %v5594_v24 = vsel %vm5338_vm6, %v5593_v32, %v5589_v15  ;;  %v5598_v0 = vrot.slane %v5075_v44, %v9483_v59  ;;  %5233 = vperm.xlu0 %6292, %v4760_v33  }
 0x49a   : > { %v5078_v1 = vpop.permute.xlu1 %5077 }
 0x49b   : > { %v5599_v23 = vsel %vm5345_vm7, %v5598_v0, %v5594_v24  ;;  %v5603_v61 = vrot.slane %v5078_v1, %v9490_v7  ;;  %5278 = vperm.xlu1 %6293, %v4775_v35  }
 0x49c   : > { %v5081_v22 = vpop.permute.xlu0 %5080 }
 0x49d   : > { %v5604_v54 = vsel %vm5352_vm8, %v5603_v61, %v5599_v23  ;;  %v5608_v38 = vrot.slane %v5081_v22, %v9499_v26  ;;  %5236 = vperm.xlu0 %6292, %v4761_v27  }
 0x49e   : > { %v5084_v11 = vpop.permute.xlu1 %5083 }
 0x49f   : > { %v5609_v18 = vsel %vm5359_vm9, %v5608_v38, %v5604_v54  ;;  %v5613_v39 = vrot.slane %v5084_v11, %v9508_v43  ;;  %5281 = vperm.xlu1 %6293, %v4776_v19  }
 0x4a0   : > { %v5087_v46 = vpop.permute.xlu0 %5086 }
 0x4a1   : > { %v5614_v37 = vsel %vm5366_vm10, %v5613_v39, %v5609_v18  ;;  %v5618_v40 = vrot.slane %v5087_v46, %v9515_v14  ;;  %5239 = vperm.xlu0 %6292, %v4762_v57  }
 0x4a2   : > { %v5090_v31 = vpop.permute.xlu1 %5089 }
 0x4a3   : > { %v5619_v2 = vsel %vm5373_vm11, %v5618_v40, %v5614_v37  ;;  %v5623_v48 = vrot.slane %v5090_v31, %v9522_v5  ;;  %5284 = vperm.xlu1 %6293, %v4777_v13  }
 0x4a4   : > { %v5093_v56 = vpop.permute.xlu0 %5092 }
 0x4a5   : > { %v5624_v20 = vsel %vm10663_vm12, %v5623_v48, %v5619_v2  ;;  %v5628_v49 = vrot.slane %v5093_v56, %v9531_v50  ;;  %5242 = vperm.xlu0 %6292, %v4763_v34  }
 0x4a6   : > { %v5096_v41 = vpop.permute.xlu1 %5095 }
 0x4a7   : > { %v5629_v47 = vsel %vm5387_vm13, %v5628_v49, %v5624_v20  ;;  %v5633_v6 = vrot.slane %v5096_v41, %v9539_v62  ;;  %5287 = vperm.xlu1 %6293, %v4778_v53  }
 0x4a8   : > { %v5099_v51 = vpop.permute.xlu0 %5098 }
 0x4a9   : > { %v5634_v15 = vsel %vm5394_vm14, %v5633_v6, %v5629_v47  ;;  %v5638_v32 = vrot.slane %v5099_v51, %v9546_v10  ;;  %5290 = vperm.xlu0 %6292, %v4779_v58  }
 0x4aa   : > { %v5102_v17 = vpop.permute.xlu1 %5101 }
 0x4ab   : > { %v5639_v33 = vsel %vm5401_vm15, %v5638_v32, %v5634_v15  ;;  %v5643_v9 = vrot.slane %v5102_v17, %v9440_v16 }
 0x4ac   : > { %v5961_v44 = vsel %vm5960_vm0, %v5639_v33, %v9673_v21  ;;  %v5105_v24 = vpop.permute.xlu0 %5104  ;;  %vm5962_vm0 = vcmask 1044484  }
 0x4ad   : > { %v5647_v0 = vrot.slane %v5105_v24, %v9433_v12 }
 0x4ae   : > { %v5108_v55 = vpop.permute.xlu1 %5107 }
 0x4af   : > { %v5648_v29 = vsel %vm5303_vm1, %v5647_v0, %v5643_v9  ;;  %v5652_v35 = vrot.slane %v5108_v55, %v9444_v30 }
 0x4b0   : > { %v5111_v1 = vpop.permute.xlu0 %5110 }
 0x4b1   : > { %v5653_v23 = vsel %vm5310_vm2, %v5652_v35, %v5648_v29  ;;  %v5657_v61 = vrot.slane %v5111_v1, %v9451_v4 }
 0x4b2   : > { %v5114_v42 = vpop.permute.xlu1 %5113 }
 0x4b3   : > { %v5658_v27 = vsel %vm5317_vm3, %v5657_v61, %v5653_v23  ;;  %v5662_v22 = vrot.slane %v5114_v42, %v9458_v8 }
 0x4b4   : > { %v5117_v54 = vpop.permute.xlu0 %5116 }
 0x4b5   : > { %v5663_v21 = vsel %vm5324_vm4, %v5662_v22, %v5658_v27  ;;  %v5667_v38 = vrot.slane %v5117_v54, %v9467_v60 }
 0x4b6   : > { %v5120_v52 = vpop.permute.xlu1 %5119 }
 0x4b7   : > { %v5668_v19 = vsel %vm5331_vm5, %v5667_v38, %v5663_v21  ;;  %v5672_v11 = vrot.slane %v5120_v52, %v9476_v25 }
 0x4b8   : > { %v5123_v18 = vpop.permute.xlu0 %5122 }
 0x4b9   : > { %v5673_v39 = vsel %vm5338_vm6, %v5672_v11, %v5668_v19  ;;  %v5677_v36 = vrot.slane %v5123_v18, %v9483_v59 }
 0x4ba   : > { %v5126_v57 = vpop.permute.xlu1 %5125 }
 0x4bb   : > { %v5678_v46 = vsel %vm5345_vm7, %v5677_v36, %v5673_v39  ;;  %v5682_v37 = vrot.slane %v5126_v57, %v9490_v7 }
 0x4bc   : > { %v5129_v40 = vpop.permute.xlu0 %5128 }
 0x4bd   : > { %v5683_v28 = vsel %vm5352_vm8, %v5682_v37, %v5678_v46  ;;  %v5687_v13 = vrot.slane %v5129_v40, %v9499_v26 }
 0x4be   : > { %v5132_v31 = vpop.permute.xlu1 %5131 }
 0x4bf   : > { %v5688_v2 = vsel %vm5359_vm9, %v5687_v13, %v5683_v28  ;;  %v5692_v48 = vrot.slane %v5132_v31, %v9508_v43 }
 0x4c0   : > { %v5135_v63 = vpop.permute.xlu0 %5134 }
 0x4c1   : > { %v5693_v34 = vsel %vm5366_vm10, %v5692_v48, %v5688_v2  ;;  %v5697_v56 = vrot.slane %v5135_v63, %v9515_v14 }
 0x4c2   : > { %v5138_v20 = vpop.permute.xlu1 %5137 }
 0x4c3   : > { %v5698_v49 = vsel %vm5373_vm11, %v5697_v56, %v5693_v34  ;;  %v5702_v45 = vrot.slane %v5138_v20, %v9522_v5 }
 0x4c4   : > { %v5141_v53 = vpop.permute.xlu0 %5140 }
 0x4c5   : > { %v5703_v41 = vsel %vm10663_vm12, %v5702_v45, %v5698_v49  ;;  %v5707_v47 = vrot.slane %v5141_v53, %v9531_v50 }
 0x4c6   : > { %v5144_v6 = vpop.permute.xlu1 %5143 }
 0x4c7   : > { %v5708_v3 = vsel %vm5387_vm13, %v5707_v47, %v5703_v41  ;;  %v5712_v58 = vrot.slane %v5144_v6, %v9539_v62 }
 0x4c8   : > { %v5147_v51 = vpop.permute.xlu0 %5146 }
 0x4c9   : > { %v5713_v15 = vsel %vm5394_vm14, %v5712_v58, %v5708_v3  ;;  %v5717_v32 = vrot.slane %v5147_v51, %v9546_v10 }
 0x4ca   : > { %v5150_v17 = vpop.permute.xlu1 %5149 }
 0x4cb   : > { %v5718_v33 = vsel %vm5401_vm15, %v5717_v32, %v5713_v15  ;;  %v5722_v9 = vrot.slane %v5150_v17, %v9440_v16 }
 0x4cc   : > { %v5963_v24 = vsel %vm5962_vm0, %v5718_v33, %v5961_v44  ;;  %v5153_v0 = vpop.permute.xlu0 %5152  ;;  %vm5964_vm0 = vcmask 1045509  }
 0x4cd   : > { %v5726_v55 = vrot.slane %v5153_v0, %v9433_v12 }
 0x4ce   : > { %v5156_v29 = vpop.permute.xlu1 %5155 }
 0x4cf   : > { %v5727_v35 = vsel %vm5303_vm1, %v5726_v55, %v5722_v9  ;;  %v5731_v1 = vrot.slane %v5156_v29, %v9444_v30 }
 0x4d0   : > { %v5159_v23 = vpop.permute.xlu0 %5158 }
 0x4d1   : > { %v5732_v61 = vsel %vm5310_vm2, %v5731_v1, %v5727_v35  ;;  %v5736_v42 = vrot.slane %v5159_v23, %v9451_v4 }
 0x4d2   : > { %v5162_v27 = vpop.permute.xlu1 %5161 }
 0x4d3   : > { %v5737_v22 = vsel %vm5317_vm3, %v5736_v42, %v5732_v61  ;;  %v5741_v54 = vrot.slane %v5162_v27, %v9458_v8 }
 0x4d4   : > { %v5165_v21 = vpop.permute.xlu0 %5164 }
 0x4d5   : > { %v5742_v44 = vsel %vm5324_vm4, %v5741_v54, %v5737_v22  ;;  %v5746_v38 = vrot.slane %v5165_v21, %v9467_v60 }
 0x4d6   : > { %v5168_v52 = vpop.permute.xlu1 %5167 }
 0x4d7   : > { %v5747_v19 = vsel %vm5331_vm5, %v5746_v38, %v5742_v44  ;;  %v5751_v11 = vrot.slane %v5168_v52, %v9476_v25 }
 0x4d8   : > { %v5171_v18 = vpop.permute.xlu0 %5170 }
 0x4d9   : > { %v5752_v39 = vsel %vm5338_vm6, %v5751_v11, %v5747_v19  ;;  %v5756_v36 = vrot.slane %v5171_v18, %v9483_v59 }
 0x4da   : > { %v5174_v57 = vpop.permute.xlu1 %5173 }
 0x4db   : > { %v5757_v46 = vsel %vm5345_vm7, %v5756_v36, %v5752_v39  ;;  %v5761_v37 = vrot.slane %v5174_v57, %v9490_v7 }
 0x4dc   : > { %v5177_v40 = vpop.permute.xlu0 %5176 }
 0x4dd   : > { %v5762_v28 = vsel %vm5352_vm8, %v5761_v37, %v5757_v46  ;;  %v5766_v13 = vrot.slane %v5177_v40, %v9499_v26 }
 0x4de   : > { %v5180_v31 = vpop.permute.xlu1 %5179 }
 0x4df   : > { %v5767_v2 = vsel %vm5359_vm9, %v5766_v13, %v5762_v28  ;;  %v5771_v48 = vrot.slane %v5180_v31, %v9508_v43 }
 0x4e0   : > { %v5183_v63 = vpop.permute.xlu0 %5182 }
 0x4e1   : > { %v5772_v34 = vsel %vm5366_vm10, %v5771_v48, %v5767_v2  ;;  %v5776_v56 = vrot.slane %v5183_v63, %v9515_v14 }
 0x4e2   : > { %v5186_v20 = vpop.permute.xlu1 %5185 }
 0x4e3   : > { %v5777_v49 = vsel %vm5373_vm11, %v5776_v56, %v5772_v34  ;;  %v5781_v45 = vrot.slane %v5186_v20, %v9522_v5 }
 0x4e4   : > { %v5189_v53 = vpop.permute.xlu0 %5188 }
 0x4e5   : > { %v5782_v41 = vsel %vm10663_vm12, %v5781_v45, %v5777_v49  ;;  %v5786_v47 = vrot.slane %v5189_v53, %v9531_v50 }
 0x4e6   : > { %v5192_v6 = vpop.permute.xlu1 %5191 }
 0x4e7   : > { %v5787_v3 = vsel %vm5387_vm13, %v5786_v47, %v5782_v41  ;;  %v5791_v58 = vrot.slane %v5192_v6, %v9539_v62 }
 0x4e8   : > { %v5195_v51 = vpop.permute.xlu0 %5194 }
 0x4e9   : > { %v5792_v15 = vsel %vm5394_vm14, %v5791_v58, %v5787_v3  ;;  %v5796_v32 = vrot.slane %v5195_v51, %v9546_v10 }
 0x4ea   : > { %v5198_v17 = vpop.permute.xlu1 %5197 }
 0x4eb   : > { %v5797_v33 = vsel %vm5401_vm15, %v5796_v32, %v5792_v15 }
 0x4ec   : > { %v9796_v9 = vsel %vm5964_vm0, %v5797_v33, %v5963_v24  ;;  %v5201_v0 = vpop.permute.xlu0 %5200  ;;  %v5801_v24 = vrot.slane %v5198_v17, %v9440_v16 }
 0x4ed   : > { %v5805_v18 = vrot.slane %v5201_v0, %v9433_v12 }
 0x4ee   : > { %v5204_v55 = vpop.permute.xlu1 %5203 }
 0x4ef   : > { %v5810_v36 = vrot.slane %v5204_v55, %v9444_v30  ;;  %v5806_v37 = vsel %vm5303_vm1, %v5805_v18, %v5801_v24 }
 0x4f0   : > { %v5207_v29 = vpop.permute.xlu0 %5206 }
 0x4f1   : > { %v5815_v40 = vrot.slane %v5207_v29, %v9451_v4  ;;  %v5811_v31 = vsel %vm5310_vm2, %v5810_v36, %v5806_v37 }
 0x4f2   : > { %v5210_v35 = vpop.permute.xlu1 %5209 }
 0x4f3   : > { %v5820_v2 = vrot.slane %v5210_v35, %v9458_v8 }
 0x4f4   : > { %v5213_v1 = vpop.permute.xlu0 %5212 }
 0x4f5   : > { %v5825_v20 = vrot.slane %v5213_v1, %v9467_v60 }
 0x4f6   : > { %v5216_v23 = vpop.permute.xlu1 %5215 }
 0x4f8   : > { %v5219_v61 = vpop.permute.xlu0 %5218 }
 0x4f9   : > { %v5835_v3 = vrot.slane %v5219_v61, %v9483_v59 }
 0x4fa   : > { %v5222_v42 = vpop.permute.xlu1 %5221 }
 0x4fb   : > { %v5840_v15 = vrot.slane %v5222_v42, %v9490_v7 }
 0x4fc   : > { %v5225_v27 = vpop.permute.xlu0 %5224 }
 0x4fd   : > { %v5845_v55 = vrot.slane %v5225_v27, %v9499_v26 }
 0x4fe   : > { %v9798_v22 = vpop.permute.xlu1 %5227 }
 0x4ff   : > { %v5850_v1 = vrot.slane %v9798_v22, %v9508_v43 }
 0x500   : > { %v5246_v54 = vpop.permute.xlu0 %5245 }
 0x501   : > { %v5880_v28 = vrot.slane %v5246_v54, %v9440_v16  ;;  %v5830_v16 = vrot.slane %v5216_v23, %v9476_v25 }
 0x502   : > { %v5249_v21 = vpop.permute.xlu1 %5248 }
 0x503   : > { %v5884_v57 = vrot.slane %v5249_v21, %v9433_v12  ;;  %v5816_v12 = vsel %vm5317_vm3, %v5815_v40, %v5811_v31 }
 0x504   : > { %v5252_v44 = vpop.permute.xlu0 %5251  ;;  %v5821_v45 = vsel %vm5324_vm4, %v5820_v2, %v5816_v12 }
 0x505   : > { %v5889_v48 = vrot.slane %v5252_v44, %v9444_v30  ;;  %v5885_v63 = vsel %vm5303_vm1, %v5884_v57, %v5880_v28  ;;  %vm10666_vm1 = vmmov %vm10663_vm12 }
 0x506   : > { %v5255_v38 = vpop.permute.xlu1 %5254 }
 0x507   : > { %v5894_v34 = vrot.slane %v5255_v38, %v9451_v4  ;;  %v5890_v53 = vsel %vm5310_vm2, %v5889_v48, %v5885_v63  ;;  %v5826_v4 = vsel %vm5331_vm5, %v5825_v20, %v5821_v45  ;;  %vm10667_vm2 = vmmov %vm10666_vm1 }
 0x508   : > { %v5258_v52 = vpop.permute.xlu0 %5257  ;;  %v5831_v51 = vsel %vm5338_vm6, %v5830_v16, %v5826_v4 }
 0x509   : > { %v5899_v41 = vrot.slane %v5258_v52, %v9458_v8  ;;  %v5895_v30 = vsel %vm5317_vm3, %v5894_v34, %v5890_v53  ;;  %vm5966_vm3 = vcmask 1046534  }
 0x50a   : > { %v5261_v19 = vpop.permute.xlu1 %5260 }
 0x50b   : > { %v5904_v47 = vrot.slane %v5261_v19, %v9467_v60  ;;  %v5900_v32 = vsel %vm5324_vm4, %v5899_v41, %v5895_v30  ;;  %v5836_v60 = vsel %vm5345_vm7, %v5835_v3, %v5831_v51  ;;  %vm5968_vm4 = vcmask 1047559  }
 0x50c   : > { %v5264_v11 = vpop.permute.xlu0 %5263  ;;  %v5841_v35 = vsel %vm5352_vm8, %v5840_v15, %v5836_v60 }
 0x50d   : > { %v5909_v17 = vrot.slane %v5264_v11, %v9476_v25  ;;  %v5905_v8 = vsel %vm5331_vm5, %v5904_v47, %v5900_v32  ;;  %v5846_v44 = vsel %vm5359_vm9, %v5845_v55, %v5841_v35 }
 0x50e   : > { %v5267_v39 = vpop.permute.xlu1 %5266 }
 0x50f   : > { %v5914_v33 = vrot.slane %v5267_v39, %v9483_v59  ;;  %v5910_v23 = vsel %vm5338_vm6, %v5909_v17, %v5905_v8 }
 0x510   : > { %v5270_v46 = vpop.permute.xlu0 %5269 }
 0x511   : > { %v5919_v61 = vrot.slane %v5270_v46, %v9490_v7  ;;  %v5915_v25 = vsel %vm5345_vm7, %v5914_v33, %v5910_v23  ;;  %v5851_v7 = vsel %vm5366_vm10, %v5850_v1, %v5846_v44 }
 0x512   : > { %v5273_v13 = vpop.permute.xlu1 %5272 }
 0x513   : > { %v5924_v42 = vrot.slane %v5273_v13, %v9499_v26  ;;  %v5920_v19 = vsel %vm5352_vm8, %v5919_v61, %v5915_v25 }
 0x514   : > { %v5231_v56 = vpop.permute.xlu0 %5230 }
 0x515   : > { %v5855_v59 = vrot.slane %v5231_v56, %v9515_v14  ;;  %v5925_v24 = vsel %vm5359_vm9, %v5924_v42, %v5920_v19 }
 0x516   : > { %v5276_v49 = vpop.permute.xlu1 %5275 }
 0x517   : > { %v5929_v21 = vrot.slane %v5276_v49, %v9508_v43  ;;  %v5856_v43 = vsel %vm5373_vm11, %v5855_v59, %v5851_v7 }
 0x518   : > { %v5234_v6 = vpop.permute.xlu0 %5233 }
 0x519   : > { %v5860_v27 = vrot.slane %v5234_v6, %v9522_v5  ;;  %v5930_v39 = vsel %vm5366_vm10, %v5929_v21, %v5925_v24 }
 0x51a   : > { %v5279_v58 = vpop.permute.xlu1 %5278 }
 0x51b   : > { %v5934_v38 = vrot.slane %v5279_v58, %v9515_v14  ;;  %v5861_v36 = vsel %vm10666_vm1, %v5860_v27, %v5856_v43 }
 0x51c   : > { %v5237_v0 = vpop.permute.xlu0 %5236 }
 0x51d   : > { %v5865_v22 = vrot.slane %v5237_v0, %v9531_v50  ;;  %v5935_v46 = vsel %vm5373_vm11, %v5934_v38, %v5930_v39 }
 0x51e   : > { %v5282_v29 = vpop.permute.xlu1 %5281 }
 0x51f   : > { %v5939_v26 = vrot.slane %v5282_v29, %v9522_v5  ;;  %v5866_v5 = vsel %vm5387_vm13, %v5865_v22, %v5861_v36 }
 0x520   : > { %v5240_v54 = vpop.permute.xlu0 %5239 }
 0x521   : > { %v5870_v11 = vrot.slane %v5240_v54, %v9539_v62  ;;  %v5940_v40 = vsel %vm10667_vm2, %v5939_v26, %v5935_v46 }
 0x522   : > { %v5285_v52 = vpop.permute.xlu1 %5284 }
 0x523   : > { %v5944_v18 = vrot.slane %v5285_v52, %v9531_v50  ;;  %v5871_v28 = vsel %vm5394_vm14, %v5870_v11, %v5866_v5 }
 0x524   : > { %v5243_v14 = vpop.permute.xlu0 %5242 }
 0x525   : > { %v5875_v57 = vrot.slane %v5243_v14, %v9546_v10  ;;  %v5945_v50 = vsel %vm5387_vm13, %v5944_v18, %v5940_v40 }
 0x526   : > { %v5288_v37 = vpop.permute.xlu1 %5287 }
 0x527   : > { %v5949_v13 = vrot.slane %v5288_v37, %v9539_v62  ;;  %v5876_v31 = vsel %vm5401_vm15, %v5875_v57, %v5871_v28 }
 0x528   : > { %v5291_v2 = vpop.permute.xlu0 %5290  ;;  %v5967_v34 = vsel %vm5966_vm3, %v5876_v31, %v9796_v9 }
 0x529   : > { %v5950_v48 = vsel %vm5394_vm14, %v5949_v13, %v5945_v50  ;;  %v5954_v63 = vrot.slane %v5291_v2, %v9546_v10 }
 0x52b   : > { %v5955_v62 = vsel %vm5401_vm15, %v5954_v63, %v5950_v48 }
 0x52c   : > { %v5969_v56 = vsel %vm5968_vm4, %v5955_v62, %v5967_v34 }
 0x52d   : > { %5971 = vst [vmem:[%s200_s8] sm:$0xff] %v5969_v56 }
 0x52e   : > { %6367 = shalt.err (!%p6364_p7)
}
 0x52f   : > { %s6368_s30 = scalar_lea.hbm %s9870_s27, 128  ;;  %s6372_s18 = scalar_lea.hbm %s9917_s3, 256 }
 0x530   : > { %p6369_p9 = scmp.ne.s32.totalorder %s9870_s27, %s6368_s30  ;;  %p6373_p0 = scmp.lt.u32.totalorder %s9870_s27, %s9917_s3 }
 0x531   : > { %p6374_p11 = scmp.lt.u32.totalorder %s6372_s18, %s6368_s30  ;;  %p6376_p4 = scmp.lt.u32.totalorder %s6368_s30, %s9870_s27 }
 0x532   : > { %p6370_p2 = pnand %p6369_p9, %p6550_p12 }
 0x533   : > { %p6375_p1 = por %p6374_p11, %p6373_p0 }
 0x534   : > { %p6371_p5 = pneg %p6370_p2 }
 0x535   : > { %p6377_p6 = por %p6376_p4, %p6375_p1 }
 0x537   : > { %p6378_p8 = pnand %p6377_p6, %p6371_p5 }
 0x539   : > { %6381 = shalt.err (!%p6378_p8)
}
 0x53a   : > { %6231 = dma.vmem_to_hbm [thread:$0]  (%p6550_p12), %s9872_s9, 128, %s9870_s27, %s5973_s16  }
 0x53b PF: > { %s5998_s25 = sand.u32 1, %s6412_s12   ;;  %p10668_p10 = scmp.ne.s32.totalorder %s10120_s19, 0 }
 0x53c   : > { %p10669_p13 = scmp.ge.s32.totalorder %s6424_s15, 2  ;;  %s5999_s26 = scalar_lea.sflag [#allocation4], %s5998_s25 }
 0x53e   : > { %p6242_p3 = pnand %p10669_p13, %p10668_p10 }
 0x540   : > { %6407 = dma.done.wait (!%p6242_p3), %s5999_s26, 128  }
 0x541   : > { %6409 = vsyncadd (!%p6242_p3), %s5999_s26, 4294967168  ;;  %p17_p7 = scmp.ge.s32.totalorder %s6515_s24, 4   ;;  %s10670_s12 = smov %s6416_s13 }
 0x542   : > { %s10671_s13 = smov %s6420_s14  ;;  %s10672_s14 = smov %s6546_s17 }
 0x543   : > { %s10673_s15 = smov %s6515_s24  ;;  %19 = sbr.rel (!%p17_p7) target bundleno = 6 (0x6), region = 81 }
 0x54a   :  { %6004 = vsyncpa [#allocation3], 1 }
 0x54b   :  { %6006 = vsyncpa [#allocation3 + $0x1], 1 }
 0x54c   :  { %6007 = vsyncpa [#allocation6], 1 }
 0x54d   :  { %6008 = vsyncpa [#allocation4], 1 }
 0x54e   :  { %6010 = vsyncpa [#allocation4 + $0x1], 1 }

</bundles_post_ra>
